<compile_context>
chip_gen: v7x
topology: tpu7x:2x2x1
jax: 0.10.0
libtpu: 0.0.40
codegen_flags: <defaults>
</compile_context>

<pallas_src>
import functools

import numpy as np
import jax
import jax.numpy as jnp
from jax.experimental import pallas as pl
from jax.experimental.pallas import tpu as pltpu


def _make_freq_bands(num_freqs: int, log_scale: bool):
    if log_scale:
        bands = 2.0 ** np.linspace(0.0, num_freqs - 1, num_freqs)
    else:
        bands = np.linspace(2.0 ** 0, 2.0 ** (num_freqs - 1), num_freqs)
    return tuple(float(np.float32(f)) for f in bands)


def _replicate_lanes(x, reps):
    """Equivalent to jnp.concatenate([x] * reps, axis=-1) using O(log reps)
    lane concatenations (all copies identical, so order is irrelevant)."""
    out = None
    cur = x
    r = int(reps)
    while r > 0:
        if r & 1:
            out = cur if out is None else jnp.concatenate([out, cur], axis=-1)
        r >>= 1
        if r:
            cur = jnp.concatenate([cur, cur], axis=-1)
    return out


def _pe_kernel(params_ref, x_ref, o_ref, *, reps, include_input):
    # params_ref: (3, OD) f32  rows = [coef, cos_mask, pass_mask]
    # x_ref:      (TILE, D)    o_ref: (TILE, OD) with OD = D * reps
    x = x_ref[...]

    # Replicate the D input lanes across all OD output columns (column j maps
    # to input dim j % D for every block, including the passthrough block).
    x_rep = _replicate_lanes(x, reps)                      # (TILE, OD)

    coef_row = params_ref[0:1, :]                          # (1, OD) freq (or 1)
    cos_row = params_ref[1:2, :] > 0.5                     # True on cos columns

    # One wide multiply + one wide sin + one wide cos for ALL frequencies.
    phase = x_rep * coef_row
    out = jnp.where(cos_row, jnp.cos(phase), jnp.sin(phase))
    if include_input:
        pass_row = params_ref[2:3, :] > 0.5                # True on passthrough
        out = jnp.where(pass_row, x_rep, out)

    # Single dense block store.
    o_ref[...] = out


def positional_encoding(x, *, num_freqs=10, include_input=True, log_scale=True,
                        tile_n=2048):
    """x: (..., input_dims) float32 -> (..., input_dims*(2*num_freqs [+1]))."""
    x = jnp.asarray(x, jnp.float32)
    *lead, input_dims = x.shape
    D = int(input_dims)
    F = int(num_freqs)
    reps = 2 * F + (1 if include_input else 0)
    OD = D * reps
    freqs = _make_freq_bands(F, log_scale)

    # Per-output-column coefficient / selector rows, packed into one small
    # f32 array that is passed to the kernel as a regular input.
    params = np.zeros((3, OD), np.float32)  # [coef, cos_mask, pass_mask]
    off = 0
    if include_input:
        params[0, :D] = 1.0
        params[2, :D] = 1.0
        off = D
    for f in freqs:
        params[0, off:off + D] = f           # sin columns
        params[0, off + D:off + 2 * D] = f   # cos columns
        params[1, off + D:off + 2 * D] = 1.0
        off += 2 * D
    params = jnp.asarray(params)

    # Flatten leading dims into a row table.
    n = 1
    for d in lead:
        n *= int(d)
    x2 = x.reshape(n, D)

    # Row-tile size: multiple of 8 (sublane granularity), no larger than the
    # (rounded-up) row count, so small inputs are not padded to a huge tile.
    tile_n = max(8, (int(tile_n) // 8) * 8)
    tile_rows = min(tile_n, pl.cdiv(n, 8) * 8)
    n_pad = pl.cdiv(n, tile_rows) * tile_rows
    if n_pad != n:
        x2 = jnp.pad(x2, ((0, n_pad - n), (0, 0)))

    kernel = functools.partial(_pe_kernel, reps=reps,
                               include_input=include_input)

    out = pl.pallas_call(
        kernel,
        out_shape=jax.ShapeDtypeStruct((n_pad, OD), jnp.float32),
        grid_spec=pltpu.PrefetchScalarGridSpec(
            num_scalar_prefetch=0,
            grid=(n_pad // tile_rows,),
            in_specs=[
                pl.BlockSpec((3, OD), lambda i: (0, 0)),          # params
                pl.BlockSpec((tile_rows, D), lambda i: (i, 0)),   # x rows
            ],
            out_specs=pl.BlockSpec((tile_rows, OD), lambda i: (i, 0)),
        ),
        compiler_params=pltpu.CompilerParams(
            dimension_semantics=("parallel",),
            # ~1 MiB actually used at tile_n=2048; 32 MiB keeps the pipeline
            # double-buffered with headroom even on v7x's 64 MiB VMEM.
            vmem_limit_bytes=32 * 1024 * 1024,
        ),
    )(params, x2)

    out = out[:n]
    return out.reshape(*lead, OD)


def _reference(x, *, num_freqs=10, include_input=True, log_scale=True):
    freqs = _make_freq_bands(num_freqs, log_scale)
    parts = [x] if include_input else []
    for f in freqs:
        parts.append(jnp.sin(f * x))
        parts.append(jnp.cos(f * x))
    return jnp.concatenate(parts, axis=-1)


if __name__ == "__main__":
    key = jax.random.PRNGKey(0)
    # (..., input_dims) input, e.g. a small batch of 3-D points.
    x = jax.random.normal(key, (2, 4, 16, 3), dtype=jnp.float32)

    out = positional_encoding(x, num_freqs=10, include_input=True,
                              log_scale=True)
    out = jax.block_until_ready(out)
    ref = _reference(x, num_freqs=10, include_input=True, log_scale=True)
    assert out.shape == (2, 4, 16, 3 * (2 * 10 + 1)), out.shape
    assert jnp.allclose(out, ref, atol=1e-5, rtol=1e-5), "mismatch vs reference"

    # Second config: no passthrough columns, linear frequency spacing.
    out2 = positional_encoding(x, num_freqs=4, include_input=False,
                               log_scale=False)
    out2 = jax.block_until_ready(out2)
    ref2 = _reference(x, num_freqs=4, include_input=False, log_scale=False)
    assert out2.shape == (2, 4, 16, 3 * (2 * 4)), out2.shape
    assert jnp.allclose(out2, ref2, atol=1e-5, rtol=1e-5), "mismatch (cfg 2)"

    print("KERNEL_OK")
</pallas_src>

<mosaic_0001>
module attributes {stable_mosaic.version = 11 : i64} {
  func.func @_pe_kernel(%arg0: i32, %arg1: memref<3x63xf32, #tpu.memory_space<vmem>>, %arg2: memref<128x3xf32, #tpu.memory_space<vmem>>, %arg3: memref<128x63xf32, #tpu.memory_space<vmem>>) attributes {dimension_semantics = [#tpu.dimension_semantics<parallel>], iteration_bounds = array<i64: 1>, scalar_prefetch = 0 : i64, scratch_operands = 0 : i64, tpu.core_type = #tpu.core_type<tc>, window_params = [{pipeline_mode = #tpu.pipeline_mode<synchronous>, transform_indices = @transform_0, window_bounds = array<i64: 3, 63>}, {transform_indices = @transform_1, window_bounds = array<i64: 128, 3>}, {transform_indices = @transform_2, window_bounds = array<i64: 128, 63>}]} {
    %c0 = arith.constant 0 : index
    %c0_0 = arith.constant 0 : index
    %0 = vector.load %arg2[%c0, %c0_0] : memref<128x3xf32, #tpu.memory_space<vmem>>, vector<128x3xf32>
    %1 = tpu.concatenate %0, %0 in 1 : vector<128x3xf32>, vector<128x3xf32> -> vector<128x6xf32>
    %2 = tpu.concatenate %1, %1 in 1 : vector<128x6xf32>, vector<128x6xf32> -> vector<128x12xf32>
    %3 = tpu.concatenate %0, %2 in 1 : vector<128x3xf32>, vector<128x12xf32> -> vector<128x15xf32>
    %4 = tpu.concatenate %2, %2 in 1 : vector<128x12xf32>, vector<128x12xf32> -> vector<128x24xf32>
    %5 = tpu.concatenate %4, %4 in 1 : vector<128x24xf32>, vector<128x24xf32> -> vector<128x48xf32>
    %6 = tpu.concatenate %3, %5 in 1 : vector<128x15xf32>, vector<128x48xf32> -> vector<128x63xf32>
    %c0_1 = arith.constant 0 : index
    %c0_2 = arith.constant 0 : index
    %7 = vector.load %arg1[%c0_1, %c0_2] : memref<3x63xf32, #tpu.memory_space<vmem>>, vector<1x63xf32>
    %c1 = arith.constant 1 : index
    %c0_3 = arith.constant 0 : index
    %8 = vector.load %arg1[%c1, %c0_3] : memref<3x63xf32, #tpu.memory_space<vmem>>, vector<1x63xf32>
    %cst = arith.constant 5.000000e-01 : f32
    %9 = vector.broadcast %cst : f32 to vector<1x63xf32>
    %10 = arith.cmpf ogt, %8, %9 : vector<1x63xf32>
    %11 = vector.broadcast %7 : vector<1x63xf32> to vector<128x63xf32>
    %12 = arith.mulf %6, %11 : vector<128x63xf32>
    %13 = math.cos %12 : vector<128x63xf32>
    %14 = math.sin %12 : vector<128x63xf32>
    %15 = vector.shape_cast %10 : vector<1x63xi1> to vector<1x63xi1>
    %16 = vector.broadcast %15 : vector<1x63xi1> to vector<128x63xi1>
    %17 = arith.select %16, %13, %14 : vector<128x63xi1>, vector<128x63xf32>
    %c2 = arith.constant 2 : index
    %c0_4 = arith.constant 0 : index
    %18 = vector.load %arg1[%c2, %c0_4] : memref<3x63xf32, #tpu.memory_space<vmem>>, vector<1x63xf32>
    %cst_5 = arith.constant 5.000000e-01 : f32
    %19 = vector.broadcast %cst_5 : f32 to vector<1x63xf32>
    %20 = arith.cmpf ogt, %18, %19 : vector<1x63xf32>
    %21 = vector.shape_cast %20 : vector<1x63xi1> to vector<1x63xi1>
    %22 = vector.broadcast %21 : vector<1x63xi1> to vector<128x63xi1>
    %23 = arith.select %22, %6, %17 : vector<128x63xi1>, vector<128x63xf32>
    %c0_6 = arith.constant 0 : index
    %c0_7 = arith.constant 0 : index
    %24 = vector.load %arg3[%c0_6, %c0_7] : memref<128x63xf32, #tpu.memory_space<vmem>>, vector<128x63xf32>
    tpu.vector_store %arg3[%c0_6, %c0_7], %23 {strides = array<i32>} : memref<128x63xf32, #tpu.memory_space<vmem>>, vector<128x63xf32>,
    return
  }
  func.func @transform_0(%arg0: i32) -> (i32, i32) {
    %c0_i32 = arith.constant 0 : i32
    %c0_i32_0 = arith.constant 0 : i32
    %c0_i32_1 = arith.constant 0 : i32
    return %c0_i32, %c0_i32_0 : i32, i32
  }
  func.func @transform_1(%arg0: i32) -> (i32, i32) {
    %c0_i32 = arith.constant 0 : i32
    %c0_i32_0 = arith.constant 0 : i32
    return %arg0, %c0_i32 : i32, i32
  }
  func.func @transform_2(%arg0: i32) -> (i32, i32) {
    %c0_i32 = arith.constant 0 : i32
    %c0_i32_0 = arith.constant 0 : i32
    return %arg0, %c0_i32 : i32, i32
  }
}

</mosaic_0001>

<bundles_post_ra>
// kernel: tpu_custom_call.1
= control target key start
LH: loop header
LB: loop body
LE: loop exit
PB: predicated region body
PF: predicated region fallthrough
CT: control target
= control target key end

     0   :  { %s4180_s13 = smov 3   ;;  %vm91_vm0 = vcmask 23552   ;;  %s4181_s15 = smov 6   ;;  %vm172_vm1 = vcmask 48128   ;;  %vm317_vm2 = vcmask 97280   ;;  %vm398_vm3 = vcmask 195584   ;;  %s6417_s1 = inlined_call_operand.vmem [shape: f32[128,3], index: 1, kind: input, shape index: {}]   ;;  %s6418_s0 = inlined_call_operand.vmem [shape: f32[3,63], index: 0, kind: input, shape index: {}]   ;;  %s6419_s2 = inlined_call_operand.vmem [shape: f32[128,63], index: 2, kind: output, shape index: {}]  }
   0x1   :  { %v4210_v0 = vld [vmem:[%s6417_s1] sm:$0xff]  ;;  %v4215_v1 = vld [vmem:[%s6417_s1 + $0x10] sm:$0xff]  ;;  %v4224_v2 = vld [vmem:[%s6417_s1 + $0x8] sm:$0xff]  ;;  %s4182_s16 = smov 12   ;;  %s4183_s17 = smov 24   ;;  %vm6426_vm4 = vcmask 121856  }
   0x2   :  { %43 = vrot.lane.b32.xlu0 %v4210_v0, %s4180_s13  ;;  %47 = vrot.lane.b32.xlu1 %v4215_v1, %s4180_s13  ;;  %v4229_v3 = vld [vmem:[%s6417_s1 + $0x18] sm:$0xff]  ;;  %v4238_v4 = vld [vmem:[%s6417_s1 + $0x20] sm:$0xff]  ;;  %s4184_s18 = smov 15  }
   0x3   :  { %v16_v5 = vld [vmem:[%s6417_s1 + $0x28] sm:$0xff]  ;;  %v17_v6 = vld [vmem:[%s6417_s1 + $0x30] sm:$0xff]  ;;  %v18_v7 = vld [vmem:[%s6417_s1 + $0x38] sm:$0xff] }
   0x4   :  { %v19_v8 = vld [vmem:[%s6417_s1 + $0x40] sm:$0xff]  ;;  %v20_v9 = vld [vmem:[%s6417_s1 + $0x48] sm:$0xff]  ;;  %v21_v10 = vld [vmem:[%s6417_s1 + $0x50] sm:$0xff] }
   0x5   :  { %v22_v11 = vld [vmem:[%s6417_s1 + $0x58] sm:$0xff]  ;;  %v23_v12 = vld [vmem:[%s6417_s1 + $0x60] sm:$0xff]  ;;  %v24_v13 = vld [vmem:[%s6417_s1 + $0x68] sm:$0xff] }
   0x6   :  { %45 = vrot.lane.b32.xlu0 %v4224_v2, %s4180_s13  ;;  %49 = vrot.lane.b32.xlu1 %v4229_v3, %s4180_s13  ;;  %v25_v14 = vld [vmem:[%s6417_s1 + $0x70] sm:$0xff]  ;;  %v26_v15 = vld [vmem:[%s6417_s1 + $0x78] sm:$0xff] }
   0xa   :  { %51 = vrot.lane.b32.xlu0 %v4238_v4, %s4180_s13  ;;  %53 = vrot.lane.b32.xlu1 %v16_v5, %s4180_s13 }
   0xe   :  { %55 = vrot.lane.b32.xlu0 %v17_v6, %s4180_s13  ;;  %57 = vrot.lane.b32.xlu1 %v18_v7, %s4180_s13 }
  0x12   :  { %59 = vrot.lane.b32.xlu0 %v19_v8, %s4180_s13  ;;  %61 = vrot.lane.b32.xlu1 %v20_v9, %s4180_s13 }
  0x16   :  { %63 = vrot.lane.b32.xlu0 %v21_v10, %s4180_s13  ;;  %65 = vrot.lane.b32.xlu1 %v22_v11, %s4180_s13 }
  0x1a   :  { %67 = vrot.lane.b32.xlu0 %v23_v12, %s4180_s13  ;;  %69 = vrot.lane.b32.xlu1 %v24_v13, %s4180_s13 }
  0x1e   :  { %71 = vrot.lane.b32.xlu0 %v25_v14, %s4180_s13  ;;  %73 = vrot.lane.b32.xlu1 %v26_v15, %s4180_s13 }
  0x74   :  { %v44_v16 = vpop.permute.xlu0 %43  ;;  %v48_v17 = vpop.permute.xlu1 %47 }
  0x75   :  { %v92_v18 = vsel %vm91_vm0, %v4210_v0, %v44_v16  ;;  %v94_v19 = vsel %vm91_vm0, %v4215_v1, %v48_v17 }
  0x76   :  { %124 = vrot.lane.b32.xlu0 %v92_v18, %s4181_s15 }
  0x78   :  { %v46_v20 = vpop.permute.xlu0 %45  ;;  %v50_v21 = vpop.permute.xlu1 %49 }
  0x79   :  { %v93_v22 = vsel %vm91_vm0, %v4224_v2, %v46_v20  ;;  %v95_v23 = vsel %vm91_vm0, %v4229_v3, %v50_v21 }
  0x7a   :  { %128 = vrot.lane.b32.xlu0 %v94_v19, %s4181_s15  ;;  %126 = vrot.lane.b32.xlu1 %v93_v22, %s4181_s15 }
  0x7c   :  { %v52_v24 = vpop.permute.xlu0 %51  ;;  %v54_v25 = vpop.permute.xlu1 %53 }
  0x7d   :  { %v96_v26 = vsel %vm91_vm0, %v4238_v4, %v52_v24  ;;  %v97_v27 = vsel %vm91_vm0, %v16_v5, %v54_v25 }
  0x7e   :  { %130 = vrot.lane.b32.xlu1 %v95_v23, %s4181_s15  ;;  %132 = vrot.lane.b32.xlu0 %v96_v26, %s4181_s15 }
  0x80   :  { %v56_v28 = vpop.permute.xlu0 %55  ;;  %v58_v29 = vpop.permute.xlu1 %57 }
  0x81   :  { %v98_v30 = vsel %vm91_vm0, %v17_v6, %v56_v28  ;;  %v99_v31 = vsel %vm91_vm0, %v18_v7, %v58_v29 }
  0x82   :  { %134 = vrot.lane.b32.xlu1 %v97_v27, %s4181_s15  ;;  %136 = vrot.lane.b32.xlu0 %v98_v30, %s4181_s15 }
  0x84   :  { %v60_v32 = vpop.permute.xlu0 %59  ;;  %v62_v33 = vpop.permute.xlu1 %61 }
  0x85   :  { %v100_v34 = vsel %vm91_vm0, %v19_v8, %v60_v32  ;;  %v101_v35 = vsel %vm91_vm0, %v20_v9, %v62_v33 }
  0x86   :  { %138 = vrot.lane.b32.xlu1 %v99_v31, %s4181_s15  ;;  %140 = vrot.lane.b32.xlu0 %v100_v34, %s4181_s15 }
  0x88   :  { %v64_v36 = vpop.permute.xlu0 %63  ;;  %v66_v37 = vpop.permute.xlu1 %65 }
  0x89   :  { %v102_v38 = vsel %vm91_vm0, %v21_v10, %v64_v36  ;;  %v103_v39 = vsel %vm91_vm0, %v22_v11, %v66_v37 }
  0x8a   :  { %142 = vrot.lane.b32.xlu1 %v101_v35, %s4181_s15  ;;  %144 = vrot.lane.b32.xlu0 %v102_v38, %s4181_s15 }
  0x8c   :  { %v68_v40 = vpop.permute.xlu0 %67  ;;  %v70_v41 = vpop.permute.xlu1 %69 }
  0x8d   :  { %v104_v42 = vsel %vm91_vm0, %v23_v12, %v68_v40  ;;  %v105_v43 = vsel %vm91_vm0, %v24_v13, %v70_v41 }
  0x8e   :  { %146 = vrot.lane.b32.xlu1 %v103_v39, %s4181_s15  ;;  %148 = vrot.lane.b32.xlu0 %v104_v42, %s4181_s15 }
  0x90   :  { %v72_v44 = vpop.permute.xlu0 %71  ;;  %v74_v45 = vpop.permute.xlu1 %73 }
  0x91   :  { %v106_v46 = vsel %vm91_vm0, %v25_v14, %v72_v44  ;;  %v107_v47 = vsel %vm91_vm0, %v26_v15, %v74_v45 }
  0x92   :  { %150 = vrot.lane.b32.xlu1 %v105_v43, %s4181_s15  ;;  %152 = vrot.lane.b32.xlu0 %v106_v46, %s4181_s15 }
  0x96   :  { %154 = vrot.lane.b32.xlu1 %v107_v47, %s4181_s15 }
  0xe8   :  { %v125_v48 = vpop.permute.xlu0 %124 }
  0xe9   :  { %v173_v49 = vsel %vm172_vm1, %v92_v18, %v125_v48 }
  0xea   :  { %269 = vrot.lane.b32.xlu0 %v173_v49, %s4182_s16 }
  0xec   :  { %v127_v50 = vpop.permute.xlu1 %126  ;;  %v129_v51 = vpop.permute.xlu0 %128 }
  0xed   :  { %v174_v52 = vsel %vm172_vm1, %v93_v22, %v127_v50  ;;  %v4327_v53 = vsel %vm172_vm1, %v94_v19, %v129_v51 }
  0xee   :  { %271 = vrot.lane.b32.xlu1 %v174_v52, %s4182_s16  ;;  %273 = vrot.lane.b32.xlu0 %v4327_v53, %s4182_s16 }
  0xf0   :  { %v131_v54 = vpop.permute.xlu1 %130  ;;  %v133_v55 = vpop.permute.xlu0 %132 }
  0xf1   :  { %v4333_v56 = vsel %vm172_vm1, %v95_v23, %v131_v54  ;;  %v4336_v57 = vsel %vm172_vm1, %v96_v26, %v133_v55 }
  0xf2   :  { %275 = vrot.lane.b32.xlu1 %v4333_v56, %s4182_s16  ;;  %277 = vrot.lane.b32.xlu0 %v4336_v57, %s4182_s16 }
  0xf4   :  { %v135_v58 = vpop.permute.xlu1 %134  ;;  %v137_v59 = vpop.permute.xlu0 %136 }
  0xf5   :  { %v4343_v60 = vsel %vm172_vm1, %v97_v27, %v135_v58  ;;  %v4346_v61 = vsel %vm172_vm1, %v98_v30, %v137_v59 }
  0xf6   :  { %279 = vrot.lane.b32.xlu1 %v4343_v60, %s4182_s16  ;;  %281 = vrot.lane.b32.xlu0 %v4346_v61, %s4182_s16 }
  0xf8   :  { %v139_v62 = vpop.permute.xlu1 %138  ;;  %v141_v63 = vpop.permute.xlu0 %140 }
  0xf9   :  { %v4353_v5 = vsel %vm172_vm1, %v99_v31, %v139_v62  ;;  %v4356_v6 = vsel %vm172_vm1, %v100_v34, %v141_v63 }
  0xfa   :  { %283 = vrot.lane.b32.xlu1 %v4353_v5, %s4182_s16  ;;  %285 = vrot.lane.b32.xlu0 %v4356_v6, %s4182_s16 }
  0xfc   :  { %v143_v7 = vpop.permute.xlu1 %142  ;;  %v145_v8 = vpop.permute.xlu0 %144 }
  0xfd   :  { %v4363_v9 = vsel %vm172_vm1, %v101_v35, %v143_v7  ;;  %v4366_v10 = vsel %vm172_vm1, %v102_v38, %v145_v8 }
  0xfe   :  { %287 = vrot.lane.b32.xlu1 %v4363_v9, %s4182_s16  ;;  %289 = vrot.lane.b32.xlu0 %v4366_v10, %s4182_s16 }
 0x100   :  { %v147_v11 = vpop.permute.xlu1 %146  ;;  %v149_v12 = vpop.permute.xlu0 %148 }
 0x101   :  { %v4373_v13 = vsel %vm172_vm1, %v103_v39, %v147_v11  ;;  %v4376_v14 = vsel %vm172_vm1, %v104_v42, %v149_v12 }
 0x102   :  { %291 = vrot.lane.b32.xlu1 %v4373_v13, %s4182_s16  ;;  %293 = vrot.lane.b32.xlu0 %v4376_v14, %s4182_s16 }
 0x104   :  { %v151_v15 = vpop.permute.xlu1 %150  ;;  %v153_v16 = vpop.permute.xlu0 %152 }
 0x105   :  { %v4383_v17 = vsel %vm172_vm1, %v105_v43, %v151_v15  ;;  %v4386_v18 = vsel %vm172_vm1, %v106_v46, %v153_v16 }
 0x106   :  { %295 = vrot.lane.b32.xlu1 %v4383_v17, %s4182_s16  ;;  %297 = vrot.lane.b32.xlu0 %v4386_v18, %s4182_s16 }
 0x108   :  { %v155_v19 = vpop.permute.xlu1 %154 }
 0x109   :  { %v4393_v20 = vsel %vm172_vm1, %v107_v47, %v155_v19 }
 0x10a   :  { %299 = vrot.lane.b32.xlu1 %v4393_v20, %s4182_s16  ;;  %205 = vrot.lane.b32.xlu0 %v173_v49, %s4180_s13 }
 0x10e   :  { %207 = vrot.lane.b32.xlu1 %v174_v52, %s4180_s13 }
 0x15c   :  { %v270_v21 = vpop.permute.xlu0 %269 }
 0x15d   :  { %v4400_v22 = vsel %vm317_vm2, %v173_v49, %v270_v21 }
 0x15e   :  { %350 = vrot.lane.b32.xlu0 %v4400_v22, %s4183_s17 }
 0x160   :  { %v272_v23 = vpop.permute.xlu1 %271  ;;  %v274_v24 = vpop.permute.xlu0 %273 }
 0x161   :  { %v4405_v25 = vsel %vm317_vm2, %v174_v52, %v272_v23  ;;  %v4409_v26 = vsel %vm317_vm2, %v4327_v53, %v274_v24 }
 0x162   :  { %352 = vrot.lane.b32.xlu1 %v4405_v25, %s4183_s17  ;;  %354 = vrot.lane.b32.xlu0 %v4409_v26, %s4183_s17 }
 0x164   :  { %v276_v27 = vpop.permute.xlu1 %275  ;;  %v278_v28 = vpop.permute.xlu0 %277 }
 0x165   :  { %v4417_v29 = vsel %vm317_vm2, %v4333_v56, %v276_v27  ;;  %v4421_v30 = vsel %vm317_vm2, %v4336_v57, %v278_v28 }
 0x166   :  { %356 = vrot.lane.b32.xlu1 %v4417_v29, %s4183_s17  ;;  %358 = vrot.lane.b32.xlu0 %v4421_v30, %s4183_s17 }
 0x168   :  { %v280_v31 = vpop.permute.xlu1 %279  ;;  %v282_v32 = vpop.permute.xlu0 %281 }
 0x169   :  { %v4429_v33 = vsel %vm317_vm2, %v4343_v60, %v280_v31  ;;  %v4433_v34 = vsel %vm317_vm2, %v4346_v61, %v282_v32 }
 0x16a   :  { %360 = vrot.lane.b32.xlu1 %v4429_v33, %s4183_s17  ;;  %362 = vrot.lane.b32.xlu0 %v4433_v34, %s4183_s17 }
 0x16c   :  { %v284_v35 = vpop.permute.xlu1 %283  ;;  %v286_v36 = vpop.permute.xlu0 %285 }
 0x16d   :  { %v4441_v37 = vsel %vm317_vm2, %v4353_v5, %v284_v35  ;;  %v4445_v38 = vsel %vm317_vm2, %v4356_v6, %v286_v36 }
 0x16e   :  { %364 = vrot.lane.b32.xlu1 %v4441_v37, %s4183_s17  ;;  %366 = vrot.lane.b32.xlu0 %v4445_v38, %s4183_s17 }
 0x170   :  { %v288_v39 = vpop.permute.xlu1 %287  ;;  %v290_v40 = vpop.permute.xlu0 %289 }
 0x171   :  { %v4453_v41 = vsel %vm317_vm2, %v4363_v9, %v288_v39  ;;  %v4457_v42 = vsel %vm317_vm2, %v4366_v10, %v290_v40 }
 0x172   :  { %368 = vrot.lane.b32.xlu1 %v4453_v41, %s4183_s17  ;;  %370 = vrot.lane.b32.xlu0 %v4457_v42, %s4183_s17 }
 0x174   :  { %v292_v43 = vpop.permute.xlu1 %291  ;;  %v294_v44 = vpop.permute.xlu0 %293 }
 0x175   :  { %v4465_v45 = vsel %vm317_vm2, %v4373_v13, %v292_v43  ;;  %v4469_v46 = vsel %vm317_vm2, %v4376_v14, %v294_v44 }
 0x176   :  { %372 = vrot.lane.b32.xlu1 %v4465_v45, %s4183_s17  ;;  %374 = vrot.lane.b32.xlu0 %v4469_v46, %s4183_s17 }
 0x178   :  { %v296_v47 = vpop.permute.xlu1 %295  ;;  %v298_v48 = vpop.permute.xlu0 %297 }
 0x179   :  { %v4477_v49 = vsel %vm317_vm2, %v4383_v17, %v296_v47  ;;  %v4481_v50 = vsel %vm317_vm2, %v4386_v18, %v298_v48 }
 0x17a   :  { %376 = vrot.lane.b32.xlu1 %v4477_v49, %s4183_s17  ;;  %378 = vrot.lane.b32.xlu0 %v4481_v50, %s4183_s17 }
 0x17c   :  { %v300_v51 = vpop.permute.xlu1 %299 }
 0x17d   :  { %v4489_v52 = vsel %vm317_vm2, %v4393_v20, %v300_v51 }
 0x17e   :  { %380 = vrot.lane.b32.xlu1 %v4489_v52, %s4183_s17  ;;  %209 = vrot.lane.b32.xlu0 %v4327_v53, %s4180_s13  ;;  %v4521_v53 = vpop.permute.xlu0 %205 }
 0x180   :  { %v4523_v54 = vpop.permute.xlu1 %207 }
 0x181   :  { %v254_v47 = vsel %vm91_vm0, %v4224_v2, %v4523_v54 }
 0x182   :  { %211 = vrot.lane.b32.xlu1 %v4333_v56, %s4180_s13  ;;  %213 = vrot.lane.b32.xlu0 %v4336_v57, %s4180_s13 }
 0x186   :  { %215 = vrot.lane.b32.xlu1 %v4343_v60, %s4180_s13  ;;  %217 = vrot.lane.b32.xlu0 %v4346_v61, %s4180_s13 }
 0x18a   :  { %219 = vrot.lane.b32.xlu1 %v4353_v5, %s4180_s13  ;;  %221 = vrot.lane.b32.xlu0 %v4356_v6, %s4180_s13 }
 0x18e   :  { %223 = vrot.lane.b32.xlu1 %v4363_v9, %s4180_s13  ;;  %225 = vrot.lane.b32.xlu0 %v4366_v10, %s4180_s13 }
 0x192   :  { %227 = vrot.lane.b32.xlu1 %v4373_v13, %s4180_s13  ;;  %229 = vrot.lane.b32.xlu0 %v4376_v14, %s4180_s13 }
 0x196   :  { %231 = vrot.lane.b32.xlu1 %v4383_v17, %s4180_s13  ;;  %233 = vrot.lane.b32.xlu0 %v4386_v18, %s4180_s13 }
 0x19a   :  { %235 = vrot.lane.b32.xlu1 %v4393_v20, %s4180_s13 }
 0x1d0   :  { %v351_v55 = vpop.permute.xlu0 %350 }
 0x1d1   :  { %v399_v56 = vsel %vm398_vm3, %v4400_v22, %v351_v55 }
 0x1d2   :  { %431 = vrot.lane.b32.xlu0 %v399_v56, %s4184_s18 }
 0x1d4   :  { %v353_v57 = vpop.permute.xlu1 %352  ;;  %v355_v58 = vpop.permute.xlu0 %354 }
 0x1d5   :  { %v400_v59 = vsel %vm398_vm3, %v4405_v25, %v353_v57  ;;  %v401_v60 = vsel %vm398_vm3, %v4409_v26, %v355_v58 }
 0x1d6   :  { %433 = vrot.lane.b32.xlu1 %v400_v59, %s4184_s18  ;;  %435 = vrot.lane.b32.xlu0 %v401_v60, %s4184_s18  ;;  %v3832_v59 = vlaneseq }
 0x1d8   :  { %v357_v61 = vpop.permute.xlu1 %356  ;;  %v359_v62 = vpop.permute.xlu0 %358 }
 0x1d9   :  { %v402_v63 = vsel %vm398_vm3, %v4417_v29, %v357_v61  ;;  %v403_v5 = vsel %vm398_vm3, %v4421_v30, %v359_v62 }
 0x1da   :  { %437 = vrot.lane.b32.xlu1 %v402_v63, %s4184_s18  ;;  %439 = vrot.lane.b32.xlu0 %v403_v5, %s4184_s18 }
 0x1dc   :  { %v361_v6 = vpop.permute.xlu1 %360  ;;  %v363_v7 = vpop.permute.xlu0 %362 }
 0x1dd   :  { %v404_v8 = vsel %vm398_vm3, %v4429_v33, %v361_v6  ;;  %v405_v9 = vsel %vm398_vm3, %v4433_v34, %v363_v7 }
 0x1de   :  { %441 = vrot.lane.b32.xlu1 %v404_v8, %s4184_s18  ;;  %443 = vrot.lane.b32.xlu0 %v405_v9, %s4184_s18 }
 0x1e0   :  { %v365_v10 = vpop.permute.xlu1 %364  ;;  %v367_v11 = vpop.permute.xlu0 %366 }
 0x1e1   :  { %v406_v12 = vsel %vm398_vm3, %v4441_v37, %v365_v10  ;;  %v407_v13 = vsel %vm398_vm3, %v4445_v38, %v367_v11  ;;  %v4642_v11 = vshrl.u32 %v3832_v59, 7 }
 0x1e2   :  { %445 = vrot.lane.b32.xlu1 %v406_v12, %s4184_s18  ;;  %447 = vrot.lane.b32.xlu0 %v407_v13, %s4184_s18 }
 0x1e4   :  { %v369_v14 = vpop.permute.xlu1 %368  ;;  %v371_v15 = vpop.permute.xlu0 %370 }
 0x1e5   :  { %v408_v16 = vsel %vm398_vm3, %v4453_v41, %v369_v14  ;;  %v409_v17 = vsel %vm398_vm3, %v4457_v42, %v371_v15  ;;  %v4600_v41 = vld [vmem:[%s6418_s0] ss:$0 sm:$0xff]  ;;  %v253_v42 = vsel %vm91_vm0, %v4210_v0, %v4521_v53 }
 0x1e6   :  { %449 = vrot.lane.b32.xlu1 %v408_v16, %s4184_s18  ;;  %451 = vrot.lane.b32.xlu0 %v409_v17, %s4184_s18  ;;  %v4185_v16 = vmov 683565275  }
 0x1e8   :  { %v373_v18 = vpop.permute.xlu1 %372  ;;  %v375_v19 = vpop.permute.xlu0 %374 }
 0x1e9   :  { %v410_v20 = vsel %vm398_vm3, %v4465_v45, %v373_v18  ;;  %v411_v21 = vsel %vm398_vm3, %v4469_v46, %v375_v19  ;;  %v6422_v18 = vmov 2475754826  }
 0x1ea   :  { %453 = vrot.lane.b32.xlu1 %v410_v20, %s4184_s18  ;;  %455 = vrot.lane.b32.xlu0 %v411_v21, %s4184_s18  ;;  %v4187_v21 = vmov 2131351028  }
 0x1ec   :  { %v377_v22 = vpop.permute.xlu1 %376  ;;  %v379_v23 = vpop.permute.xlu0 %378 }
 0x1ed   :  { %v412_v24 = vsel %vm398_vm3, %v4477_v49, %v377_v22  ;;  %v413_v25 = vsel %vm398_vm3, %v4481_v50, %v379_v23  ;;  %v4188_v23 = vmov 2102212464  }
 0x1ee   :  { %457 = vrot.lane.b32.xlu1 %v412_v24, %s4184_s18  ;;  %459 = vrot.lane.b32.xlu0 %v413_v25, %s4184_s18  ;;  %v4189_v25 = vmov 920167782  }
 0x1f0   :  { %v381_v26 = vpop.permute.xlu1 %380  ;;  %v210_v28 = vpop.permute.xlu0 %209 }
 0x1f1   :  { %v414_v27 = vsel %vm398_vm3, %v4489_v52, %v381_v26  ;;  %v255_v48 = vsel %vm91_vm0, %v4215_v1, %v210_v28 }
 0x1f2   :  { %461 = vrot.lane.b32.xlu1 %v414_v27, %s4184_s18 }
 0x1f4   :  { %v4573_v29 = vpop.permute.xlu1 %211  ;;  %v4575_v30 = vpop.permute.xlu0 %213 }
 0x1f8   :  { %v4577_v31 = vpop.permute.xlu1 %215  ;;  %v4579_v32 = vpop.permute.xlu0 %217 }
 0x1fc   :  { %v4581_v33 = vpop.permute.xlu1 %219  ;;  %v4583_v34 = vpop.permute.xlu0 %221 }
 0x200   :  { %v4585_v35 = vpop.permute.xlu1 %223  ;;  %v4587_v36 = vpop.permute.xlu0 %225 }
 0x204   :  { %v4589_v37 = vpop.permute.xlu1 %227  ;;  %v4591_v38 = vpop.permute.xlu0 %229 }
 0x208   :  { %v4593_v39 = vpop.permute.xlu1 %231  ;;  %v4595_v40 = vpop.permute.xlu0 %233 }
 0x20c   :  { %v4605_v43 = vpop.permute.xlu1 %235 }
 0x244   :  { %v432_v44 = vpop.permute.xlu0 %431 }
 0x245   :  { %v4608_v45 = vsel %vm6426_vm4, %v253_v42, %v432_v44 }
 0x246   :  { %v4612_v46 = vmul.f32 %v4600_v41, %v4608_v45 }
 0x248   :  { %v519_v49 = vand.u32 2147483647, %v4612_v46  ;;  %v522_v0 = vand.u32 2139095040, %v4612_v46  ;;  %v434_v50 = vpop.permute.xlu1 %433  ;;  %v436_v51 = vpop.permute.xlu0 %435 }
 0x249   :  { %v4622_v52 = vsel %vm6426_vm4, %v254_v47, %v434_v50  ;;  %v4625_v53 = vsel %vm6426_vm4, %v255_v48, %v436_v51  ;;  %v6424_v48 = vmov 1326507024  }
 0x24a   :  { %v523_v55 = vshrl.u32 %v522_v0, 23  ;;  %v4629_v56 = vmul.f32 %v4600_v41, %v4622_v52  ;;  %v526_v1 = vand.u32 8388607, %v519_v49  ;;  %v4635_v2 = vmul.f32 %v4600_v41, %v4625_v53 }
 0x24c   :  { %v3899_v54 = vadd.s32 4294967169, %v523_v55  ;;  %v622_v57 = vand.u32 2147483647, %v4629_v56  ;;  %v625_v58 = vand.u32 2139095040, %v4629_v56  ;;  %v527_v61 = vor.u32 8388608, %v526_v1 }
 0x24d   :  { %v728_v5 = vand.u32 2139095040, %v4635_v2 }
 0x24e   :  { %v529_v60 = vadd.s32 1, %v3899_v54  ;;  %v626_v62 = vshrl.u32 %v625_v58, 23  ;;  %v629_v63 = vand.u32 8388607, %v622_v57  ;;  %v4644_v12 = vshll.u32 %v527_v61, 8 }
 0x24f   :  { %v729_v8 = vshrl.u32 %v728_v5, 23 }
 0x250   :  { %vm530_vm5 = vcmp.gt.s32.totalorder %v529_v60, 0  ;;  %v3903_v7 = vadd.s32 4294967169, %v626_v62  ;;  %v630_v13 = vor.u32 8388608, %v629_v63 }
 0x251   :  { %v531_v6 = vsel %vm530_vm5, %v529_v60, 0  ;;  %v3907_v20 = vadd.s32 4294967169, %v729_v8 }
 0x252   :  { %v532_v9 = vshrl.u32 %v531_v6, 5  ;;  %v533_v10 = vand.u32 31, %v531_v6  ;;  %v632_v14 = vadd.s32 1, %v3903_v7 }
 0x254   :  { %v534_v15 = vsub.s32 32, %v533_v10  ;;  %v536_v17 = vshll.u32 %v4185_v16, %v533_v10  ;;  %v539_v19 = vshll.u32 %v6422_v18, %v533_v10  ;;  %v542_v22 = vshll.u32 %v4187_v21, %v533_v10 }
 0x255   :  { %v545_v24 = vshll.u32 %v4188_v23, %v533_v10  ;;  %v548_v26 = vshll.u32 %v4189_v25, %v533_v10  ;;  %vm551_vm6 = vcmp.lt.s32.totalorder %v532_v9, 1  ;;  %vm552_vm7 = vcmp.lt.s32.totalorder %v532_v9, 2 }
 0x256   :  { %v537_v27 = vshrl.u32 %v6422_v18, %v534_v15  ;;  %v540_v28 = vshrl.u32 %v4187_v21, %v534_v15  ;;  %v543_v42 = vshrl.u32 %v4188_v23, %v534_v15  ;;  %v535_v44 = vshrl.u32 %v4185_v16, %v534_v15 }
 0x257   :  { %v546_v47 = vshrl.u32 %v4189_v25, %v534_v15  ;;  %v549_v0 = vshrl.u32 %v6424_v48, %v534_v15  ;;  %vm553_vm8 = vcmp.lt.s32.totalorder %v532_v9, 3  ;;  %vm633_vm9 = vcmp.gt.s32.totalorder %v632_v14, 0 }
 0x258   :  { %v538_v50 = vor.u32 %v537_v27, %v536_v17  ;;  %v541_v51 = vor.u32 %v540_v28, %v539_v19  ;;  %v544_v55 = vor.u32 %v543_v42, %v542_v22  ;;  %vm554_vm10 = vcmp.lt.s32.totalorder %v532_v9, 4 }
 0x259   :  { %v547_v1 = vor.u32 %v546_v47, %v545_v24  ;;  %v550_v54 = vor.u32 %v549_v0, %v548_v26  ;;  %v634_v58 = vsel %vm633_vm9, %v632_v14, 0  ;;  %v4668_v22 = vshll.u32 %v630_v13, 8 }
 0x25a   :  { %v555_v59 = vsel %vm551_vm6, %v535_v44, %v538_v50  ;;  %v556_v60 = vsel %vm554_vm10, %v544_v55, 2102212464  ;;  %v559_v61 = vsel %vm551_vm6, %v538_v50, %v541_v51  ;;  %v563_v62 = vsel %vm551_vm6, %v541_v51, %v544_v55 }
 0x25b   :  { %v557_v63 = vsel %vm553_vm8, %v541_v51, %v556_v60  ;;  %v560_v5 = vsel %vm554_vm10, %v547_v1, 920167782  ;;  %v564_v6 = vsel %vm554_vm10, %v550_v54, 1326507024  ;;  %v4661_v7 = vshrl.u32 %v634_v58, 5 }
 0x25c   :  { %v558_v8 = vsel %vm552_vm7, %v555_v59, %v557_v63  ;;  %v561_v10 = vsel %vm553_vm8, %v544_v55, %v560_v5  ;;  %v565_v15 = vsel %vm553_vm8, %v547_v1, %v564_v6  ;;  %v636_v14 = vand.u32 31, %v634_v58 }
 0x25d   :  { %v562_v17 = vsel %vm552_vm7, %v559_v61, %v561_v10  ;;  %v566_v19 = vsel %vm552_vm7, %v563_v62, %v565_v15  ;;  %v6420_v24 = vand.u32 2147483647, %v4635_v2  ;;  %v574_v44 = vmul.u32 %v4644_v12, %v558_v8 }
 0x25e   :  { %v4672_v26 = vmul.u32.u64.low %v4644_v12, %v566_v19  ;;  %v4673_v27 = vmul.u32.u64.high %v4644_v12, %v566_v19, %v4672_v26  ;;  %v4676_v28 = vmul.u32.u64.low %v4644_v12, %v562_v17  ;;  %v4677_v42 = vmul.u32.u64.high %v4644_v12, %v562_v17, %v4676_v28 }
 0x25f   :  { %v637_v47 = vsub.s32 32, %v636_v14  ;;  %vm654_vm11 = vcmp.lt.s32.totalorder %v4661_v7, 1  ;;  %v735_v9 = vadd.s32 1, %v3907_v20  ;;  %v639_v13 = vshll.u32 %v4185_v16, %v636_v14  ;;  %v497_v26 = vld [vmem:[%s6418_s0 + $0x1] sm:$0x1] }
 0x260   :  { %v642_v0 = vshll.u32 %v6422_v18, %v636_v14  ;;  %v645_v50 = vshll.u32 %v4187_v21, %v636_v14  ;;  %v648_v51 = vshll.u32 %v4188_v23, %v636_v14  ;;  %v651_v12 = vshll.u32 %v4189_v25, %v636_v14 }
 0x261   :  { %v640_v55 = vshrl.u32 %v6422_v18, %v637_v47  ;;  %v643_v1 = vshrl.u32 %v4187_v21, %v637_v47  ;;  %v646_v54 = vshrl.u32 %v4188_v23, %v637_v47  ;;  %vm576_vm12 = vc.u32 %v4673_v27, %v4676_v28 }
 0x262   :  { %v577_v20 = vadd.s32 1, %v4677_v42  ;;  %v649_v58 = vshrl.u32 %v4189_v25, %v637_v47  ;;  %vm655_vm13 = vcmp.lt.s32.totalorder %v4661_v7, 2  ;;  %v652_v62 = vshrl.u32 %v6424_v48, %v637_v47 }
 0x263   :  { %v641_v59 = vor.u32 %v640_v55, %v639_v13  ;;  %v644_v60 = vor.u32 %v643_v1, %v642_v0  ;;  %v647_v61 = vor.u32 %v646_v54, %v645_v50  ;;  %v638_v5 = vshrl.u32 %v4185_v16, %v637_v47 }
 0x264   :  { %v578_v63 = vsel %vm576_vm12, %v577_v20, %v4677_v42  ;;  %v650_v6 = vor.u32 %v649_v58, %v648_v51  ;;  %vm657_vm14 = vcmp.lt.s32.totalorder %v4661_v7, 4  ;;  %v653_v10 = vor.u32 %v652_v62, %v651_v12 }
 0x265   :  { %v579_v8 = vadd.s32 %v578_v63, %v574_v44  ;;  %v659_v15 = vsel %vm657_vm14, %v647_v61, 2102212464  ;;  %vm736_vm15 = vcmp.gt.s32.totalorder %v735_v9, 0  ;;  %vm656_vm1 = vcmp.lt.s32.totalorder %v4661_v7, 3 }
 0x266   :  { %v662_v14 = vsel %vm654_vm11, %v641_v59, %v644_v60  ;;  %v663_v17 = vsel %vm657_vm14, %v650_v6, 920167782  ;;  %v666_v19 = vsel %vm654_vm11, %v644_v60, %v647_v61  ;;  %v658_v44 = vsel %vm654_vm11, %v638_v5, %v641_v59 }
 0x267   :  { %v580_v42 = vadd.s32 536870912, %v579_v8  ;;  %v664_v47 = vsel %vm656_vm1, %v647_v61, %v663_v17  ;;  %v667_v13 = vsel %vm657_vm14, %v653_v10, 1326507024  ;;  %v660_v0 = vsel %vm656_vm1, %v644_v60, %v659_v15  ;;  %v438_v61 = vpop.permute.xlu1 %437 }
 0x268   :  { %v665_v50 = vsel %vm655_vm13, %v662_v14, %v664_v47  ;;  %v668_v51 = vsel %vm656_vm1, %v650_v6, %v667_v13  ;;  %v737_v55 = vsel %vm736_vm15, %v735_v9, 0  ;;  %vm498_vm2 = vcmp.gt.f32.partialorder %v497_v26, 0.5  ;;  %v3853_v9 = vld [vmem:[%s6418_s0 + $0x2] sm:$0x1] }
 0x269   :  { %v581_v1 = vshrl.u32 %v580_v42, 30  ;;  %v669_v54 = vsel %vm655_vm13, %v666_v19, %v668_v51  ;;  %v4714_v12 = vmul.u32.u64.low %v4668_v22, %v665_v50  ;;  %v4715_v20 = vmul.u32.u64.high %v4668_v22, %v665_v50, %v4714_v12 }
 0x26a   :  { %v4719_v58 = vmul.u32.u64.low %v4668_v22, %v669_v54  ;;  %v4720_v59 = vmul.u32.u64.high %v4668_v22, %v669_v54, %v4719_v58  ;;  %v732_v60 = vand.u32 8388607, %v6420_v24  ;;  %v661_v63 = vsel %vm655_vm13, %v658_v44, %v660_v0  ;;  %v440_v44 = vpop.permute.xlu0 %439 }
 0x26b   :  { %v582_v62 = vshll.u32 %v581_v1, 30  ;;  %v739_v5 = vand.u32 31, %v737_v55  ;;  %v256_v6 = vsel %vm91_vm0, %v4229_v3, %v4573_v29  ;;  %v6421_v10 = vsub.s32 0, %v4642_v11 }
 0x26c   :  { %v4191_v14 = vmov 0   ;;  %v680_v19 = vadd.s32 1, %v4715_v20  ;;  %v4737_v26 = vsel %vm6426_vm4, %v256_v6, %v438_v61  ;;  %vm3854_vm3 = vcmp.gt.f32.partialorder %v3853_v9, 0.5 }
 0x26d   :  { %v4733_v15 = vsub.s32 %v579_v8, %v582_v62  ;;  %v3831_v17 = vsel %vm498_vm2, 1, %v4191_v14  ;;  %v677_v7 = vmul.u32 %v4668_v22, %v661_v63  ;;  %vm679_vm5 = vc.u32 %v4720_v59, %v4714_v12 }
 0x26e   :  { %v733_v42 = vor.u32 8388608, %v732_v60  ;;  %v681_v29 = vsel %vm679_vm5, %v680_v19, %v4715_v20  ;;  %v740_v8 = vsub.s32 32, %v739_v5  ;;  %v4746_v13 = vmul.f32 %v4600_v41, %v4737_v26 }
 0x26f   :  { %v585_v3 = vsub.s32 0, %v4733_v15  ;;  %v682_v47 = vadd.s32 %v681_v29, %v677_v7  ;;  %v257_v0 = vsel %vm91_vm0, %v4238_v4, %v4575_v30  ;;  %v4754_v50 = vrot.slane %v3831_v17, %v6421_v10 }
 0x270   :  { %v4756_v51 = vsel %vm3854_vm3, 1, %v4191_v14  ;;  %vm521_vm6 = vcmp.lt.s32.totalorder %v4612_v46, 0  ;;  %v4759_v20 = vshll.u32 %v733_v42, 8  ;;  %v4762_v58 = vsel %vm6426_vm4, %v257_v0, %v440_v44 }
 0x271   :  { %v3900_v22 = vmin.u32 %v585_v3, %v4733_v15  ;;  %v683_v54 = vadd.s32 536870912, %v682_v47  ;;  %v575_v60 = vadd.s32 %v4676_v28, %v4673_v27  ;;  %v605_v30 = vsub.s32 4, %v581_v1 }
 0x272   :  { %v743_v61 = vshrl.u32 %v6422_v18, %v740_v8  ;;  %v738_v9 = vshrl.u32 %v737_v55, 5  ;;  %v749_v63 = vshrl.u32 %v4188_v23, %v740_v8  ;;  %v742_v17 = vshll.u32 %v4185_v16, %v739_v5 }
 0x273   :  { %v587_v4 = vclz %v3900_v22  ;;  %v4767_v62 = vshrl.u32 %v683_v54, 30  ;;  %v746_v19 = vshrl.u32 %v4187_v21, %v740_v8  ;;  %v752_v7 = vshrl.u32 %v4189_v25, %v740_v8 }
 0x274   :  { %v745_v28 = vshll.u32 %v6422_v18, %v739_v5  ;;  %v748_v42 = vshll.u32 %v4187_v21, %v739_v5  ;;  %v755_v3 = vshrl.u32 %v6424_v48, %v740_v8  ;;  %v606_v55 = vsel %vm521_vm6, %v605_v30, %v581_v1 }
 0x275   :  { %v3901_v14 = vadd.s32 4294967294, %v587_v4  ;;  %v685_v27 = vshll.u32 %v4767_v62, 30  ;;  %v744_v29 = vor.u32 %v743_v61, %v742_v17  ;;  %v751_v44 = vshll.u32 %v4188_v23, %v739_v5 }
 0x276   :  { %v750_v54 = vor.u32 %v749_v63, %v748_v42  ;;  %v754_v4 = vshll.u32 %v4189_v25, %v739_v5  ;;  %v747_v18 = vor.u32 %v746_v19, %v745_v28  ;;  %vm4786_vm8 = vcmp.le.f32.partialorder %v519_v49, 0.7853982 }
 0x277   :  { %vm3902_vm7 = vcmp.lt.s32.totalorder %v3901_v14, 0  ;;  %v4781_v22 = vsub.s32 %v682_v47, %v685_v27  ;;  %v753_v6 = vor.u32 %v752_v7, %v751_v44  ;;  %v741_v30 = vshrl.u32 %v4185_v16, %v740_v8 }
 0x278   :  { %v590_v0 = vsel %vm3902_vm7, 0, %v3901_v14  ;;  %v756_v61 = vor.u32 %v755_v3, %v754_v4  ;;  %vm757_vm9 = vcmp.lt.s32.totalorder %v738_v9, 1  ;;  %vm624_vm10 = vcmp.lt.s32.totalorder %v4629_v56, 0 }
 0x279   :  { %v591_v24 = vsub.s32 32, %v590_v0  ;;  %v595_v10 = vsub.s32 4294967266, %v590_v0  ;;  %v688_v1 = vsub.s32 0, %v4781_v22  ;;  %v592_v47 = vshll.u32 %v4733_v15, %v590_v0 }
 0x27a   :  { %vm760_vm11 = vcmp.lt.s32.totalorder %v738_v9, 4  ;;  %v708_v49 = vsub.s32 4, %v4767_v62  ;;  %vm759_vm12 = vcmp.lt.s32.totalorder %v738_v9, 3  ;;  %v765_v27 = vsel %vm757_vm9, %v744_v29, %v747_v18 }
 0x27b   :  { %v593_v63 = vshrl.u32 %v575_v60, %v591_v24  ;;  %v596_v5 = vadd.s32 127, %v595_v10  ;;  %v3904_v14 = vmin.u32 %v688_v1, %v4781_v22  ;;  %v762_v17 = vsel %vm760_vm11, %v750_v54, 2102212464 }
 0x27c   :  { %v766_v8 = vsel %vm760_vm11, %v753_v6, 920167782  ;;  %v769_v24 = vsel %vm757_vm9, %v747_v18, %v750_v54  ;;  %v770_v10 = vsel %vm760_vm11, %v756_v61, 1326507024  ;;  %vm758_vm13 = vcmp.lt.s32.totalorder %v738_v9, 2 }
 0x27d   :  { %v594_v19 = vor.u32 %v593_v63, %v592_v47  ;;  %v597_v7 = vshll.u32 %v596_v5, 23  ;;  %v690_v28 = vclz %v3904_v14  ;;  %v767_v42 = vsel %vm759_vm12, %v750_v54, %v766_v8 }
 0x27e   :  { %v761_v60 = vsel %vm757_vm9, %v741_v30, %v744_v29  ;;  %v763_v3 = vsel %vm759_vm12, %v747_v18, %v762_v17  ;;  %vm4803_vm14 = vcmp.le.f32.partialorder %v622_v57, 0.7853982  ;;  %v768_v1 = vsel %vm758_vm13, %v765_v27, %v767_v42 }
 0x27f   :  { %v598_v15 = vor.u32 4788187, %v597_v7  ;;  %v601_v44 = vcvt.s32.f32 %v594_v19  ;;  %v3905_v4 = vadd.s32 4294967294, %v690_v28  ;;  %v771_v47 = vsel %vm759_vm12, %v753_v6, %v770_v10 }
 0x280   :  { %v772_v54 = vsel %vm758_vm13, %v769_v24, %v771_v47  ;;  %v4809_v61 = vmul.u32.u64.low %v4759_v20, %v768_v1  ;;  %v4810_v5 = vmul.u32.u64.high %v4759_v20, %v768_v1, %v4809_v61  ;;  %v764_v18 = vsel %vm758_vm13, %v761_v60, %v763_v3 }
 0x281   :  { %v599_v63 = vand.u32 2147483647, %v598_v15  ;;  %vm3906_vm15 = vcmp.lt.s32.totalorder %v3905_v4, 0  ;;  %v4814_v29 = vmul.u32.u64.low %v4759_v20, %v772_v54  ;;  %v4815_v30 = vmul.u32.u64.high %v4759_v20, %v772_v54, %v4814_v29 }
 0x282   :  { %v608_v14 = vsel %vm4786_vm8, 0, %v606_v55  ;;  %v693_v17 = vsel %vm3906_vm15, 0, %v3905_v4  ;;  %v831_v9 = vand.u32 2139095040, %v4746_v13  ;;  %v678_v6 = vadd.s32 %v4714_v12, %v4720_v59 }
 0x283   :  { %v602_v57 = vmul.f32 %v601_v44, %v599_v63  ;;  %v694_v19 = vsub.s32 32, %v693_v17  ;;  %v698_v7 = vsub.s32 4294967266, %v693_v17  ;;  %v709_v27 = vsel %vm624_vm10, %v708_v49, %v4767_v62 }
 0x284   :  { %v780_v28 = vmul.u32 %v4759_v20, %v764_v18  ;;  %v783_v42 = vadd.s32 1, %v4810_v5  ;;  %v832_v24 = vshrl.u32 %v831_v9, 23  ;;  %v695_v55 = vshll.u32 %v4781_v22, %v693_v17 }
 0x285   :  { %v603_v8 = vxor.u32 2147483648, %v602_v57  ;;  %v696_v10 = vshrl.u32 %v678_v6, %v694_v19  ;;  %v699_v15 = vadd.s32 127, %v698_v7  ;;  %vm782_vm1 = vc.u32 %v4815_v30, %v4809_v61 }
 0x286   :  { %v2260_v59 = vadd.s32 3, %v608_v14  ;;  %v784_v60 = vsel %vm782_vm1, %v783_v42, %v4810_v5  ;;  %v3911_v62 = vadd.s32 4294967169, %v832_v24  ;;  %v711_v22 = vsel %vm4803_vm14, 0, %v709_v27 }
 0x287   :  { %v604_v12 = vsel %vm521_vm6, %v603_v8, %v602_v57  ;;  %v697_v49 = vor.u32 %v696_v10, %v695_v55  ;;  %v700_v3 = vshll.u32 %v699_v15, 23  ;;  %v785_v44 = vadd.s32 %v784_v60, %v780_v28 }
 0x288   :  { %v607_v20 = vsel %vm4786_vm8, %v4612_v46, %v604_v12  ;;  %v6434_v4 = vand.u32 2147483647, %v4746_v13  ;;  %v838_v47 = vadd.s32 1, %v3911_v62  ;;  %v4842_v5 = vmul.f32 %v4600_v41, %v4762_v58 }
 0x289   :  { %4103 = vcosq.f32 %v607_v20  ;;  %v701_v63 = vor.u32 4788187, %v700_v3  ;;  %v786_v54 = vadd.s32 536870912, %v785_v44  ;;  %v612_v48 = vand.u32 3, %v608_v14 }
 0x28a   :  { %v835_v1 = vand.u32 8388607, %v6434_v4  ;;  %4105 = vsinq.f32 %v607_v20  ;;  %v2261_v18 = vand.u32 3, %v2260_v59  ;;  %v6435_v29 = vsub.s32 0, %v4642_v11 }
 0x28b   :  { %vm839_vm2 = vcmp.gt.s32.totalorder %v838_v47, 0  ;;  %v702_v17 = vand.u32 2147483647, %v701_v63  ;;  %v704_v9 = vcvt.s32.f32 %v697_v49  ;;  %v787_v6 = vshrl.u32 %v786_v54, 30 }
 0x28c   :  { %v4847_v57 = vrot.slane %v4756_v51, %v6435_v29  ;;  %v840_v19 = vsel %vm839_vm2, %v838_v47, 0  ;;  %v2364_v7 = vadd.s32 3, %v711_v22  ;;  %v836_v27 = vor.u32 8388608, %v835_v1 }
 0x28d   :  { %v4849_v8 = vand.u32 31, %v840_v19  ;;  %v705_v28 = vmul.f32 %v704_v9, %v702_v17  ;;  %vm727_vm3 = vcmp.lt.s32.totalorder %v4635_v2, 0  ;;  %v788_v42 = vshll.u32 %v787_v6, 30 }
 0x28e   :  { %v934_v14 = vand.u32 2139095040, %v4842_v5  ;;  %vm613_vm5 = vcmp.lt.s32.totalorder %v612_v48, 2  ;;  %vm614_vm6 = vcmp.eq.s32.totalorder %v612_v48, 0  ;;  %vm617_vm7 = vcmp.eq.s32.totalorder %v612_v48, 2 }
 0x28f   :  { %vm2262_vm8 = vcmp.lt.s32.totalorder %v2261_v18, 2  ;;  %vm2263_vm9 = vcmp.eq.s32.totalorder %v2261_v18, 0  ;;  %vm3836_vm11 = vcmp.eq.s32.totalorder %v4754_v50, 1  ;;  %vm611_vm12 = vweird.f32 %v4612_v46 }
 0x290   :  { %vm2266_vm13 = vcmp.eq.s32.totalorder %v2261_v18, 2  ;;  %vm3860_vm15 = vcmp.eq.s32.totalorder %v4847_v57, 1  ;;  %v706_v11 = vxor.u32 2147483648, %v705_v28  ;;  %v4856_v51 = vand.u32 3, %v711_v22 }
 0x291   :  { %v4858_v24 = vsub.s32 %v785_v44, %v788_v42  ;;  %vm6428_vm1 = vcmask 515072   ;;  %v4860_v55 = vand.u32 3, %v2364_v7  ;;  %v4864_v10 = vadd.s32 %v4809_v61, %v4815_v30 }
 0x292   :  { %v843_v15 = vsub.s32 32, %v4849_v8  ;;  %v4867_v12 = vshll.u32 %v836_v27, 8  ;;  %v707_v59 = vsel %vm624_vm10, %v706_v11, %v705_v28  ;;  %v4872_v62 = vshrl.u32 %v840_v19, 5 }
 0x293   :  { %v791_v60 = vsub.s32 0, %v4858_v24  ;;  %v4874_v20 = vshrl.u32 %v934_v14, 23  ;;  %v4104_v49 = vpop.eup %4103  ;;  %v710_v3 = vsel %vm4803_vm14, %v4629_v56, %v707_v59  ;;  %v811_v61 = vsub.s32 4, %v787_v6 }
 0x294   :  { %v845_v30 = vshll.u32 %v4185_v16, %v4849_v8  ;;  %v6436_v44 = vmov 2475754826   ;;  %v4106_v4 = vpop.eup %4105  ;;  %v618_v1 = vxor.u32 2147483648, %v4104_v49  ;;  %4107 = vcosq.f32 %v710_v3 }
 0x295   :  { %v848_v22 = vshll.u32 %v6436_v44, %v4849_v8  ;;  %v3908_v47 = vmin.u32 %v791_v60, %v4858_v24  ;;  %v851_v63 = vshll.u32 %v4187_v21, %v4849_v8  ;;  %v615_v54 = vxor.u32 2147483648, %v4106_v4 }
 0x296   :  { %4109 = vsinq.f32 %v710_v3  ;;  %v846_v0 = vshrl.u32 %v6436_v44, %v843_v15  ;;  %v849_v29 = vshrl.u32 %v4187_v21, %v843_v15  ;;  %v619_v17 = vsel %vm617_vm7, %v618_v1, %v4106_v4 }
 0x297   :  { %v2268_v9 = vsel %vm2266_vm13, %v618_v1, %v4106_v4  ;;  %v793_v19 = vclz %v3908_v47  ;;  %v852_v7 = vshrl.u32 %v4188_v23, %v843_v15  ;;  %v616_v27 = vsel %vm614_vm6, %v4104_v49, %v615_v54 }
 0x298   :  { %v2265_v28 = vsel %vm2263_vm9, %v4104_v49, %v615_v54  ;;  %v4895_v42 = vsel %vm727_vm3, %v811_v61, %v787_v6  ;;  %v855_v14 = vshrl.u32 %v4189_v25, %v843_v15  ;;  %v620_v11 = vsel %vm613_vm5, %v616_v27, %v619_v17 }
 0x299   :  { %v2269_v59 = vsel %vm2262_vm8, %v2265_v28, %v2268_v9  ;;  %vm720_vm10 = vcmp.eq.s32.totalorder %v4856_v51, 2  ;;  %vm2370_vm14 = vcmp.eq.s32.totalorder %v4860_v55, 2  ;;  %v3909_v60 = vadd.s32 4294967294, %v793_v19 }
 0x29a   :  { %v854_v3 = vshll.u32 %v4188_v23, %v4849_v8  ;;  %v621_v49 = vsel %vm611_vm12, nan, %v620_v11  ;;  %v2270_v6 = vsel %vm611_vm12, nan, %v2269_v59  ;;  %vm717_vm2 = vcmp.eq.s32.totalorder %v4856_v51, 0 }
 0x29b   :  { %vm2367_vm5 = vcmp.eq.s32.totalorder %v4860_v55, 0  ;;  %v847_v48 = vor.u32 %v846_v0, %v845_v30  ;;  %v850_v18 = vor.u32 %v849_v29, %v848_v22  ;;  %v3837_v61 = vsel %vm3836_vm11, %v621_v49, %v2270_v6 }
 0x29c   :  { %vm716_vm6 = vcmp.lt.s32.totalorder %v4856_v51, 2  ;;  %vm2366_vm7 = vcmp.lt.s32.totalorder %v4860_v55, 2  ;;  %vm3910_vm8 = vcmp.lt.s32.totalorder %v3909_v60, 0  ;;  %v853_v4 = vor.u32 %v852_v7, %v851_v63 }
 0x29d   :  { %v856_v1 = vor.u32 %v855_v14, %v854_v3  ;;  %v3861_v46 = vsel %vm3860_vm15, %v4608_v45, %v3837_v61  ;;  %vm714_vm9 = vweird.f32 %v4629_v56  ;;  %v796_v47 = vsel %vm3910_vm8, 0, %v3909_v60 }
 0x29e   :  { %v857_v30 = vshll.u32 %v4189_v25, %v4849_v8  ;;  %v6437_v22 = vmov 1326507024   ;;  %3878 = vst.msk [vmem:[%s6419_s2] sm:$0xff] %vm6428_vm1, %v3861_v46  ;;  %v797_v0 = vsub.s32 32, %v796_v47  ;;  %v801_v63 = vsub.s32 4294967266, %v796_v47  ;;  %v4108_v8 = vpop.eup %4107 }
 0x29f   :  { %v858_v54 = vshrl.u32 %v6437_v22, %v843_v15  ;;  %v844_v29 = vshrl.u32 %v4185_v16, %v843_v15  ;;  %vm860_vm12 = vcmp.lt.s32.totalorder %v4872_v62, 1  ;;  %v798_v45 = vshll.u32 %v4858_v24, %v796_v47 }
 0x2a0   :  { %vm861_vm13 = vcmp.lt.s32.totalorder %v4872_v62, 2  ;;  %vm862_vm8 = vcmp.lt.s32.totalorder %v4872_v62, 3  ;;  %v799_v9 = vshrl.u32 %v4864_v10, %v797_v0  ;;  %v802_v19 = vadd.s32 127, %v801_v63  ;;  %v4110_v27 = vpop.eup %4109 }
 0x2a1   :  { %v859_v17 = vor.u32 %v858_v54, %v857_v30  ;;  %vm863_vm4 = vcmp.lt.s32.totalorder %v4872_v62, 4  ;;  %v864_v7 = vsel %vm860_vm12, %v844_v29, %v847_v48  ;;  %v721_v15 = vxor.u32 2147483648, %v4108_v8 }
 0x2a2   :  { %v865_v28 = vsel %vm863_vm4, %v853_v4, 2102212464  ;;  %v868_v24 = vsel %vm860_vm12, %v847_v48, %v850_v18  ;;  %v869_v14 = vsel %vm863_vm4, %v856_v1, 920167782  ;;  %v718_v11 = vxor.u32 2147483648, %v4110_v27 }
 0x2a3   :  { %v800_v59 = vor.u32 %v799_v9, %v798_v45  ;;  %v803_v60 = vshll.u32 %v802_v19, 23  ;;  %v872_v3 = vsel %vm860_vm12, %v850_v18, %v853_v4  ;;  %v722_v10 = vsel %vm720_vm10, %v721_v15, %v4110_v27 }
 0x2a4   :  { %v2372_v49 = vsel %vm2370_vm14, %v721_v15, %v4110_v27  ;;  %v870_v6 = vsel %vm862_vm8, %v853_v4, %v869_v14  ;;  %v873_v61 = vsel %vm863_vm4, %v859_v17, 1326507024  ;;  %v719_v48 = vsel %vm717_vm2, %v4108_v8, %v718_v11 }
 0x2a5   :  { %v2369_v46 = vsel %vm2367_vm5, %v4108_v8, %v718_v11  ;;  %v804_v47 = vor.u32 4788187, %v803_v60  ;;  %v807_v30 = vcvt.s32.f32 %v800_v59  ;;  %v723_v54 = vsel %vm716_vm6, %v719_v48, %v722_v10  ;;  %v442_v59 = vpop.permute.xlu1 %441  ;;  %v4167_v60 = vld [vmem:[%s6417_s1 + $0x28] sm:$0xff] }
 0x2a6   :  { %v2373_v0 = vsel %vm2366_vm7, %v2369_v46, %v2372_v49  ;;  %v871_v63 = vsel %vm861_vm13, %v868_v24, %v870_v6  ;;  %v874_v4 = vsel %vm862_vm8, %v856_v1, %v873_v61  ;;  %v724_v29 = vsel %vm714_vm9, nan, %v723_v54 }
 0x2a7   :  { %v2374_v45 = vsel %vm714_vm9, nan, %v2373_v0  ;;  %v805_v17 = vand.u32 2147483647, %v804_v47  ;;  %v875_v51 = vsel %vm861_vm13, %v872_v3, %v874_v4  ;;  %v866_v8 = vsel %vm862_vm8, %v850_v18, %v865_v28  ;;  %v4169_v4 = vld [vmem:[%s6417_s1 + $0x38] sm:$0xff] }
 0x2a8   :  { %v3838_v55 = vsel %vm3836_vm11, %v724_v29, %v2374_v45  ;;  %v4967_v9 = vmul.u32.u64.low %v4867_v12, %v875_v51  ;;  %v4968_v19 = vmul.u32.u64.high %v4867_v12, %v875_v51, %v4967_v9  ;;  %v6438_v18 = vand.u32 2147483647, %v4635_v2 }
 0x2a9   :  { %v3862_v1 = vsel %vm3860_vm15, %v4622_v52, %v3838_v55  ;;  %v808_v56 = vmul.f32 %v807_v30, %v805_v17  ;;  %v4974_v27 = vmul.u32.u64.low %v4867_v12, %v871_v63  ;;  %v4975_v15 = vmul.u32.u64.high %v4867_v12, %v871_v63, %v4974_v27  ;;  %v4168_v30 = vld [vmem:[%s6417_s1 + $0x30] sm:$0xff] }
 0x2aa   :  { %3879 = vst.msk [vmem:[%s6419_s2 + $0x8] sm:$0xff] %vm6428_vm1, %v3862_v1  ;;  %vm726_vm4 = vcmp.le.f32.partialorder %v6438_v18, 0.7853982  ;;  %v3915_v28 = vadd.s32 4294967169, %v4874_v20  ;;  %v867_v52 = vsel %vm861_vm13, %v864_v7, %v866_v8  ;;  %v258_v3 = vsel %vm91_vm0, %v4167_v60, %v4577_v31 }
 0x2ab   :  { %v809_v24 = vxor.u32 2147483648, %v808_v56  ;;  %v814_v14 = vsel %vm726_vm4, 0, %v4895_v42  ;;  %vm885_vm10 = vc.u32 %v4968_v19, %v4974_v27  ;;  %v886_v42 = vadd.s32 1, %v4975_v15 }
 0x2ac   :  { %v941_v11 = vadd.s32 1, %v3915_v28  ;;  %v931_v62 = vand.u32 2147483647, %v4842_v5  ;;  %v2468_v10 = vadd.s32 3, %v814_v14  ;;  %v883_v49 = vmul.u32 %v4867_v12, %v867_v52 }
 0x2ad   :  { %v810_v20 = vsel %vm727_vm3, %v809_v24, %v808_v56  ;;  %v887_v6 = vsel %vm885_vm10, %v886_v42, %v4975_v15  ;;  %vm6439_vm2 = vcmask 121856   ;;  %v818_v31 = vand.u32 3, %v814_v14 }
 0x2ae   :  { %v813_v7 = vsel %vm726_vm4, %v4635_v2, %v810_v20  ;;  %vm942_vm14 = vcmp.gt.s32.totalorder %v941_v11, 0  ;;  %v5003_v48 = vsel %vm6439_vm2, %v258_v3, %v442_v59  ;;  %v888_v46 = vadd.s32 %v887_v6, %v883_v49 }
 0x2af   :  { %4111 = vcosq.f32 %v813_v7  ;;  %v943_v61 = vsel %vm942_vm14, %v941_v11, 0  ;;  %v5010_v54 = vsel %vm91_vm0, %v4168_v30, %v4579_v32  ;;  %v5014_v63 = vmul.f32 %v4600_v41, %v5003_v48 }
 0x2b0   :  { %4113 = vsinq.f32 %v813_v7  ;;  %v945_v47 = vand.u32 31, %v943_v61  ;;  %v889_v12 = vadd.s32 536870912, %v888_v46  ;;  %v5021_v29 = vsel %vm91_vm0, %v4169_v4, %v4581_v33 }
 0x2b1   :  { %v2469_v45 = vand.u32 3, %v2468_v10  ;;  %v938_v17 = vand.u32 8388607, %v931_v62  ;;  %v5025_v32 = vshrl.u32 %v943_v61, 5  ;;  %vm820_vm3 = vcmp.eq.s32.totalorder %v818_v31, 0 }
 0x2b2   :  { %v946_v0 = vsub.s32 32, %v945_v47  ;;  %v5027_v51 = vshrl.u32 %v889_v12, 30  ;;  %v948_v41 = vshll.u32 %v4185_v16, %v945_v47  ;;  %vm819_vm5 = vcmp.lt.s32.totalorder %v818_v31, 2 }
 0x2b3   :  { %v951_v9 = vshll.u32 %v6436_v44, %v945_v47  ;;  %v957_v1 = vshll.u32 %v4188_v23, %v945_v47  ;;  %vm817_vm6 = vweird.f32 %v4635_v2  ;;  %vm823_vm7 = vcmp.eq.s32.totalorder %v818_v31, 2 }
 0x2b4   :  { %v949_v55 = vshrl.u32 %v6436_v44, %v946_v0  ;;  %v952_v8 = vshrl.u32 %v4187_v21, %v946_v0  ;;  %v955_v33 = vshrl.u32 %v4188_v23, %v946_v0  ;;  %v958_v56 = vshrl.u32 %v4189_v25, %v946_v0 }
 0x2b5   :  { %v891_v15 = vshll.u32 %v5027_v51, 30  ;;  %v954_v18 = vshll.u32 %v4187_v21, %v945_v47  ;;  %v1037_v28 = vand.u32 2139095040, %v5014_v63  ;;  %vm2470_vm9 = vcmp.lt.s32.totalorder %v2469_v45, 2 }
 0x2b6   :  { %v950_v24 = vor.u32 %v949_v55, %v948_v41  ;;  %v953_v14 = vor.u32 %v952_v8, %v951_v9  ;;  %v959_v52 = vor.u32 %v958_v56, %v957_v1  ;;  %vm2471_vm12 = vcmp.eq.s32.totalorder %v2469_v45, 0 }
 0x2b7   :  { %v5040_v11 = vsub.s32 %v888_v46, %v891_v15  ;;  %v956_v59 = vor.u32 %v955_v33, %v954_v18  ;;  %vm966_vm13 = vcmp.lt.s32.totalorder %v5025_v32, 4  ;;  %vm2474_vm8 = vcmp.eq.s32.totalorder %v2469_v45, 2 }
 0x2b8   :  { %v939_v3 = vor.u32 8388608, %v938_v17  ;;  %v961_v20 = vshrl.u32 %v6437_v22, %v946_v0  ;;  %v972_v42 = vsel %vm966_vm13, %v959_v52, 920167782  ;;  %vm963_vm4 = vcmp.lt.s32.totalorder %v5025_v32, 1 }
 0x2b9   :  { %v4112_v60 = vpop.eup %4111  ;;  %v894_v49 = vsub.s32 0, %v5040_v11  ;;  %v1038_v6 = vshrl.u32 %v1037_v28, 23  ;;  %v960_v46 = vshll.u32 %v4189_v25, %v945_v47  ;;  %vm965_vm10 = vcmp.lt.s32.totalorder %v5025_v32, 3 }
 0x2ba   :  { %v4114_v7 = vpop.eup %4113  ;;  %v824_v10 = vxor.u32 2147483648, %v4112_v60  ;;  %v971_v30 = vsel %vm963_vm4, %v950_v24, %v953_v14  ;;  %v973_v41 = vsel %vm965_vm10, %v956_v59, %v972_v42  ;;  %vm964_vm14 = vcmp.lt.s32.totalorder %v5025_v32, 2 }
 0x2bb   :  { %v821_v61 = vxor.u32 2147483648, %v4114_v7  ;;  %v3912_v17 = vmin.u32 %v894_v49, %v5040_v11  ;;  %v962_v9 = vor.u32 %v961_v20, %v960_v46  ;;  %v968_v56 = vsel %vm966_vm13, %v956_v59, 2102212464 }
 0x2bc   :  { %v825_v12 = vsel %vm823_vm7, %v824_v10, %v4114_v7  ;;  %v2476_v4 = vsel %vm2474_vm8, %v824_v10, %v4114_v7  ;;  %v947_v28 = vshrl.u32 %v4185_v16, %v946_v0  ;;  %v975_v20 = vsel %vm963_vm4, %v953_v14, %v956_v59  ;;  %v444_v7 = vpop.permute.xlu0 %443 }
 0x2bd   :  { %v822_v55 = vsel %vm820_vm3, %v4112_v60, %v821_v61  ;;  %v2473_v8 = vsel %vm2471_vm12, %v4112_v60, %v821_v61  ;;  %v896_v1 = vclz %v3912_v17  ;;  %v974_v60 = vsel %vm964_vm14, %v971_v30, %v973_v41 }
 0x2be   :  { %v826_v47 = vsel %vm819_vm5, %v822_v55, %v825_v12  ;;  %v2477_v33 = vsel %vm2470_vm9, %v2473_v8, %v2476_v4  ;;  %v979_v42 = vshll.u32 %v939_v3, 8  ;;  %v967_v2 = vsel %vm963_vm4, %v947_v28, %v950_v24 }
 0x2bf   :  { %v827_v15 = vsel %vm817_vm6, nan, %v826_v47  ;;  %v2478_v18 = vsel %vm817_vm6, nan, %v2477_v33  ;;  %v3913_v45 = vadd.s32 4294967294, %v896_v1  ;;  %v969_v0 = vsel %vm965_vm10, %v953_v14, %v968_v56  ;;  %v5121_v56 = vld [vmem:[%s6418_s0] ss:$0 sm:$0xff] }
 0x2c0   :  { %v3839_v31 = vsel %vm3836_vm11, %v827_v15, %v2478_v18  ;;  %v976_v49 = vsel %vm966_vm13, %v962_v9, 1326507024  ;;  %v3919_v61 = vadd.s32 4294967169, %v1038_v6  ;;  %vm6440_vm3 = vcmask 121856   ;;  %v446_v18 = vpop.permute.xlu1 %445 }
 0x2c1   :  { %v3863_v10 = vsel %vm3860_vm15, %v4625_v53, %v3839_v31  ;;  %vm3914_vm2 = vcmp.lt.s32.totalorder %v3913_v45, 0  ;;  %v977_v59 = vsel %vm965_vm10, %v959_v52, %v976_v49  ;;  %v5097_v46 = vsel %vm6440_vm3, %v5010_v54, %v444_v7  ;;  %v4172_v31 = vld [vmem:[%s6417_s1 + $0x48] sm:$0xff]  ;;  %vm6444_vm12 = vmmov %vm6440_vm3 }
 0x2c2   :  { %3880 = vst.msk [vmem:[%s6419_s2 + $0x10] sm:$0xff] %vm6428_vm1, %v3863_v10  ;;  %v5089_v3 = vmul.u32.u64.low %v979_v42, %v974_v60  ;;  %v5090_v53 = vmul.u32.u64.high %v979_v42, %v974_v60, %v5089_v3  ;;  %v899_v24 = vsel %vm3914_vm2, 0, %v3913_v45  ;;  %v978_v14 = vsel %vm964_vm14, %v975_v20, %v977_v59 }
 0x2c3   :  { %v884_v30 = vadd.s32 %v4974_v27, %v4968_v19  ;;  %v900_v12 = vsub.s32 32, %v899_v24  ;;  %v904_v4 = vsub.s32 4294967266, %v899_v24  ;;  %v914_v52 = vsub.s32 4, %v5027_v51  ;;  %v4170_v19 = vld [vmem:[%s6417_s1 + $0x40] sm:$0xff] }
 0x2c4   :  { %v970_v17 = vsel %vm964_vm14, %v967_v2, %v969_v0  ;;  %v5104_v41 = vmul.u32.u64.low %v979_v42, %v978_v14  ;;  %v5105_v55 = vmul.u32.u64.high %v979_v42, %v978_v14, %v5104_v41  ;;  %v1044_v8 = vadd.s32 1, %v3919_v61 }
 0x2c5   :  { %v901_v6 = vshll.u32 %v5040_v11, %v899_v24  ;;  %v902_v9 = vshrl.u32 %v884_v30, %v900_v12  ;;  %v905_v47 = vadd.s32 127, %v904_v4  ;;  %v989_v54 = vadd.s32 1, %v5090_v53 }
 0x2c6   :  { %v5114_v27 = vsel %vm91_vm0, %v4170_v19, %v4583_v34  ;;  %vm830_vm5 = vcmp.lt.s32.totalorder %v4746_v13, 0  ;;  %v1034_v32 = vand.u32 2147483647, %v5014_v63  ;;  %vm1045_vm6 = vcmp.gt.s32.totalorder %v1044_v8, 0 }
 0x2c7   :  { %v903_v33 = vor.u32 %v902_v9, %v901_v6  ;;  %v906_v1 = vshll.u32 %v905_v47, 23  ;;  %v1046_v11 = vsel %vm1045_vm6, %v1044_v8, 0  ;;  %v5125_v15 = vmul.f32 %v5121_v56, %v5097_v46 }
 0x2c8   :  { %v915_v34 = vsel %vm830_vm5, %v914_v52, %v5027_v51  ;;  %v986_v28 = vmul.u32 %v979_v42, %v970_v17  ;;  %vm988_vm7 = vc.u32 %v5105_v55, %v5089_v3  ;;  %v1048_v60 = vand.u32 31, %v1046_v11 }
 0x2c9   :  { %v5137_v45 = vsel %vm91_vm0, %v4172_v31, %v4585_v35  ;;  %v6441_v20 = vand.u32 2147483647, %v4746_v13  ;;  %v907_v51 = vor.u32 4788187, %v906_v1  ;;  %v990_v42 = vsel %vm988_vm7, %v989_v54, %v5090_v53 }
 0x2ca   :  { %v991_v10 = vadd.s32 %v990_v42, %v986_v28  ;;  %v1041_v2 = vand.u32 8388607, %v1034_v32  ;;  %v1049_v0 = vsub.s32 32, %v1048_v60  ;;  %v5150_v49 = vsel %vm6444_vm12, %v5021_v29, %v446_v18 }
 0x2cb   :  { %vm5141_vm9 = vcmp.le.f32.partialorder %v6441_v20, 0.7853982  ;;  %v908_v35 = vand.u32 2147483647, %v907_v51  ;;  %v910_v59 = vcvt.s32.f32 %v903_v33  ;;  %v1140_v14 = vand.u32 2139095040, %v5125_v15 }
 0x2cc   :  { %v917_v24 = vsel %vm5141_vm9, 0, %v915_v34  ;;  %v992_v61 = vadd.s32 536870912, %v991_v10  ;;  %v1052_v30 = vshrl.u32 %v6436_v44, %v1049_v0  ;;  %v1055_v53 = vshrl.u32 %v4187_v21, %v1049_v0 }
 0x2cd   :  { %v1060_v12 = vshll.u32 %v4188_v23, %v1048_v60  ;;  %v911_v4 = vmul.f32 %v910_v59, %v908_v35  ;;  %v1058_v52 = vshrl.u32 %v4188_v23, %v1049_v0  ;;  %v1061_v29 = vshrl.u32 %v4189_v25, %v1049_v0 }
 0x2ce   :  { %v1064_v17 = vshrl.u32 %v6437_v22, %v1049_v0  ;;  %v5161_v41 = vshrl.u32 %v992_v61, 30  ;;  %v1047_v8 = vshrl.u32 %v1046_v11, 5  ;;  %v1051_v6 = vshll.u32 %v4185_v16, %v1048_v60 }
 0x2cf   :  { %v1054_v9 = vshll.u32 %v6436_v44, %v1048_v60  ;;  %v912_v47 = vxor.u32 2147483648, %v911_v4  ;;  %v1057_v54 = vshll.u32 %v4187_v21, %v1048_v60  ;;  %v1062_v19 = vor.u32 %v1061_v29, %v1060_v12 }
 0x2d0   :  { %v1063_v33 = vshll.u32 %v4189_v25, %v1048_v60  ;;  %v5167_v1 = vand.u32 3, %v917_v24  ;;  %v994_v18 = vshll.u32 %v5161_v41, 30  ;;  %v1053_v34 = vor.u32 %v1052_v30, %v1051_v6 }
 0x2d1   :  { %v1056_v28 = vor.u32 %v1055_v53, %v1054_v9  ;;  %v913_v31 = vsel %vm830_vm5, %v912_v47, %v911_v4  ;;  %v1042_v11 = vor.u32 8388608, %v1041_v2  ;;  %v1059_v20 = vor.u32 %v1058_v52, %v1057_v54 }
 0x2d2   :  { %v1065_v51 = vor.u32 %v1064_v17, %v1063_v33  ;;  %v916_v42 = vsel %vm5141_vm9, %v4746_v13, %v913_v31  ;;  %v5175_v35 = vsub.s32 %v991_v10, %v994_v18  ;;  %vm1069_vm13 = vcmp.lt.s32.totalorder %v1047_v8, 4 }
 0x2d3   :  { %v1141_v60 = vshrl.u32 %v1140_v14, 23  ;;  %4115 = vcosq.f32 %v916_v42  ;;  %v2572_v59 = vadd.s32 3, %v917_v24  ;;  %vm1066_vm8 = vcmp.lt.s32.totalorder %v1047_v8, 1 }
 0x2d4   :  { %v1075_v61 = vsel %vm1069_vm13, %v1062_v19, 920167782  ;;  %4117 = vsinq.f32 %v916_v42  ;;  %v997_v30 = vsub.s32 0, %v5175_v35  ;;  %vm1068_vm4 = vcmp.lt.s32.totalorder %v1047_v8, 3 }
 0x2d5   :  { %v1074_v2 = vsel %vm1066_vm8, %v1053_v34, %v1056_v28  ;;  %v1076_v53 = vsel %vm1068_vm4, %v1059_v20, %v1075_v61  ;;  %v1078_v7 = vsel %vm1066_vm8, %v1056_v28, %v1059_v20  ;;  %v1079_v10 = vsel %vm1069_vm13, %v1065_v51, 1326507024 }
 0x2d6   :  { %v1082_v12 = vshll.u32 %v1042_v11, 8  ;;  %v3916_v14 = vmin.u32 %v997_v30, %v5175_v35  ;;  %vm1067_vm10 = vcmp.lt.s32.totalorder %v1047_v8, 2  ;;  %v1071_v24 = vsel %vm1069_vm13, %v1059_v20, 2102212464 }
 0x2d7   :  { %v3923_v4 = vadd.s32 4294967169, %v1141_v60  ;;  %v2573_v52 = vand.u32 3, %v2572_v59  ;;  %v1050_v29 = vshrl.u32 %v4185_v16, %v1049_v0  ;;  %v1077_v17 = vsel %vm1067_vm10, %v1074_v2, %v1076_v53 }
 0x2d8   :  { %v1080_v6 = vsel %vm1068_vm4, %v1062_v19, %v1079_v10  ;;  %v999_v9 = vclz %v3916_v14  ;;  %v5189_v54 = vmul.u32.u64.low %v1082_v12, %v1077_v17  ;;  %v5190_v33 = vmul.u32.u64.high %v1082_v12, %v1077_v17, %v5189_v54 }
 0x2d9   :  { %v1081_v47 = vsel %vm1067_vm10, %v1078_v7, %v1080_v6  ;;  %vm922_vm14 = vcmp.lt.s32.totalorder %v5167_v1, 2  ;;  %v1070_v18 = vsel %vm1066_vm8, %v1050_v29, %v1053_v34  ;;  %v1072_v31 = vsel %vm1068_vm4, %v1056_v28, %v1071_v24 }
 0x2da   :  { %v1137_v11 = vand.u32 2147483647, %v5125_v15  ;;  %vm920_vm2 = vweird.f32 %v4746_v13  ;;  %v3917_v0 = vadd.s32 4294967294, %v999_v9  ;;  %v1147_v51 = vadd.s32 1, %v3923_v4 }
 0x2db   :  { %v5198_v20 = vmul.u32.u64.low %v1082_v12, %v1081_v47  ;;  %v5199_v19 = vmul.u32.u64.high %v1082_v12, %v1081_v47, %v5198_v20  ;;  %vm923_vm3 = vcmp.eq.s32.totalorder %v5167_v1, 0  ;;  %vm926_vm5 = vcmp.eq.s32.totalorder %v5167_v1, 2 }
 0x2dc   :  { %vm2574_vm6 = vcmp.lt.s32.totalorder %v2573_v52, 2  ;;  %vm2575_vm7 = vcmp.eq.s32.totalorder %v2573_v52, 0  ;;  %vm933_vm9 = vcmp.lt.s32.totalorder %v4842_v5, 0  ;;  %vm2578_vm12 = vcmp.eq.s32.totalorder %v2573_v52, 2 }
 0x2dd   :  { %vm3918_vm13 = vcmp.lt.s32.totalorder %v3917_v0, 0  ;;  %v1073_v34 = vsel %vm1067_vm10, %v1070_v18, %v1072_v31  ;;  %vm1148_vm8 = vcmp.gt.s32.totalorder %v1147_v51, 0  ;;  %v4116_v28 = vpop.eup %4115  ;;  %v987_v42 = vadd.s32 %v5089_v3, %v5105_v55 }
 0x2de   :  { %v1002_v60 = vsel %vm3918_vm13, 0, %v3917_v0  ;;  %v1017_v59 = vsub.s32 4, %v5161_v41  ;;  %v1092_v61 = vadd.s32 1, %v5190_v33  ;;  %v4118_v30 = vpop.eup %4117  ;;  %v927_v2 = vxor.u32 2147483648, %v4116_v28 }
 0x2df   :  { %v1003_v53 = vsub.s32 32, %v1002_v60  ;;  %v1007_v7 = vsub.s32 4294967266, %v1002_v60  ;;  %v1149_v10 = vsel %vm1148_vm8, %v1147_v51, 0  ;;  %v924_v14 = vxor.u32 2147483648, %v4118_v30 }
 0x2e0   :  { %v1004_v24 = vshll.u32 %v5175_v35, %v1002_v60  ;;  %v1089_v8 = vmul.u32 %v1082_v12, %v1073_v34  ;;  %vm1091_vm4 = vc.u32 %v5199_v19, %v5189_v54  ;;  %v928_v3 = vsel %vm926_vm5, %v927_v2, %v4118_v30 }
 0x2e1   :  { %v2580_v55 = vsel %vm2578_vm12, %v927_v2, %v4118_v30  ;;  %v1005_v4 = vshrl.u32 %v987_v42, %v1003_v53  ;;  %v1008_v29 = vadd.s32 127, %v1007_v7  ;;  %v925_v17 = vsel %vm923_vm3, %v4116_v28, %v924_v14 }
 0x2e2   :  { %v2577_v6 = vsel %vm2575_vm7, %v4116_v28, %v924_v14  ;;  %v1093_v9 = vsel %vm1091_vm4, %v1092_v61, %v5190_v33  ;;  %v1151_v47 = vand.u32 31, %v1149_v10  ;;  %v929_v35 = vsel %vm922_vm14, %v925_v17, %v928_v3 }
 0x2e3   :  { %v2581_v12 = vsel %vm2574_vm6, %v2577_v6, %v2580_v55  ;;  %v1006_v18 = vor.u32 %v1005_v4, %v1004_v24  ;;  %v1009_v31 = vshll.u32 %v1008_v29, 23  ;;  %v930_v0 = vsel %vm920_vm2, nan, %v929_v35 }
 0x2e4   :  { %v2582_v20 = vsel %vm920_vm2, nan, %v2581_v12  ;;  %v1094_v51 = vadd.s32 %v1093_v9, %v1089_v8  ;;  %v1152_v34 = vsub.s32 32, %v1151_v47  ;;  %vm5230_vm10 = vcmp.le.f32.partialorder %v931_v62, 0.7853982 }
 0x2e5   :  { %v3840_v28 = vsel %vm3836_vm11, %v930_v0, %v2582_v20  ;;  %v1010_v52 = vor.u32 4788187, %v1009_v31  ;;  %v1018_v33 = vsel %vm933_vm9, %v1017_v59, %v5161_v41  ;;  %v1144_v60 = vand.u32 8388607, %v1137_v11 }
 0x2e6   :  { %v3864_v13 = vsel %vm3860_vm15, %v4737_v26, %v3840_v28  ;;  %v1095_v42 = vadd.s32 536870912, %v1094_v51  ;;  %v1155_v61 = vshrl.u32 %v6436_v44, %v1152_v34  ;;  %v1013_v30 = vcvt.s32.f32 %v1006_v18 }
 0x2e7   :  { %3881 = vst.msk [vmem:[%s6419_s2 + $0x18] sm:$0xff] %vm6428_vm1, %v3864_v13  ;;  %v1011_v62 = vand.u32 2147483647, %v1010_v52  ;;  %v1158_v2 = vshrl.u32 %v4187_v21, %v1152_v34  ;;  %v5250_v41 = vmul.f32 %v5121_v56, %v5150_v49  ;;  %v1020_v26 = vsel %vm5230_vm10, 0, %v1018_v33 }
 0x2e8   :  { %v5254_v59 = vshrl.u32 %v1095_v42, 30  ;;  %v1154_v53 = vshll.u32 %v4185_v16, %v1151_v47  ;;  %v1157_v7 = vshll.u32 %v6436_v44, %v1151_v47  ;;  %v1161_v24 = vshrl.u32 %v4188_v23, %v1152_v34 }
 0x2e9   :  { %v1014_v14 = vmul.f32 %v1013_v30, %v1011_v62  ;;  %v1163_v8 = vshll.u32 %v4188_v23, %v1151_v47  ;;  %v1164_v3 = vshrl.u32 %v4189_v25, %v1152_v34  ;;  %v5262_v4 = vshrl.u32 %v1149_v10, 5 }
 0x2ea   :  { %v1097_v55 = vshll.u32 %v5254_v59, 30  ;;  %v1156_v29 = vor.u32 %v1155_v61, %v1154_v53  ;;  %v1160_v17 = vshll.u32 %v4187_v21, %v1151_v47  ;;  %v1159_v9 = vor.u32 %v1158_v2, %v1157_v7 }
 0x2eb   :  { %v1015_v6 = vxor.u32 2147483648, %v1014_v14  ;;  %v1165_v35 = vor.u32 %v1164_v3, %v1163_v8  ;;  %v1167_v12 = vshrl.u32 %v6437_v22, %v1152_v34  ;;  %v5266_v18 = vand.u32 3, %v1020_v26 }
 0x2ec   :  { %v2676_v31 = vadd.s32 3, %v1020_v26  ;;  %v5268_v0 = vsub.s32 %v1094_v51, %v1097_v55  ;;  %v1145_v20 = vor.u32 8388608, %v1144_v60  ;;  %v1162_v52 = vor.u32 %v1161_v24, %v1160_v17 }
 0x2ed   :  { %v1016_v28 = vsel %vm933_vm9, %v1015_v6, %v1014_v14  ;;  %v1166_v10 = vshll.u32 %v4189_v25, %v1151_v47  ;;  %v1243_v33 = vand.u32 2139095040, %v5250_v41  ;;  %vm1169_vm14 = vcmp.lt.s32.totalorder %v5262_v4, 1 }
 0x2ee   :  { %v1019_v13 = vsel %vm5230_vm10, %v4842_v5, %v1016_v28  ;;  %v1100_v42 = vsub.s32 0, %v5268_v0  ;;  %vm1172_vm2 = vcmp.lt.s32.totalorder %v5262_v4, 4  ;;  %v1177_v60 = vsel %vm1169_vm14, %v1156_v29, %v1159_v9 }
 0x2ef   :  { %4119 = vcosq.f32 %v1019_v13  ;;  %v1168_v51 = vor.u32 %v1167_v12, %v1166_v10  ;;  %v1178_v47 = vsel %vm1172_vm2, %v1165_v35, 920167782  ;;  %vm1036_vm3 = vcmp.lt.s32.totalorder %v5014_v63, 0 }
 0x2f0   :  { %4121 = vsinq.f32 %v1019_v13  ;;  %v3920_v1 = vmin.u32 %v1100_v42, %v5268_v0  ;;  %vm1171_vm5 = vcmp.lt.s32.totalorder %v5262_v4, 3  ;;  %v2677_v61 = vand.u32 3, %v2676_v31 }
 0x2f1   :  { %vm1170_vm6 = vcmp.lt.s32.totalorder %v5262_v4, 2  ;;  %v1179_v62 = vsel %vm1171_vm5, %v1162_v52, %v1178_v47  ;;  %v1244_v30 = vshrl.u32 %v1243_v33, 23  ;;  %vm5292_vm7 = vcmp.le.f32.partialorder %v1034_v32, 0.7853982 }
 0x2f2   :  { %v1102_v26 = vclz %v3920_v1  ;;  %v1180_v53 = vsel %vm1170_vm6, %v1177_v60, %v1179_v62  ;;  %v1181_v7 = vsel %vm1169_vm14, %v1159_v9, %v1162_v52  ;;  %v1185_v14 = vshll.u32 %v1145_v20, 8 }
 0x2f3   :  { %vm1029_vm9 = vcmp.eq.s32.totalorder %v5266_v18, 2  ;;  %v1120_v24 = vsub.s32 4, %v5254_v59  ;;  %v1153_v8 = vshrl.u32 %v4185_v16, %v1152_v34  ;;  %v1174_v32 = vsel %vm1172_vm2, %v1162_v52, 2102212464 }
 0x2f4   :  { %v1182_v3 = vsel %vm1172_vm2, %v1168_v51, 1326507024  ;;  %vm1026_vm12 = vcmp.eq.s32.totalorder %v5266_v18, 0  ;;  %v3921_v55 = vadd.s32 4294967294, %v1102_v26  ;;  %vm1025_vm13 = vcmp.lt.s32.totalorder %v5266_v18, 2 }
 0x2f5   :  { %v1183_v17 = vsel %vm1171_vm5, %v1165_v35, %v1182_v3  ;;  %v5310_v6 = vmul.u32.u64.low %v1185_v14, %v1180_v53  ;;  %v5311_v12 = vmul.u32.u64.high %v1185_v14, %v1180_v53, %v5310_v6  ;;  %vm2678_vm8 = vcmp.lt.s32.totalorder %v2677_v61, 2 }
 0x2f6   :  { %v1173_v34 = vsel %vm1169_vm14, %v1153_v8, %v1156_v29  ;;  %v1184_v31 = vsel %vm1170_vm6, %v1181_v7, %v1183_v17  ;;  %v3927_v20 = vadd.s32 4294967169, %v1244_v30  ;;  %vm3922_vm4 = vcmp.lt.s32.totalorder %v3921_v55, 0 }
 0x2f7   :  { %v1175_v28 = vsel %vm1171_vm5, %v1159_v9, %v1174_v32  ;;  %v5321_v52 = vmul.u32.u64.low %v1185_v14, %v1184_v31  ;;  %v5322_v35 = vmul.u32.u64.high %v1185_v14, %v1184_v31, %v5321_v52  ;;  %vm2679_vm10 = vcmp.eq.s32.totalorder %v2677_v61, 0 }
 0x2f8   :  { %vm2682_vm2 = vcmp.eq.s32.totalorder %v2677_v61, 2  ;;  %v1105_v10 = vsel %vm3922_vm4, 0, %v3921_v55  ;;  %v1250_v33 = vadd.s32 1, %v3927_v20  ;;  %v1090_v13 = vadd.s32 %v5189_v54, %v5199_v19 }
 0x2f9   :  { %v1106_v42 = vsub.s32 32, %v1105_v10  ;;  %v1110_v29 = vsub.s32 4294967266, %v1105_v10  ;;  %v1121_v51 = vsel %vm1036_vm3, %v1120_v24, %v5254_v59  ;;  %v4120_v60 = vpop.eup %4119  ;;  %v1176_v9 = vsel %vm1170_vm6, %v1173_v34, %v1175_v28 }
 0x2fa   :  { %v1195_v47 = vadd.s32 1, %v5311_v12  ;;  %v1240_v1 = vand.u32 2147483647, %v5250_v41  ;;  %vm1251_vm14 = vcmp.gt.s32.totalorder %v1250_v33, 0  ;;  %v4122_v62 = vpop.eup %4121  ;;  %v1030_v30 = vxor.u32 2147483648, %v4120_v60 }
 0x2fb   :  { %v1107_v26 = vshll.u32 %v5268_v0, %v1105_v10  ;;  %v1108_v54 = vshrl.u32 %v1090_v13, %v1106_v42  ;;  %v1111_v19 = vadd.s32 127, %v1110_v29  ;;  %v1027_v53 = vxor.u32 2147483648, %v4122_v62 }
 0x2fc   :  { %v1123_v7 = vsel %vm5292_vm7, 0, %v1121_v51  ;;  %vm1194_vm5 = vc.u32 %v5322_v35, %v5310_v6  ;;  %v1252_v59 = vsel %vm1251_vm14, %v1250_v33, 0  ;;  %v1031_v4 = vsel %vm1029_vm9, %v1030_v30, %v4122_v62 }
 0x2fd   :  { %v2684_v24 = vsel %vm2682_vm2, %v1030_v30, %v4122_v62  ;;  %v1109_v8 = vor.u32 %v1108_v54, %v1107_v26  ;;  %v1112_v32 = vshll.u32 %v1111_v19, 23  ;;  %v1028_v0 = vsel %vm1026_vm12, %v4120_v60, %v1027_v53 }
 0x2fe   :  { %v2681_v3 = vsel %vm2679_vm10, %v4120_v60, %v1027_v53  ;;  %v1192_v55 = vmul.u32 %v1185_v14, %v1176_v9  ;;  %v1196_v17 = vsel %vm1194_vm5, %v1195_v47, %v5311_v12  ;;  %vm1023_vm6 = vweird.f32 %v4842_v5 }
 0x2ff   :  { %v1032_v34 = vsel %vm1025_vm13, %v1028_v0, %v1031_v4  ;;  %v2685_v31 = vsel %vm2678_vm8, %v2681_v3, %v2684_v24  ;;  %v1113_v20 = vor.u32 4788187, %v1112_v32  ;;  %v1254_v33 = vand.u32 31, %v1252_v59  ;;  %v448_v0 = vpop.permute.xlu0 %447 }
 0x300   :  { %v1033_v28 = vsel %vm1023_vm6, nan, %v1032_v34  ;;  %v2686_v52 = vsel %vm1023_vm6, nan, %v2685_v31  ;;  %v1197_v10 = vadd.s32 %v1196_v17, %v1192_v55  ;;  %v1116_v29 = vcvt.s32.f32 %v1109_v8 }
 0x301   :  { %v3841_v13 = vsel %vm3836_vm11, %v1033_v28, %v2686_v52  ;;  %v1114_v42 = vand.u32 2147483647, %v1113_v20  ;;  %v2780_v14 = vadd.s32 3, %v1123_v7  ;;  %v1247_v18 = vand.u32 8388607, %v1240_v1 }
 0x302   :  { %v3865_v5 = vsel %vm3860_vm15, %v4762_v58, %v3841_v13  ;;  %v1198_v12 = vadd.s32 536870912, %v1197_v10  ;;  %v1255_v61 = vsub.s32 32, %v1254_v33  ;;  %v1253_v60 = vshrl.u32 %v1252_v59, 5 }
 0x303   :  { %3882 = vst.msk [vmem:[%s6419_s2 + $0x20] sm:$0xff] %vm6428_vm1, %v3865_v5  ;;  %v1117_v51 = vmul.f32 %v1116_v29, %v1114_v42  ;;  %v1257_v9 = vshll.u32 %v4185_v16, %v1254_v33  ;;  %v1260_v47 = vshll.u32 %v6436_v44, %v1254_v33  ;;  %v1263_v26 = vshll.u32 %v4187_v21, %v1254_v33 }
 0x304   :  { %v5362_v62 = vshrl.u32 %v1198_v12, 30  ;;  %v1258_v58 = vshrl.u32 %v6436_v44, %v1255_v61  ;;  %v1261_v30 = vshrl.u32 %v4187_v21, %v1255_v61  ;;  %v1264_v19 = vshrl.u32 %v4188_v23, %v1255_v61 }
 0x305   :  { %v1118_v54 = vxor.u32 2147483648, %v1117_v51  ;;  %v1266_v53 = vshll.u32 %v4188_v23, %v1254_v33  ;;  %v1267_v4 = vshrl.u32 %v4189_v25, %v1255_v61  ;;  %v5370_v59 = vand.u32 3, %v1123_v7 }
 0x306   :  { %v1200_v24 = vshll.u32 %v5362_v62, 30  ;;  %v1259_v8 = vor.u32 %v1258_v58, %v1257_v9  ;;  %v1262_v32 = vor.u32 %v1261_v30, %v1260_v47  ;;  %v1265_v55 = vor.u32 %v1264_v19, %v1263_v26 }
 0x307   :  { %v1119_v3 = vsel %vm1036_vm3, %v1118_v54, %v1117_v51  ;;  %v1268_v17 = vor.u32 %v1267_v4, %v1266_v53  ;;  %v1270_v34 = vshrl.u32 %v6437_v22, %v1255_v61  ;;  %v1248_v7 = vor.u32 8388608, %v1247_v18 }
 0x308   :  { %v1122_v31 = vsel %vm5292_vm7, %v5014_v63, %v1119_v3  ;;  %v5379_v20 = vsub.s32 %v1197_v10, %v1200_v24  ;;  %v1269_v28 = vshll.u32 %v4189_v25, %v1254_v33  ;;  %v5382_v52 = vand.u32 3, %v2780_v14 }
 0x309   :  { %4123 = vcosq.f32 %v1122_v31  ;;  %vm1272_vm9 = vcmp.lt.s32.totalorder %v1253_v60, 1  ;;  %vm6449_vm12 = vcmask 121856   ;;  %vm1139_vm3 = vcmp.lt.s32.totalorder %v5125_v15, 0 }
 0x30a   :  { %v5386_v13 = vsel %vm6449_vm12, %v5114_v27, %v448_v0  ;;  %4125 = vsinq.f32 %v1122_v31  ;;  %v1203_v42 = vsub.s32 0, %v5379_v20  ;;  %v1271_v2 = vor.u32 %v1270_v34, %v1269_v28 }
 0x30b   :  { %vm1275_vm7 = vcmp.lt.s32.totalorder %v1253_v60, 4  ;;  %v1256_v10 = vshrl.u32 %v4185_v16, %v1255_v61  ;;  %v1280_v33 = vsel %vm1272_vm9, %v1259_v8, %v1262_v32  ;;  %vm1274_vm13 = vcmp.lt.s32.totalorder %v1253_v60, 3 }
 0x30c   :  { %v1277_v29 = vsel %vm1275_vm7, %v1265_v55, 2102212464  ;;  %v1281_v14 = vsel %vm1275_vm7, %v1268_v17, 920167782  ;;  %v3924_v5 = vmin.u32 %v1203_v42, %v5379_v20  ;;  %v1288_v27 = vshll.u32 %v1248_v7, 8 }
 0x30d   :  { %v5397_v12 = vmul.f32 %v5121_v56, %v5386_v13  ;;  %vm1273_vm8 = vcmp.lt.s32.totalorder %v1253_v60, 2  ;;  %v1276_v18 = vsel %vm1272_vm9, %v1256_v10, %v1259_v8  ;;  %v1282_v51 = vsel %vm1274_vm13, %v1265_v55, %v1281_v14 }
 0x30e   :  { %v1284_v61 = vsel %vm1272_vm9, %v1262_v32, %v1265_v55  ;;  %v1205_v9 = vclz %v3924_v5  ;;  %v1278_v47 = vsel %vm1274_vm13, %v1262_v32, %v1277_v29  ;;  %v1283_v58 = vsel %vm1273_vm8, %v1280_v33, %v1282_v51 }
 0x30f   :  { %v1285_v30 = vsel %vm1275_vm7, %v1271_v2, 1326507024  ;;  %vm1128_vm4 = vcmp.lt.s32.totalorder %v5370_v59, 2  ;;  %vm1129_vm10 = vcmp.eq.s32.totalorder %v5370_v59, 0  ;;  %vm1132_vm2 = vcmp.eq.s32.totalorder %v5370_v59, 2 }
 0x310   :  { %v1223_v26 = vsub.s32 4, %v5362_v62  ;;  %v1286_v54 = vsel %vm1274_vm13, %v1268_v17, %v1285_v30  ;;  %vm1126_vm14 = vweird.f32 %v5014_v63  ;;  %v3925_v19 = vadd.s32 4294967294, %v1205_v9  ;;  %v450_v30 = vpop.permute.xlu1 %449 }
 0x311   :  { %v1287_v53 = vsel %vm1273_vm8, %v1284_v61, %v1286_v54  ;;  %v5409_v4 = vmul.u32.u64.low %v1288_v27, %v1283_v58  ;;  %v5410_v24 = vmul.u32.u64.high %v1288_v27, %v1283_v58, %v5409_v4  ;;  %vm5415_vm5 = vcmp.le.f32.partialorder %v1137_v11, 0.7853982 }
 0x312   :  { %v1279_v32 = vsel %vm1273_vm8, %v1276_v18, %v1278_v47  ;;  %v5420_v0 = vmul.u32.u64.low %v1288_v27, %v1287_v53  ;;  %v5421_v3 = vmul.u32.u64.high %v1288_v27, %v1287_v53, %v5420_v0  ;;  %v1346_v55 = vand.u32 2139095040, %v5397_v12 }
 0x313   :  { %vm2782_vm6 = vcmp.lt.s32.totalorder %v5382_v52, 2  ;;  %vm2783_vm9 = vcmp.eq.s32.totalorder %v5382_v52, 0  ;;  %vm2786_vm12 = vcmp.eq.s32.totalorder %v5382_v52, 2  ;;  %vm3926_vm7 = vcmp.lt.s32.totalorder %v3925_v19, 0  ;;  %v4124_v17 = vpop.eup %4123 }
 0x314   :  { %v1193_v11 = vadd.s32 %v5310_v6, %v5322_v35  ;;  %v1208_v34 = vsel %vm3926_vm7, 0, %v3925_v19  ;;  %v1224_v60 = vsel %vm1139_vm3, %v1223_v26, %v5362_v62  ;;  %v1347_v31 = vshrl.u32 %v1346_v55, 23  ;;  %v4126_v7 = vpop.eup %4125 }
 0x315   :  { %v1133_v28 = vxor.u32 2147483648, %v4124_v17  ;;  %v1209_v42 = vsub.s32 32, %v1208_v34  ;;  %v1213_v2 = vsub.s32 4294967266, %v1208_v34  ;;  %v1295_v10 = vmul.u32 %v1288_v27, %v1279_v32 }
 0x316   :  { %v1130_v29 = vxor.u32 2147483648, %v4126_v7  ;;  %v1210_v33 = vshll.u32 %v5379_v20, %v1208_v34  ;;  %vm1297_vm13 = vc.u32 %v5421_v3, %v5409_v4  ;;  %v1298_v14 = vadd.s32 1, %v5410_v24 }
 0x317   :  { %v1134_v6 = vsel %vm1132_vm2, %v1133_v28, %v4126_v7  ;;  %v2788_v35 = vsel %vm2786_vm12, %v1133_v28, %v4126_v7  ;;  %v1211_v62 = vshrl.u32 %v1193_v11, %v1209_v42  ;;  %v1214_v5 = vadd.s32 127, %v1213_v2 }
 0x318   :  { %v1131_v18 = vsel %vm1129_vm10, %v4124_v17, %v1130_v29  ;;  %v2785_v27 = vsel %vm2783_vm9, %v4124_v17, %v1130_v29  ;;  %v1299_v20 = vsel %vm1297_vm13, %v1298_v14, %v5410_v24  ;;  %v3931_v51 = vadd.s32 4294967169, %v1347_v31 }
 0x319   :  { %v1135_v61 = vsel %vm1128_vm4, %v1131_v18, %v1134_v6  ;;  %v2789_v9 = vsel %vm2782_vm6, %v2785_v27, %v2788_v35  ;;  %v1212_v47 = vor.u32 %v1211_v62, %v1210_v33  ;;  %v1215_v58 = vshll.u32 %v1214_v5, 23 }
 0x31a   :  { %v1136_v26 = vsel %vm1126_vm14, nan, %v1135_v61  ;;  %v2790_v54 = vsel %vm1126_vm14, nan, %v2789_v9  ;;  %v1300_v19 = vadd.s32 %v1299_v20, %v1295_v10  ;;  %v1343_v53 = vand.u32 2147483647, %v5397_v12 }
 0x31b   :  { %v3842_v24 = vsel %vm3836_vm11, %v1136_v26, %v2790_v54  ;;  %v1216_v59 = vor.u32 4788187, %v1215_v58  ;;  %v1226_v52 = vsel %vm5415_vm5, 0, %v1224_v60  ;;  %v1353_v32 = vadd.s32 1, %v3931_v51 }
 0x31c   :  { %v3866_v0 = vsel %vm3860_vm15, %v5003_v48, %v3842_v24  ;;  %v1301_v55 = vadd.s32 536870912, %v1300_v19  ;;  %vm6452_vm8 = vcmask 121856   ;;  %v1219_v11 = vcvt.s32.f32 %v1212_v47 }
 0x31d   :  { %v5463_v63 = vsel %vm6452_vm8, %v5137_v45, %v450_v30  ;;  %3883 = vst.msk [vmem:[%s6419_s2 + $0x28] sm:$0xff] %vm6428_vm1, %v3866_v0  ;;  %v1217_v17 = vand.u32 2147483647, %v1216_v59  ;;  %vm1354_vm4 = vcmp.gt.s32.totalorder %v1353_v32, 0  ;;  %v2884_v34 = vadd.s32 3, %v1226_v52 }
 0x31e   :  { %v1302_v60 = vshrl.u32 %v1301_v55, 30  ;;  %v1350_v31 = vand.u32 8388607, %v1343_v53  ;;  %v1355_v7 = vsel %vm1354_vm4, %v1353_v32, 0  ;;  %v5473_v45 = vmul.f32 %v5121_v56, %v5463_v63 }
 0x31f   :  { %v1220_v48 = vmul.f32 %v1219_v11, %v1217_v17  ;;  %v1357_v28 = vand.u32 31, %v1355_v7  ;;  %vm6427_vm10 = vcmp.lt.s32.totalorder %v5250_v41, 0  ;;  %v5476_v29 = vand.u32 3, %v1226_v52 }
 0x320   :  { %v1303_v42 = vshll.u32 %v1302_v60, 30  ;;  %v5478_v33 = vand.u32 3, %v2884_v34  ;;  %v1351_v6 = vor.u32 8388608, %v1350_v31  ;;  %v1326_v62 = vsub.s32 4, %v1302_v60 }
 0x321   :  { %v1221_v2 = vxor.u32 2147483648, %v1220_v48  ;;  %v1358_v10 = vsub.s32 32, %v1357_v28  ;;  %v1449_v18 = vand.u32 2139095040, %v5473_v45  ;;  %v1360_v51 = vshll.u32 %v4185_v16, %v1357_v28 }
 0x322   :  { %v5480_v14 = vsub.s32 %v1300_v19, %v1303_v42  ;;  %v1363_v61 = vshll.u32 %v6436_v44, %v1357_v28  ;;  %v1366_v47 = vshll.u32 %v4187_v21, %v1357_v28  ;;  %v1296_v30 = vadd.s32 %v5409_v4, %v5421_v3 }
 0x323   :  { %v1222_v35 = vsel %vm1139_vm3, %v1221_v2, %v1220_v48  ;;  %v1361_v5 = vshrl.u32 %v6436_v44, %v1358_v10  ;;  %v1364_v9 = vshrl.u32 %v4187_v21, %v1358_v10  ;;  %v1367_v58 = vshrl.u32 %v4188_v23, %v1358_v10 }
 0x324   :  { %v1225_v27 = vsel %vm5415_vm5, %v5125_v15, %v1222_v35  ;;  %v1306_v20 = vsub.s32 0, %v5480_v14  ;;  %v5498_v26 = vshrl.u32 %v1355_v7, 5  ;;  %v1369_v59 = vshll.u32 %v4188_v23, %v1357_v28 }
 0x325   :  { %4127 = vcosq.f32 %v1225_v27  ;;  %v1362_v54 = vor.u32 %v1361_v5, %v1360_v51  ;;  %v1365_v19 = vor.u32 %v1364_v9, %v1363_v61  ;;  %v1368_v24 = vor.u32 %v1367_v58, %v1366_v47 }
 0x326   :  { %4129 = vsinq.f32 %v1225_v27  ;;  %v3928_v8 = vmin.u32 %v1306_v20, %v5480_v14  ;;  %v1370_v32 = vshrl.u32 %v4189_v25, %v1358_v10  ;;  %v1372_v0 = vshll.u32 %v4189_v25, %v1357_v28 }
 0x327   :  { %v1373_v55 = vshrl.u32 %v6437_v22, %v1358_v10  ;;  %vm1235_vm3 = vcmp.eq.s32.totalorder %v5476_v29, 2  ;;  %vm2890_vm2 = vcmp.eq.s32.totalorder %v5478_v33, 2  ;;  %v1327_v4 = vsel %vm6427_vm10, %v1326_v62, %v1302_v60 }
 0x328   :  { %v1308_v52 = vclz %v3928_v8  ;;  %v5508_v3 = vshll.u32 %v1351_v6, 8  ;;  %v1446_v17 = vand.u32 2147483647, %v5473_v45  ;;  %v1450_v11 = vshrl.u32 %v1449_v18, 23 }
 0x329   :  { %vm1232_vm14 = vcmp.eq.s32.totalorder %v5476_v29, 0  ;;  %vm2887_vm5 = vcmp.eq.s32.totalorder %v5478_v33, 0  ;;  %v1359_v31 = vshrl.u32 %v4185_v16, %v1358_v10  ;;  %v1371_v7 = vor.u32 %v1370_v32, %v1369_v59 }
 0x32a   :  { %v3929_v34 = vadd.s32 4294967294, %v1308_v52  ;;  %v1374_v48 = vor.u32 %v1373_v55, %v1372_v0  ;;  %vm1231_vm6 = vcmp.lt.s32.totalorder %v5476_v29, 2  ;;  %vm2886_vm9 = vcmp.lt.s32.totalorder %v5478_v33, 2  ;;  %v452_v33 = vpop.permute.xlu0 %451 }
 0x32b   :  { %vm5518_vm12 = vcmp.le.f32.partialorder %v1240_v1, 0.7853982  ;;  %vm1375_vm7 = vcmp.lt.s32.totalorder %v5498_v26, 1  ;;  %vm1376_vm13 = vcmp.lt.s32.totalorder %v5498_v26, 2  ;;  %vm1377_vm8 = vcmp.lt.s32.totalorder %v5498_v26, 3 }
 0x32c   :  { %vm1378_vm4 = vcmp.lt.s32.totalorder %v5498_v26, 4  ;;  %vm1229_vm10 = vweird.f32 %v5125_v15  ;;  %vm3930_vm1 = vcmp.lt.s32.totalorder %v3929_v34, 0  ;;  %v1383_v42 = vsel %vm1375_vm7, %v1362_v54, %v1365_v19  ;;  %v4173_v26 = vld [vmem:[%s6417_s1 + $0x50] sm:$0xff] }
 0x32d   :  { %v1380_v28 = vsel %vm1378_vm4, %v1368_v24, 2102212464  ;;  %v1384_v2 = vsel %vm1378_vm4, %v1371_v7, 920167782  ;;  %v1311_v10 = vsel %vm3930_vm1, 0, %v3929_v34  ;;  %v1387_v6 = vsel %vm1375_vm7, %v1365_v19, %v1368_v24 }
 0x32e   :  { %v1385_v1 = vsel %vm1377_vm8, %v1368_v24, %v1384_v2  ;;  %v1388_v35 = vsel %vm1378_vm4, %v1374_v48, 1326507024  ;;  %v1312_v62 = vsub.s32 32, %v1311_v10  ;;  %v1316_v5 = vsub.s32 4294967266, %v1311_v10 }
 0x32f   :  { %v1379_v18 = vsel %vm1375_vm7, %v1359_v31, %v1362_v54  ;;  %v1381_v27 = vsel %vm1377_vm8, %v1365_v19, %v1380_v28  ;;  %v4128_v20 = vpop.eup %4127  ;;  %v1313_v51 = vshll.u32 %v5480_v14, %v1311_v10  ;;  %v1386_v61 = vsel %vm1376_vm13, %v1383_v42, %v1385_v1 }
 0x330   :  { %v1389_v9 = vsel %vm1377_vm8, %v1371_v7, %v1388_v35  ;;  %v3935_v47 = vadd.s32 4294967169, %v1450_v11  ;;  %v4130_v58 = vpop.eup %4129  ;;  %v1236_v8 = vxor.u32 2147483648, %v4128_v20  ;;  %v1314_v24 = vshrl.u32 %v1296_v30, %v1312_v62 }
 0x331   :  { %v1317_v59 = vadd.s32 127, %v1316_v5  ;;  %v1390_v54 = vsel %vm1376_vm13, %v1387_v6, %v1389_v9  ;;  %v1233_v52 = vxor.u32 2147483648, %v4130_v58  ;;  %v1329_v10 = vsel %vm5518_vm12, 0, %v1327_v4 }
 0x332   :  { %v5539_v19 = vmul.u32.u64.low %v5508_v3, %v1390_v54  ;;  %v5540_v32 = vmul.u32.u64.high %v5508_v3, %v1390_v54, %v5539_v19  ;;  %v1456_v14 = vadd.s32 1, %v3935_v47  ;;  %v1237_v0 = vsel %vm1235_vm3, %v1236_v8, %v4130_v58 }
 0x333   :  { %v2892_v55 = vsel %vm2890_vm2, %v1236_v8, %v4130_v58  ;;  %v1315_v11 = vor.u32 %v1314_v24, %v1313_v51  ;;  %v1318_v34 = vshll.u32 %v1317_v59, 23  ;;  %v1234_v30 = vsel %vm1232_vm14, %v4128_v20, %v1233_v52 }
 0x334   :  { %v2889_v31 = vsel %vm2887_vm5, %v4128_v20, %v1233_v52  ;;  %v5551_v7 = vmul.u32.u64.low %v5508_v3, %v1386_v61  ;;  %v5552_v48 = vmul.u32.u64.high %v5508_v3, %v1386_v61, %v5551_v7  ;;  %v1238_v28 = vsel %vm1231_vm6, %v1234_v30, %v1237_v0 }
 0x335   :  { %v2893_v42 = vsel %vm2886_vm9, %v2889_v31, %v2892_v55  ;;  %v1319_v2 = vor.u32 4788187, %v1318_v34  ;;  %v1239_v1 = vsel %vm1229_vm10, nan, %v1238_v28  ;;  %v1322_v35 = vcvt.s32.f32 %v1315_v11 }
 0x336   :  { %v2894_v6 = vsel %vm1229_vm10, nan, %v2893_v42  ;;  %v1382_v62 = vsel %vm1376_vm13, %v1379_v18, %v1381_v27  ;;  %vm1400_vm1 = vc.u32 %v5540_v32, %v5551_v7  ;;  %vm1457_vm3 = vcmp.gt.s32.totalorder %v1456_v14, 0 }
 0x337   :  { %v3843_v29 = vsel %vm3836_vm11, %v1239_v1, %v2894_v6  ;;  %v1320_v5 = vand.u32 2147483647, %v1319_v2  ;;  %v2988_v20 = vadd.s32 3, %v1329_v10  ;;  %v1401_v15 = vadd.s32 1, %v5552_v48 }
 0x338   :  { %v3867_v4 = vsel %vm3860_vm15, %v5097_v46, %v3843_v29  ;;  %v1458_v51 = vsel %vm1457_vm3, %v1456_v14, 0  ;;  %v263_v18 = vsel %vm91_vm0, %v4173_v26, %v4587_v36  ;;  %vm6455_vm10 = vcmask 515072  }
 0x339   :  { %3884 = vst.msk [vmem:[%s6419_s2 + $0x30] sm:$0xff] %vm6455_vm10, %v3867_v4  ;;  %v1323_v27 = vmul.f32 %v1322_v35, %v1320_v5  ;;  %v1398_v61 = vmul.u32 %v5508_v3, %v1382_v62  ;;  %v1460_v46 = vand.u32 31, %v1458_v51  ;;  %v1402_v9 = vsel %vm1400_vm1, %v1401_v15, %v5552_v48 }
 0x33a   :  { %v1453_v47 = vand.u32 8388607, %v1446_v17  ;;  %vm6456_vm2 = vcmask 121856   ;;  %v5591_v24 = vand.u32 3, %v1329_v10  ;;  %v5593_v54 = vand.u32 3, %v2988_v20 }
 0x33b   :  { %v5589_v58 = vsel %vm6456_vm2, %v263_v18, %v452_v33  ;;  %v1324_v8 = vxor.u32 2147483648, %v1323_v27  ;;  %v1403_v36 = vadd.s32 %v1402_v9, %v1398_v61  ;;  %v1461_v59 = vsub.s32 32, %v1460_v46 }
 0x33c   :  { %v5595_v52 = vshrl.u32 %v1458_v51, 5  ;;  %v1463_v3 = vshll.u32 %v4185_v16, %v1460_v46  ;;  %v1466_v19 = vshll.u32 %v6436_v44, %v1460_v46  ;;  %vm6457_vm14 = vcmp.lt.s32.totalorder %v5250_v41, 0 }
 0x33d   :  { %v1325_v14 = vsel %vm6457_vm14, %v1324_v8, %v1323_v27  ;;  %v1404_v0 = vadd.s32 536870912, %v1403_v36  ;;  %v1464_v55 = vshrl.u32 %v6436_v44, %v1461_v59  ;;  %v1472_v11 = vshll.u32 %v4188_v23, %v1460_v46 }
 0x33e   :  { %v1328_v34 = vsel %vm5518_vm12, %v5250_v41, %v1325_v14  ;;  %v1467_v30 = vshrl.u32 %v4187_v21, %v1461_v59  ;;  %v1470_v31 = vshrl.u32 %v4188_v23, %v1461_v59  ;;  %v1473_v48 = vshrl.u32 %v4189_v25, %v1461_v59 }
 0x33f   :  { %4131 = vcosq.f32 %v1328_v34  ;;  %v5609_v28 = vshrl.u32 %v1404_v0, 30  ;;  %v1469_v42 = vshll.u32 %v4187_v21, %v1460_v46  ;;  %v1476_v2 = vshrl.u32 %v6437_v22, %v1461_v59 }
 0x340   :  { %4133 = vsinq.f32 %v1328_v34  ;;  %v1474_v10 = vor.u32 %v1473_v48, %v1472_v11  ;;  %v1475_v1 = vshll.u32 %v4189_v25, %v1460_v46  ;;  %v5616_v60 = vmul.f32 %v5121_v56, %v5589_v58 }
 0x341   :  { %v1406_v6 = vshll.u32 %v5609_v28, 30  ;;  %v1465_v35 = vor.u32 %v1464_v55, %v1463_v3  ;;  %v1468_v62 = vor.u32 %v1467_v30, %v1466_v19  ;;  %v1471_v29 = vor.u32 %v1470_v31, %v1469_v42 }
 0x342   :  { %v1477_v5 = vor.u32 %v1476_v2, %v1475_v1  ;;  %vm1338_vm5 = vcmp.eq.s32.totalorder %v5591_v24, 2  ;;  %v1454_v4 = vor.u32 8388608, %v1453_v47  ;;  %vm1481_vm6 = vcmp.lt.s32.totalorder %v5595_v52, 4 }
 0x343   :  { %v5620_v33 = vsub.s32 %v1403_v36, %v1406_v6  ;;  %vm1335_vm9 = vcmp.eq.s32.totalorder %v5591_v24, 0  ;;  %v1462_v20 = vshrl.u32 %v4185_v16, %v1461_v59  ;;  %vm1478_vm12 = vcmp.lt.s32.totalorder %v5595_v52, 1 }
 0x344   :  { %v1487_v56 = vsel %vm1481_vm6, %v1474_v10, 920167782  ;;  %v1552_v15 = vand.u32 2139095040, %v5616_v60  ;;  %vm1334_vm7 = vcmp.lt.s32.totalorder %v5591_v24, 2  ;;  %vm2990_vm13 = vcmp.lt.s32.totalorder %v5593_v54, 2 }
 0x345   :  { %v1409_v51 = vsub.s32 0, %v5620_v33  ;;  %vm1480_vm8 = vcmp.lt.s32.totalorder %v5595_v52, 3  ;;  %v1483_v26 = vsel %vm1481_vm6, %v1471_v29, 2102212464  ;;  %v1486_v18 = vsel %vm1478_vm12, %v1465_v35, %v1468_v62 }
 0x346   :  { %vm1332_vm4 = vweird.f32 %v5250_v41  ;;  %vm2991_vm1 = vcmp.eq.s32.totalorder %v5593_v54, 0  ;;  %vm1345_vm3 = vcmp.lt.s32.totalorder %v5397_v12, 0  ;;  %v1488_v27 = vsel %vm1480_vm8, %v1471_v29, %v1487_v56 }
 0x347   :  { %v1490_v61 = vsel %vm1478_vm12, %v1468_v62, %v1471_v29  ;;  %v1491_v46 = vsel %vm1481_vm6, %v1477_v5, 1326507024  ;;  %v3932_v9 = vmin.u32 %v1409_v51, %v5620_v33  ;;  %vm1479_vm10 = vcmp.lt.s32.totalorder %v5595_v52, 2 }
 0x348   :  { %v1482_v47 = vsel %vm1478_vm12, %v1462_v20, %v1465_v35  ;;  %v1494_v8 = vshll.u32 %v1454_v4, 8  ;;  %v1484_v36 = vsel %vm1480_vm8, %v1468_v62, %v1483_v26  ;;  %v1489_v59 = vsel %vm1479_vm10, %v1486_v18, %v1488_v27 }
 0x349   :  { %v1492_v3 = vsel %vm1480_vm8, %v1474_v10, %v1491_v46  ;;  %v1553_v19 = vshrl.u32 %v1552_v15, 23  ;;  %v4132_v14 = vpop.eup %4131  ;;  %vm5652_vm2 = vcmp.le.f32.partialorder %v1343_v53, 0.7853982  ;;  %v1411_v55 = vclz %v3932_v9 }
 0x34a   :  { %v1493_v11 = vsel %vm1479_vm10, %v1490_v61, %v1492_v3  ;;  %v5658_v34 = vmul.u32.u64.low %v1494_v8, %v1489_v59  ;;  %v5659_v30 = vmul.u32.u64.high %v1494_v8, %v1489_v59, %v5658_v34  ;;  %v4134_v31 = vpop.eup %4133  ;;  %v1339_v48 = vxor.u32 2147483648, %v4132_v14 }
 0x34b   :  { %vm2994_vm14 = vcmp.eq.s32.totalorder %v5593_v54, 2  ;;  %v1399_v42 = vadd.s32 %v5551_v7, %v5540_v32  ;;  %v1429_v2 = vsub.s32 4, %v5609_v28  ;;  %v1336_v53 = vxor.u32 2147483648, %v4134_v31 }
 0x34c   :  { %v3933_v10 = vadd.s32 4294967294, %v1411_v55  ;;  %v5665_v1 = vmul.u32.u64.low %v1494_v8, %v1493_v11  ;;  %v5666_v6 = vmul.u32.u64.high %v1494_v8, %v1493_v11, %v5665_v1  ;;  %v1340_v35 = vsel %vm1338_vm5, %v1339_v48, %v4134_v31 }
 0x34d   :  { %v2996_v62 = vsel %vm2994_vm14, %v1339_v48, %v4134_v31  ;;  %v1485_v29 = vsel %vm1479_vm10, %v1482_v47, %v1484_v36  ;;  %v3939_v5 = vadd.s32 4294967169, %v1553_v19  ;;  %v1337_v4 = vsel %vm1335_vm9, %v4132_v14, %v1336_v53  ;;  %v454_v31 = vpop.permute.xlu1 %453 }
 0x34e   :  { %v2993_v32 = vsel %vm2991_vm1, %v4132_v14, %v1336_v53  ;;  %vm3934_vm6 = vcmp.lt.s32.totalorder %v3933_v10, 0  ;;  %v1504_v7 = vadd.s32 1, %v5659_v30  ;;  %v1341_v20 = vsel %vm1334_vm7, %v1337_v4, %v1340_v35  ;;  %v4175_v53 = vld [vmem:[%s6417_s1 + $0x60] sm:$0xff] }
 0x34f   :  { %v2997_v56 = vsel %vm2990_vm13, %v2993_v32, %v2996_v62  ;;  %v1414_v15 = vsel %vm3934_vm6, 0, %v3933_v10  ;;  %v1549_v52 = vand.u32 2147483647, %v5616_v60  ;;  %v1342_v51 = vsel %vm1332_vm4, nan, %v1341_v20 }
 0x350   :  { %v2998_v26 = vsel %vm1332_vm4, nan, %v2997_v56  ;;  %v1415_v18 = vsub.s32 32, %v1414_v15  ;;  %v1430_v27 = vsel %vm1345_vm3, %v1429_v2, %v5609_v28  ;;  %v1419_v61 = vsub.s32 4294967266, %v1414_v15 }
 0x351   :  { %v3844_v24 = vsel %vm3836_vm11, %v1342_v51, %v2998_v26  ;;  %v1501_v54 = vmul.u32 %v1494_v8, %v1485_v29  ;;  %vm1503_vm5 = vc.u32 %v5666_v6, %v5658_v34  ;;  %v1559_v47 = vadd.s32 1, %v3939_v5 }
 0x352   :  { %v3868_v46 = vsel %vm3860_vm15, %v5150_v49, %v3844_v24  ;;  %v1417_v9 = vshrl.u32 %v1399_v42, %v1415_v18  ;;  %v1505_v41 = vsel %vm1503_vm5, %v1504_v7, %v5659_v30  ;;  %vm6460_vm9 = vcmask 515072  }
 0x353   :  { %3885 = vst.msk [vmem:[%s6419_s2 + $0x38] sm:$0xff] %vm6460_vm9, %v3868_v46  ;;  %v1416_v28 = vshll.u32 %v5620_v33, %v1414_v15  ;;  %v1420_v36 = vadd.s32 127, %v1419_v61  ;;  %v1432_v8 = vsel %vm5652_vm2, 0, %v1430_v27  ;;  %v1506_v59 = vadd.s32 %v1505_v41, %v1501_v54  ;;  %v4174_v33 = vld [vmem:[%s6417_s1 + $0x58] sm:$0xff]  ;;  %v5741_v27 = vld [vmem:[%s6418_s0] ss:$0 sm:$0xff] }
 0x354   :  { %vm1560_vm12 = vcmp.gt.s32.totalorder %v1559_v47, 0  ;;  %v3092_v55 = vadd.s32 3, %v1432_v8  ;;  %v1556_v11 = vand.u32 8388607, %v1549_v52  ;;  %v264_v2 = vsel %vm91_vm0, %v4174_v33, %v4589_v37 }
 0x355   :  { %v1418_v3 = vor.u32 %v1417_v9, %v1416_v28  ;;  %v1421_v19 = vshll.u32 %v1420_v36, 23  ;;  %v1507_v49 = vadd.s32 536870912, %v1506_v59  ;;  %v1561_v14 = vsel %vm1560_vm12, %v1559_v47, 0 }
 0x356   :  { %v1563_v30 = vand.u32 31, %v1561_v14  ;;  %v5717_v10 = vsel %vm91_vm0, %v4175_v53, %v4591_v38  ;;  %vm6461_vm7 = vcmask 121856   ;;  %v5723_v4 = vand.u32 3, %v1432_v8 }
 0x357   :  { %v1422_v48 = vor.u32 4788187, %v1421_v19  ;;  %v5705_v42 = vshrl.u32 %v1507_v49, 30  ;;  %v1425_v62 = vcvt.s32.f32 %v1418_v3  ;;  %v5721_v5 = vsel %vm6461_vm7, %v264_v2, %v454_v31 }
 0x358   :  { %v1564_v1 = vsub.s32 32, %v1563_v30  ;;  %v5725_v32 = vand.u32 3, %v3092_v55  ;;  %v5728_v37 = vadd.s32 %v5658_v34, %v5666_v6  ;;  %v1557_v7 = vor.u32 8388608, %v1556_v11 }
 0x359   :  { %v1423_v35 = vand.u32 2147483647, %v1422_v48  ;;  %v1509_v29 = vshll.u32 %v5705_v42, 30  ;;  %v5734_v51 = vshrl.u32 %v1561_v14, 5  ;;  %v5745_v34 = vmul.f32 %v5741_v27, %v5721_v5 }
 0x35a   :  { %v1567_v38 = vshrl.u32 %v6436_v44, %v1564_v1  ;;  %v1570_v15 = vshrl.u32 %v4187_v21, %v1564_v1  ;;  %v1573_v26 = vshrl.u32 %v4188_v23, %v1564_v1  ;;  %v1576_v18 = vshrl.u32 %v4189_v25, %v1564_v1 }
 0x35b   :  { %v1426_v20 = vmul.f32 %v1425_v62, %v1423_v35  ;;  %v5730_v56 = vsub.s32 %v1506_v59, %v1509_v29  ;;  %vm1448_vm13 = vcmp.lt.s32.totalorder %v5473_v45, 0  ;;  %v1566_v61 = vshll.u32 %v4185_v16, %v1563_v30 }
 0x35c   :  { %v1569_v54 = vshll.u32 %v6436_v44, %v1563_v30  ;;  %v1572_v46 = vshll.u32 %v4187_v21, %v1563_v30  ;;  %v1575_v9 = vshll.u32 %v4188_v23, %v1563_v30  ;;  %v1578_v41 = vshll.u32 %v4189_v25, %v1563_v30 }
 0x35d   :  { %v1427_v6 = vxor.u32 2147483648, %v1426_v20  ;;  %v1512_v24 = vsub.s32 0, %v5730_v56  ;;  %v1579_v47 = vshrl.u32 %v6437_v22, %v1564_v1  ;;  %v1568_v8 = vor.u32 %v1567_v38, %v1566_v61  ;;  %v456_v61 = vpop.permute.xlu0 %455 }
 0x35e   :  { %v1571_v59 = vor.u32 %v1570_v15, %v1569_v54  ;;  %v1574_v19 = vor.u32 %v1573_v26, %v1572_v46  ;;  %v1577_v49 = vor.u32 %v1576_v18, %v1575_v9  ;;  %v5761_v11 = vshll.u32 %v1557_v7, 8 }
 0x35f   :  { %v1428_v28 = vsel %vm1345_vm3, %v1427_v6, %v1426_v20  ;;  %v3936_v36 = vmin.u32 %v1512_v24, %v5730_v56  ;;  %v1580_v14 = vor.u32 %v1579_v47, %v1578_v41  ;;  %v1655_v30 = vand.u32 2139095040, %v5745_v34 }
 0x360   :  { %v1431_v3 = vsel %vm5652_vm2, %v5397_v12, %v1428_v28  ;;  %v1532_v31 = vsub.s32 4, %v5705_v42  ;;  %v1565_v48 = vshrl.u32 %v4185_v16, %v1564_v1  ;;  %vm1581_vm8 = vcmp.lt.s32.totalorder %v5734_v51, 1 }
 0x361   :  { %4135 = vcosq.f32 %v1431_v3  ;;  %v1514_v55 = vclz %v3936_v36  ;;  %vm5769_vm4 = vcmp.le.f32.partialorder %v1446_v17, 0.7853982  ;;  %vm1583_vm1 = vcmp.lt.s32.totalorder %v5734_v51, 3 }
 0x362   :  { %4137 = vsinq.f32 %v1431_v3  ;;  %vm1584_vm3 = vcmp.lt.s32.totalorder %v5734_v51, 4  ;;  %v1589_v2 = vsel %vm1581_vm8, %v1568_v8, %v1571_v59  ;;  %v1593_v1 = vsel %vm1581_vm8, %v1571_v59, %v1574_v19 }
 0x363   :  { %v3937_v33 = vadd.s32 4294967294, %v1514_v55  ;;  %v1586_v53 = vsel %vm1584_vm3, %v1574_v19, 2102212464  ;;  %v1590_v35 = vsel %vm1584_vm3, %v1577_v49, 920167782  ;;  %vm1441_vm10 = vcmp.eq.s32.totalorder %v5723_v4, 2 }
 0x364   :  { %v1594_v62 = vsel %vm1584_vm3, %v1580_v14, 1326507024  ;;  %vm1582_vm14 = vcmp.lt.s32.totalorder %v5734_v51, 2  ;;  %v1591_v17 = vsel %vm1583_vm1, %v1574_v19, %v1590_v35  ;;  %vm1438_vm6 = vcmp.eq.s32.totalorder %v5723_v4, 0 }
 0x365   :  { %vm3938_vm2 = vcmp.lt.s32.totalorder %v3937_v33, 0  ;;  %v1595_v29 = vsel %vm1583_vm1, %v1577_v49, %v1594_v62  ;;  %v1533_v20 = vsel %vm1448_vm13, %v1532_v31, %v5705_v42  ;;  %v1592_v38 = vsel %vm1582_vm14, %v1589_v2, %v1591_v17 }
 0x366   :  { %v1517_v7 = vsel %vm3938_vm2, 0, %v3937_v33  ;;  %v1596_v15 = vsel %vm1582_vm14, %v1593_v1, %v1595_v29  ;;  %vm1437_vm5 = vcmp.lt.s32.totalorder %v5723_v4, 2  ;;  %vm3094_vm9 = vcmp.lt.s32.totalorder %v5725_v32, 2 }
 0x367   :  { %v1518_v26 = vsub.s32 32, %v1517_v7  ;;  %v1522_v18 = vsub.s32 4294967266, %v1517_v7  ;;  %v1585_v6 = vsel %vm1581_vm8, %v1565_v48, %v1568_v8  ;;  %v1587_v24 = vsel %vm1583_vm1, %v1571_v59, %v1586_v53 }
 0x368   :  { %vm1435_vm12 = vweird.f32 %v5397_v12  ;;  %v5801_v42 = vmul.u32.u64.low %v5761_v11, %v1596_v15  ;;  %v5802_v54 = vmul.u32.u64.high %v5761_v11, %v1596_v15, %v5801_v42  ;;  %v1519_v41 = vshll.u32 %v5730_v56, %v1517_v7 }
 0x369   :  { %v5805_v46 = vmul.u32.u64.low %v5761_v11, %v1592_v38  ;;  %v5806_v9 = vmul.u32.u64.high %v5761_v11, %v1592_v38, %v5805_v46  ;;  %v1520_v47 = vshrl.u32 %v5728_v37, %v1518_v26  ;;  %v1523_v28 = vadd.s32 127, %v1522_v18 }
 0x36a   :  { %v1656_v36 = vshrl.u32 %v1655_v30, 23  ;;  %vm3095_vm7 = vcmp.eq.s32.totalorder %v5725_v32, 0  ;;  %vm3098_vm8 = vcmp.eq.s32.totalorder %v5725_v32, 2  ;;  %v1588_v8 = vsel %vm1582_vm14, %v1585_v6, %v1587_v24 }
 0x36b   :  { %vm6464_vm1 = vcmask 121856   ;;  %v4136_v3 = vpop.eup %4135  ;;  %v1521_v19 = vor.u32 %v1520_v47, %v1519_v41  ;;  %v1524_v49 = vshll.u32 %v1523_v28, 23  ;;  %v1652_v56 = vand.u32 2147483647, %v5745_v34 }
 0x36c   :  { %v5817_v59 = vsel %vm6464_vm1, %v5717_v10, %v456_v61  ;;  %v3943_v14 = vadd.s32 4294967169, %v1656_v36  ;;  %v4138_v37 = vpop.eup %4137  ;;  %v1442_v55 = vxor.u32 2147483648, %v4136_v3  ;;  %v1535_v30 = vsel %vm5769_vm4, 0, %v1533_v20 }
 0x36d   :  { %vm1606_vm3 = vc.u32 %v5802_v54, %v5805_v46  ;;  %v1607_v51 = vadd.s32 1, %v5806_v9  ;;  %v1439_v31 = vxor.u32 2147483648, %v4138_v37  ;;  %v1525_v48 = vor.u32 4788187, %v1524_v49 }
 0x36e   :  { %v1528_v10 = vcvt.s32.f32 %v1521_v19  ;;  %v1604_v33 = vmul.u32 %v5761_v11, %v1588_v8  ;;  %v1443_v2 = vsel %vm1441_vm10, %v1442_v55, %v4138_v37  ;;  %v3100_v53 = vsel %vm3098_vm8, %v1442_v55, %v4138_v37 }
 0x36f   :  { %v1608_v35 = vsel %vm1606_vm3, %v1607_v51, %v5806_v9  ;;  %v1662_v1 = vadd.s32 1, %v3943_v14  ;;  %v1440_v62 = vsel %vm1438_vm6, %v4136_v3, %v1439_v31  ;;  %v3097_v17 = vsel %vm3095_vm7, %v4136_v3, %v1439_v31 }
 0x370   :  { %v1526_v29 = vand.u32 2147483647, %v1525_v48  ;;  %v1609_v7 = vadd.s32 %v1608_v35, %v1604_v33  ;;  %v1444_v11 = vsel %vm1437_vm5, %v1440_v62, %v1443_v2  ;;  %v3101_v20 = vsel %vm3094_vm9, %v3097_v17, %v3100_v53 }
 0x371   :  { %vm1663_vm10 = vcmp.gt.s32.totalorder %v1662_v1, 0  ;;  %v5841_v38 = vmul.f32 %v5741_v27, %v5817_v59  ;;  %v1445_v15 = vsel %vm1435_vm12, nan, %v1444_v11  ;;  %v3102_v26 = vsel %vm1435_vm12, nan, %v3101_v20 }
 0x372   :  { %v1529_v18 = vmul.f32 %v1528_v10, %v1526_v29  ;;  %v1610_v6 = vadd.s32 536870912, %v1609_v7  ;;  %v3845_v4 = vsel %vm3836_vm11, %v1445_v15, %v3102_v26  ;;  %v3196_v24 = vadd.s32 3, %v1535_v30 }
 0x373   :  { %v1664_v61 = vsel %vm1663_vm10, %v1662_v1, 0  ;;  %v3869_v32 = vsel %vm3860_vm15, %v5386_v13, %v3845_v4  ;;  %v1659_v41 = vand.u32 8388607, %v1652_v56  ;;  %vm6465_vm2 = vcmask 515072  }
 0x374   :  { %v1530_v42 = vxor.u32 2147483648, %v1529_v18  ;;  %v1611_v9 = vshrl.u32 %v1610_v6, 30  ;;  %3886 = vst.msk [vmem:[%s6419_s2 + $0x40] sm:$0xff] %vm6465_vm2, %v3869_v32  ;;  %v1666_v12 = vand.u32 31, %v1664_v61  ;;  %v1758_v47 = vand.u32 2139095040, %v5841_v38 }
 0x375   :  { %v5864_v8 = vand.u32 3, %v1535_v30  ;;  %vm6429_vm14 = vcmp.lt.s32.totalorder %v5616_v60, 0  ;;  %v5867_v19 = vand.u32 3, %v3196_v24  ;;  %v1660_v14 = vor.u32 8388608, %v1659_v41 }
 0x376   :  { %v1531_v28 = vsel %vm1448_vm13, %v1530_v42, %v1529_v18  ;;  %v1612_v36 = vshll.u32 %v1611_v9, 30  ;;  %v1667_v3 = vsub.s32 32, %v1666_v12  ;;  %v5871_v37 = vshrl.u32 %v1664_v61, 5 }
 0x377   :  { %v1534_v13 = vsel %vm5769_vm4, %v5473_v45, %v1531_v28  ;;  %v1759_v51 = vshrl.u32 %v1758_v47, 23  ;;  %v1635_v31 = vsub.s32 4, %v1611_v9  ;;  %v1669_v30 = vshll.u32 %v4185_v16, %v1666_v12 }
 0x378   :  { %4139 = vcosq.f32 %v1534_v13  ;;  %v5869_v49 = vsub.s32 %v1609_v7, %v1612_v36  ;;  %v1670_v55 = vshrl.u32 %v6436_v44, %v1667_v3  ;;  %v1673_v48 = vshrl.u32 %v4187_v21, %v1667_v3 }
 0x379   :  { %4141 = vsinq.f32 %v1534_v13  ;;  %v1675_v10 = vshll.u32 %v4187_v21, %v1666_v12  ;;  %v1676_v33 = vshrl.u32 %v4188_v23, %v1667_v3  ;;  %v1678_v2 = vshll.u32 %v4188_v23, %v1666_v12 }
 0x37a   :  { %v1615_v0 = vsub.s32 0, %v5869_v49  ;;  %v1679_v53 = vshrl.u32 %v4189_v25, %v1667_v3  ;;  %vm1544_vm13 = vcmp.eq.s32.totalorder %v5864_v8, 2  ;;  %vm3202_vm4 = vcmp.eq.s32.totalorder %v5867_v19, 2 }
 0x37b   :  { %v1672_v1 = vshll.u32 %v6436_v44, %v1666_v12  ;;  %v1755_v62 = vand.u32 2147483647, %v5841_v38  ;;  %vm1541_vm6 = vcmp.eq.s32.totalorder %v5864_v8, 0  ;;  %vm3199_vm5 = vcmp.eq.s32.totalorder %v5867_v19, 0 }
 0x37c   :  { %v3940_v35 = vmin.u32 %v1615_v0, %v5869_v49  ;;  %v1605_v17 = vadd.s32 %v5805_v46, %v5802_v54  ;;  %v1671_v29 = vor.u32 %v1670_v55, %v1669_v30  ;;  %v1677_v7 = vor.u32 %v1676_v33, %v1675_v10 }
 0x37d   :  { %v1680_v11 = vor.u32 %v1679_v53, %v1678_v2  ;;  %vm1540_vm9 = vcmp.lt.s32.totalorder %v5864_v8, 2  ;;  %vm3198_vm12 = vcmp.lt.s32.totalorder %v5867_v19, 2  ;;  %v1674_v15 = vor.u32 %v1673_v48, %v1672_v1 }
 0x37e   :  { %v1617_v20 = vclz %v3940_v35  ;;  %v1681_v26 = vshll.u32 %v4189_v25, %v1666_v12  ;;  %v1682_v18 = vshrl.u32 %v6437_v22, %v1667_v3  ;;  %vm1538_vm7 = vweird.f32 %v5473_v45 }
 0x37f   :  { %v1636_v6 = vsel %vm6429_vm14, %v1635_v31, %v1611_v9  ;;  %vm1684_vm8 = vcmp.lt.s32.totalorder %v5871_v37, 1  ;;  %v5898_v54 = vshll.u32 %v1660_v14, 8  ;;  %v3947_v46 = vadd.s32 4294967169, %v1759_v51 }
 0x380   :  { %v3941_v4 = vadd.s32 4294967294, %v1617_v20  ;;  %v1668_v24 = vshrl.u32 %v4185_v16, %v1667_v3  ;;  %v1683_v61 = vor.u32 %v1682_v18, %v1681_v26  ;;  %vm1687_vm1 = vcmp.lt.s32.totalorder %v5871_v37, 4 }
 0x381   :  { %vm5904_vm3 = vcmp.le.f32.partialorder %v1549_v52, 0.7853982  ;;  %vm1685_vm10 = vcmp.lt.s32.totalorder %v5871_v37, 2  ;;  %vm1686_vm2 = vcmp.lt.s32.totalorder %v5871_v37, 3  ;;  %v1689_v42 = vsel %vm1687_vm1, %v1677_v7, 2102212464 }
 0x382   :  { %v1693_v9 = vsel %vm1687_vm1, %v1680_v11, 920167782  ;;  %v4140_v41 = vpop.eup %4139  ;;  %vm3942_vm14 = vcmp.lt.s32.totalorder %v3941_v4, 0  ;;  %v1688_v12 = vsel %vm1684_vm8, %v1668_v24, %v1671_v29  ;;  %v1692_v47 = vsel %vm1684_vm8, %v1671_v29, %v1674_v15 }
 0x383   :  { %v1697_v28 = vsel %vm1687_vm1, %v1683_v61, 1326507024  ;;  %v4142_v36 = vpop.eup %4141  ;;  %v1545_v52 = vxor.u32 2147483648, %v4140_v41  ;;  %v1620_v13 = vsel %vm3942_vm14, 0, %v3941_v4  ;;  %v1690_v3 = vsel %vm1686_vm2, %v1674_v15, %v1689_v42 }
 0x384   :  { %v1696_v14 = vsel %vm1684_vm8, %v1674_v15, %v1677_v7  ;;  %v1542_v55 = vxor.u32 2147483648, %v4142_v36  ;;  %v1621_v51 = vsub.s32 32, %v1620_v13  ;;  %v1625_v0 = vsub.s32 4294967266, %v1620_v13 }
 0x385   :  { %v1694_v31 = vsel %vm1686_vm2, %v1677_v7, %v1693_v9  ;;  %v1546_v30 = vsel %vm1544_vm13, %v1545_v52, %v4142_v36  ;;  %v3204_v48 = vsel %vm3202_vm4, %v1545_v52, %v4142_v36  ;;  %v1622_v10 = vshll.u32 %v5869_v49, %v1620_v13 }
 0x386   :  { %v1698_v33 = vsel %vm1686_vm2, %v1680_v11, %v1697_v28  ;;  %v1543_v2 = vsel %vm1541_vm6, %v4140_v41, %v1542_v55  ;;  %v3201_v53 = vsel %vm3199_vm5, %v4140_v41, %v1542_v55  ;;  %v1623_v35 = vshrl.u32 %v1605_v17, %v1621_v51 }
 0x387   :  { %v1626_v1 = vadd.s32 127, %v1625_v0  ;;  %v1547_v29 = vsel %vm1540_vm9, %v1543_v2, %v1546_v30  ;;  %v3205_v7 = vsel %vm3198_vm12, %v3201_v53, %v3204_v48  ;;  %v1695_v49 = vsel %vm1685_vm10, %v1692_v47, %v1694_v31 }
 0x388   :  { %v1699_v11 = vsel %vm1685_vm10, %v1696_v14, %v1698_v33  ;;  %v1548_v20 = vsel %vm1538_vm7, nan, %v1547_v29  ;;  %v3206_v15 = vsel %vm1538_vm7, nan, %v3205_v7  ;;  %v1624_v17 = vor.u32 %v1623_v35, %v1622_v10 }
 0x389   :  { %v1627_v26 = vshll.u32 %v1626_v1, 23  ;;  %v3846_v8 = vsel %vm3836_vm11, %v1548_v20, %v3206_v15  ;;  %v5946_v19 = vmul.u32.u64.low %v5898_v54, %v1699_v11  ;;  %v5947_v18 = vmul.u32.u64.high %v5898_v54, %v1699_v11, %v5946_v19 }
 0x38a   :  { %v1765_v4 = vadd.s32 1, %v3947_v46  ;;  %v3870_v24 = vsel %vm3860_vm15, %v5463_v63, %v3846_v8  ;;  %v1638_v42 = vsel %vm5904_vm3, 0, %v1636_v6  ;;  %vm6468_vm14 = vcmask 515072   ;;  %v458_v46 = vpop.permute.xlu1 %457  ;;  %v4177_v6 = vld [vmem:[%s6417_s1 + $0x68] sm:$0xff] }
 0x38b   :  { %v1628_v61 = vor.u32 4788187, %v1627_v26  ;;  %3887 = vst.msk [vmem:[%s6419_s2 + $0x48] sm:$0xff] %vm6468_vm14, %v3870_v24  ;;  %v1691_v45 = vsel %vm1685_vm10, %v1688_v12, %v1690_v3  ;;  %v5961_v9 = vmul.u32.u64.low %v5898_v54, %v1695_v49  ;;  %v5962_v41 = vmul.u32.u64.high %v5898_v54, %v1695_v49, %v5961_v9 }
 0x38c   :  { %vm1766_vm13 = vcmp.gt.s32.totalorder %v1765_v4, 0  ;;  %v1631_v47 = vcvt.s32.f32 %v1624_v17  ;;  %v266_v36 = vsel %vm91_vm0, %v4177_v6, %v4593_v39  ;;  %v3300_v52 = vadd.s32 3, %v1638_v42 }
 0x38d   :  { %v1629_v63 = vand.u32 2147483647, %v1628_v61  ;;  %v1767_v28 = vsel %vm1766_vm13, %v1765_v4, 0  ;;  %v1762_v37 = vand.u32 8388607, %v1755_v62  ;;  %v1707_v3 = vmul.u32 %v5898_v54, %v1691_v45 }
 0x38e   :  { %v1769_v12 = vand.u32 31, %v1767_v28  ;;  %vm1709_vm4 = vc.u32 %v5947_v18, %v5961_v9  ;;  %vm6469_vm6 = vcmask 121856   ;;  %v1710_v55 = vadd.s32 1, %v5962_v41 }
 0x38f   :  { %v1632_v13 = vmul.f32 %v1631_v47, %v1629_v63  ;;  %v5976_v14 = vsel %vm6469_vm6, %v266_v36, %v458_v46  ;;  %v5979_v51 = vshrl.u32 %v1767_v28, 5  ;;  %vm6470_vm5 = vcmp.lt.s32.totalorder %v5616_v60, 0 }
 0x390   :  { %v1770_v0 = vsub.s32 32, %v1769_v12  ;;  %v1772_v39 = vshll.u32 %v4185_v16, %v1769_v12  ;;  %v1775_v30 = vshll.u32 %v6436_v44, %v1769_v12  ;;  %v1778_v48 = vshll.u32 %v4187_v21, %v1769_v12 }
 0x391   :  { %v1633_v31 = vxor.u32 2147483648, %v1632_v13  ;;  %v1781_v54 = vshll.u32 %v4188_v23, %v1769_v12  ;;  %v1711_v10 = vsel %vm1709_vm4, %v1710_v55, %v5962_v41  ;;  %v1784_v53 = vshll.u32 %v4189_v25, %v1769_v12 }
 0x392   :  { %v1773_v33 = vshrl.u32 %v6436_v44, %v1770_v0  ;;  %v1776_v2 = vshrl.u32 %v4187_v21, %v1770_v0  ;;  %v1712_v1 = vadd.s32 %v1711_v10, %v1707_v3  ;;  %v1779_v29 = vshrl.u32 %v4188_v23, %v1770_v0 }
 0x393   :  { %v1634_v35 = vsel %vm6470_vm5, %v1633_v31, %v1632_v13  ;;  %v1782_v7 = vshrl.u32 %v4189_v25, %v1770_v0  ;;  %v1785_v15 = vshrl.u32 %v6437_v22, %v1770_v0  ;;  %v1763_v19 = vor.u32 8388608, %v1762_v37 }
 0x394   :  { %v1637_v49 = vsel %vm5904_vm3, %v5616_v60, %v1634_v35  ;;  %v1774_v11 = vor.u32 %v1773_v33, %v1772_v39  ;;  %v1777_v20 = vor.u32 %v1776_v2, %v1775_v30  ;;  %v1713_v17 = vadd.s32 536870912, %v1712_v1 }
 0x395   :  { %4143 = vcosq.f32 %v1637_v49  ;;  %v1780_v26 = vor.u32 %v1779_v29, %v1778_v48  ;;  %v1783_v8 = vor.u32 %v1782_v7, %v1781_v54  ;;  %v1786_v4 = vor.u32 %v1785_v15, %v1784_v53 }
 0x396   :  { %4145 = vsinq.f32 %v1637_v49  ;;  %v5999_v24 = vmul.f32 %v5741_v27, %v5976_v14  ;;  %v1642_v61 = vand.u32 3, %v1638_v42  ;;  %v1714_v45 = vshrl.u32 %v1713_v17, 30 }
 0x397   :  { %vm1787_vm9 = vcmp.lt.s32.totalorder %v5979_v51, 1  ;;  %vm1790_vm12 = vcmp.lt.s32.totalorder %v5979_v51, 4  ;;  %v3301_v32 = vand.u32 3, %v3300_v52  ;;  %vm1789_vm7 = vcmp.lt.s32.totalorder %v5979_v51, 3 }
 0x398   :  { %v1795_v41 = vsel %vm1787_vm9, %v1774_v11, %v1777_v20  ;;  %v1796_v46 = vsel %vm1790_vm12, %v1783_v8, 920167782  ;;  %v1715_v63 = vshll.u32 %v1714_v45, 30  ;;  %vm1788_vm8 = vcmp.lt.s32.totalorder %v5979_v51, 2 }
 0x399   :  { %v1797_v47 = vsel %vm1789_vm7, %v1780_v26, %v1796_v46  ;;  %v1799_v42 = vsel %vm1787_vm9, %v1777_v20, %v1780_v26  ;;  %v1800_v6 = vsel %vm1790_vm12, %v1786_v4, 1326507024  ;;  %v1803_v36 = vshll.u32 %v1763_v19, 8 }
 0x39a   :  { %v1798_v28 = vsel %vm1788_vm8, %v1795_v41, %v1797_v47  ;;  %v1861_v52 = vand.u32 2139095040, %v5999_v24  ;;  %v6014_v37 = vsub.s32 %v1712_v1, %v1715_v63  ;;  %v1771_v12 = vshrl.u32 %v4185_v16, %v1770_v0 }
 0x39b   :  { %v1792_v13 = vsel %vm1790_vm12, %v1780_v26, 2102212464  ;;  %v1801_v3 = vsel %vm1789_vm7, %v1783_v8, %v1800_v6  ;;  %vm1641_vm1 = vweird.f32 %v5616_v60  ;;  %vm1654_vm3 = vcmp.lt.s32.totalorder %v5745_v34, 0  ;;  %v460_v60 = vpop.permute.xlu0 %459 }
 0x39c   :  { %v1802_v55 = vsel %vm1788_vm8, %v1799_v42, %v1801_v3  ;;  %v6023_v39 = vmul.u32.u64.low %v1803_v36, %v1798_v28  ;;  %v6024_v31 = vmul.u32.u64.high %v1803_v36, %v1798_v28, %v6023_v39  ;;  %vm1643_vm10 = vcmp.lt.s32.totalorder %v1642_v61, 2  ;;  %v4178_v3 = vld [vmem:[%s6417_s1 + $0x70] sm:$0xff] }
 0x39d   :  { %vm1644_vm2 = vcmp.eq.s32.totalorder %v1642_v61, 0  ;;  %v1718_v30 = vsub.s32 0, %v6014_v37  ;;  %v1791_v0 = vsel %vm1787_vm9, %v1771_v12, %v1774_v11  ;;  %vm6032_vm14 = vcmp.le.f32.partialorder %v1652_v56, 0.7853982 }
 0x39e   :  { %v1793_v54 = vsel %vm1789_vm7, %v1777_v20, %v1792_v13  ;;  %v6038_v10 = vmul.u32.u64.low %v1803_v36, %v1802_v55  ;;  %v6039_v33 = vmul.u32.u64.high %v1803_v36, %v1802_v55, %v6038_v10  ;;  %v1862_v2 = vshrl.u32 %v1861_v52, 23 }
 0x39f   :  { %v4144_v53 = vpop.eup %4143  ;;  %vm1647_vm13 = vcmp.eq.s32.totalorder %v1642_v61, 2  ;;  %vm3302_vm4 = vcmp.lt.s32.totalorder %v3301_v32, 2  ;;  %v3944_v35 = vmin.u32 %v1718_v30, %v6014_v37  ;;  %v1738_v1 = vsub.s32 4, %v1714_v45 }
 0x3a0   :  { %v4146_v29 = vpop.eup %4145  ;;  %v1648_v7 = vxor.u32 2147483648, %v4144_v53  ;;  %vm3303_vm6 = vcmp.eq.s32.totalorder %v3301_v32, 0  ;;  %vm3306_vm5 = vcmp.eq.s32.totalorder %v3301_v32, 2  ;;  %v1708_v56 = vadd.s32 %v5961_v9, %v5947_v18 }
 0x3a1   :  { %v1645_v49 = vxor.u32 2147483648, %v4146_v29  ;;  %v1720_v11 = vclz %v3944_v35  ;;  %v1794_v20 = vsel %vm1788_vm8, %v1791_v0, %v1793_v54  ;;  %v1813_v15 = vadd.s32 1, %v6024_v31 }
 0x3a2   :  { %v1649_v17 = vsel %vm1647_vm13, %v1648_v7, %v4146_v29  ;;  %v3308_v26 = vsel %vm3306_vm5, %v1648_v7, %v4146_v29  ;;  %v1858_v8 = vand.u32 2147483647, %v5999_v24  ;;  %v3951_v19 = vadd.s32 4294967169, %v1862_v2 }
 0x3a3   :  { %v1646_v4 = vsel %vm1644_vm2, %v4144_v53, %v1645_v49  ;;  %v3305_v41 = vsel %vm3303_vm6, %v4144_v53, %v1645_v49  ;;  %v3945_v46 = vadd.s32 4294967294, %v1720_v11  ;;  %v1739_v63 = vsel %vm1654_vm3, %v1738_v1, %v1714_v45 }
 0x3a4   :  { %v1650_v18 = vsel %vm1643_vm10, %v1646_v4, %v1649_v17  ;;  %v3309_v9 = vsel %vm3302_vm4, %v3305_v41, %v3308_v26  ;;  %v1810_v51 = vmul.u32 %v1803_v36, %v1794_v20  ;;  %vm1812_vm9 = vc.u32 %v6039_v33, %v6023_v39 }
 0x3a5   :  { %v1651_v47 = vsel %vm1641_vm1, nan, %v1650_v18  ;;  %v3310_v42 = vsel %vm1641_vm1, nan, %v3309_v9  ;;  %vm3946_vm12 = vcmp.lt.s32.totalorder %v3945_v46, 0  ;;  %v1814_v28 = vsel %vm1812_vm9, %v1813_v15, %v6024_v31 }
 0x3a6   :  { %v3847_v45 = vsel %vm3836_vm11, %v1651_v47, %v3310_v42  ;;  %v1723_v61 = vsel %vm3946_vm12, 0, %v3945_v46  ;;  %v1815_v6 = vadd.s32 %v1814_v28, %v1810_v51  ;;  %v1868_v32 = vadd.s32 1, %v3951_v19 }
 0x3a7   :  { %v3871_v36 = vsel %vm3860_vm15, %v5589_v58, %v3847_v45  ;;  %v1724_v52 = vsub.s32 32, %v1723_v61  ;;  %v1728_v12 = vsub.s32 4294967266, %v1723_v61  ;;  %v1741_v13 = vsel %vm6032_vm14, 0, %v1739_v63 }
 0x3a8   :  { %v267_v55 = vsel %vm91_vm0, %v4178_v3, %v4595_v40  ;;  %vm6473_vm7 = vcmask 515072   ;;  %v1816_v31 = vadd.s32 536870912, %v1815_v6  ;;  %v1865_v58 = vand.u32 8388607, %v1858_v8 }
 0x3a9   :  { %3888 = vst.msk [vmem:[%s6419_s2 + $0x50] sm:$0xff] %vm6473_vm7, %v3871_v36  ;;  %vm1869_vm8 = vcmp.gt.s32.totalorder %v1868_v32, 0  ;;  %v1725_v30 = vshll.u32 %v6014_v37, %v1723_v61  ;;  %v1726_v0 = vshrl.u32 %v1708_v56, %v1724_v52  ;;  %v1729_v54 = vadd.s32 127, %v1728_v12 }
 0x3aa   :  { %v1870_v10 = vsel %vm1869_vm8, %v1868_v32, 0  ;;  %v3404_v2 = vadd.s32 3, %v1741_v13  ;;  %v6079_v53 = vshrl.u32 %v1816_v31, 30  ;;  %vm6474_vm1 = vcmask 121856  }
 0x3ab   :  { %v1872_v35 = vand.u32 31, %v1870_v10  ;;  %v6082_v40 = vsel %vm6474_vm1, %v267_v55, %v460_v60  ;;  %v1727_v1 = vor.u32 %v1726_v0, %v1725_v30  ;;  %v1730_v29 = vshll.u32 %v1729_v54, 23 }
 0x3ac   :  { %v1818_v7 = vshll.u32 %v6079_v53, 30  ;;  %v1866_v49 = vor.u32 8388608, %v1865_v58  ;;  %v6087_v37 = vmul.f32 %v5741_v27, %v6082_v40  ;;  %v6089_v56 = vand.u32 3, %v1741_v13 }
 0x3ad   :  { %v1873_v11 = vsub.s32 32, %v1872_v35  ;;  %v1731_v20 = vor.u32 4788187, %v1730_v29  ;;  %v6091_v15 = vand.u32 3, %v3404_v2  ;;  %v1734_v19 = vcvt.s32.f32 %v1727_v1 }
 0x3ae   :  { %v6093_v17 = vsub.s32 %v1815_v6, %v1818_v7  ;;  %v1811_v4 = vadd.s32 %v6023_v39, %v6039_v33  ;;  %v1871_v63 = vshrl.u32 %v1870_v10, 5  ;;  %v6100_v9 = vshll.u32 %v1866_v49, 8 }
 0x3af   :  { %v1732_v26 = vand.u32 2147483647, %v1731_v20  ;;  %v1876_v41 = vshrl.u32 %v6436_v44, %v1873_v11  ;;  %v1882_v18 = vshrl.u32 %v4188_v23, %v1873_v11  ;;  %v1875_v47 = vshll.u32 %v4185_v16, %v1872_v35 }
 0x3b0   :  { %v1821_v46 = vsub.s32 0, %v6093_v17  ;;  %v1879_v42 = vshrl.u32 %v4187_v21, %v1873_v11  ;;  %v1964_v28 = vand.u32 2139095040, %v6087_v37  ;;  %v1841_v39 = vsub.s32 4, %v6079_v53 }
 0x3b1   :  { %v1735_v51 = vmul.f32 %v1734_v19, %v1732_v26  ;;  %v1878_v33 = vshll.u32 %v6436_v44, %v1872_v35  ;;  %v1881_v61 = vshll.u32 %v4187_v21, %v1872_v35  ;;  %v1874_v32 = vshrl.u32 %v4185_v16, %v1873_v11 }
 0x3b2   :  { %v3948_v45 = vmin.u32 %v1821_v46, %v6093_v17  ;;  %v1877_v36 = vor.u32 %v1876_v41, %v1875_v47  ;;  %v1885_v52 = vshrl.u32 %v4189_v25, %v1873_v11  ;;  %v1884_v60 = vshll.u32 %v4188_v23, %v1872_v35 }
 0x3b3   :  { %v1736_v6 = vxor.u32 2147483648, %v1735_v51  ;;  %v1883_v13 = vor.u32 %v1882_v18, %v1881_v61  ;;  %v1888_v3 = vshrl.u32 %v6437_v22, %v1873_v11  ;;  %v1880_v31 = vor.u32 %v1879_v42, %v1878_v33 }
 0x3b4   :  { %v1823_v12 = vclz %v3948_v45  ;;  %v1887_v58 = vshll.u32 %v4189_v25, %v1872_v35  ;;  %vm1890_vm10 = vcmp.lt.s32.totalorder %v1871_v63, 1  ;;  %v1886_v54 = vor.u32 %v1885_v52, %v1884_v60 }
 0x3b5   :  { %v1737_v55 = vsel %vm1654_vm3, %v1736_v6, %v1735_v51  ;;  %vm1891_vm2 = vcmp.lt.s32.totalorder %v1871_v63, 2  ;;  %vm1757_vm13 = vcmp.lt.s32.totalorder %v5841_v38, 0  ;;  %vm1892_vm4 = vcmp.lt.s32.totalorder %v1871_v63, 3 }
 0x3b6   :  { %v1740_v30 = vsel %vm6032_vm14, %v5745_v34, %v1737_v55  ;;  %v3949_v0 = vadd.s32 4294967294, %v1823_v12  ;;  %v1889_v10 = vor.u32 %v1888_v3, %v1887_v58  ;;  %vm1893_vm6 = vcmp.lt.s32.totalorder %v1871_v63, 4 }
 0x3b7   :  { %4147 = vcosq.f32 %v1740_v30  ;;  %v1894_v2 = vsel %vm1890_vm10, %v1874_v32, %v1877_v36  ;;  %v1895_v35 = vsel %vm1893_vm6, %v1883_v13, 2102212464  ;;  %v1898_v48 = vsel %vm1890_vm10, %v1877_v36, %v1880_v31 }
 0x3b8   :  { %4149 = vsinq.f32 %v1740_v30  ;;  %vm3950_vm5 = vcmp.lt.s32.totalorder %v3949_v0, 0  ;;  %v1896_v29 = vsel %vm1892_vm4, %v1880_v31, %v1895_v35  ;;  %v1899_v7 = vsel %vm1893_vm6, %v1886_v54, 920167782 }
 0x3b9   :  { %v1826_v1 = vsel %vm3950_vm5, 0, %v3949_v0  ;;  %vm6127_vm3 = vcmp.le.f32.partialorder %v1755_v62, 0.7853982  ;;  %v1902_v19 = vsel %vm1890_vm10, %v1880_v31, %v1883_v13  ;;  %v1897_v41 = vsel %vm1891_vm2, %v1894_v2, %v1896_v29 }
 0x3ba   :  { %v1827_v11 = vsub.s32 32, %v1826_v1  ;;  %v1828_v20 = vshll.u32 %v6093_v17, %v1826_v1  ;;  %v1831_v26 = vsub.s32 4294967266, %v1826_v1  ;;  %v1900_v46 = vsel %vm1892_vm4, %v1883_v13, %v1899_v7 }
 0x3bb   :  { %v1903_v18 = vsel %vm1893_vm6, %v1889_v10, 1326507024  ;;  %v1965_v51 = vshrl.u32 %v1964_v28, 23  ;;  %v1901_v62 = vsel %vm1891_vm2, %v1898_v48, %v1900_v46  ;;  %vm1746_vm14 = vcmp.lt.s32.totalorder %v6089_v56, 2 }
 0x3bc   :  { %v1829_v47 = vshrl.u32 %v1811_v4, %v1827_v11  ;;  %v1832_v42 = vadd.s32 127, %v1831_v26  ;;  %v1904_v45 = vsel %vm1892_vm4, %v1886_v54, %v1903_v18  ;;  %vm1744_vm9 = vweird.f32 %v5745_v34  ;;  %v462_v34 = vpop.permute.xlu1 %461 }
 0x3bd   :  { %v1905_v17 = vsel %vm1891_vm2, %v1902_v19, %v1904_v45  ;;  %v6141_v33 = vmul.u32.u64.low %v6100_v9, %v1901_v62  ;;  %v6142_v61 = vmul.u32.u64.high %v6100_v9, %v1901_v62, %v6141_v33  ;;  %v3955_v6 = vadd.s32 4294967169, %v1965_v51 }
 0x3be   :  { %v1830_v32 = vor.u32 %v1829_v47, %v1828_v20  ;;  %v1833_v28 = vshll.u32 %v1832_v42, 23  ;;  %v6147_v4 = vmul.u32.u64.low %v6100_v9, %v1905_v17  ;;  %v6148_v36 = vmul.u32.u64.high %v6100_v9, %v1905_v17, %v6147_v4  ;;  %v4179_v17 = vld [vmem:[%s6417_s1 + $0x78] sm:$0xff] }
 0x3bf   :  { %vm1747_vm12 = vcmp.eq.s32.totalorder %v6089_v56, 0  ;;  %vm1750_vm7 = vcmp.eq.s32.totalorder %v6089_v56, 2  ;;  %vm3406_vm8 = vcmp.lt.s32.totalorder %v6091_v15, 2  ;;  %v1971_v63 = vadd.s32 1, %v3955_v6 }
 0x3c0   :  { %vm3407_vm1 = vcmp.eq.s32.totalorder %v6091_v15, 0  ;;  %vm3410_vm10 = vcmp.eq.s32.totalorder %v6091_v15, 2  ;;  %v1834_v52 = vor.u32 4788187, %v1833_v28  ;;  %v1842_v12 = vsel %vm1757_vm13, %v1841_v39, %v6079_v53 }
 0x3c1   :  { %v4148_v13 = vpop.eup %4147  ;;  %v1913_v60 = vmul.u32 %v6100_v9, %v1897_v41  ;;  %v1916_v3 = vadd.s32 1, %v6142_v61  ;;  %v1961_v55 = vand.u32 2147483647, %v6087_v37  ;;  %vm1972_vm2 = vcmp.gt.s32.totalorder %v1971_v63, 0 }
 0x3c2   :  { %v4150_v31 = vpop.eup %4149  ;;  %v1751_v58 = vxor.u32 2147483648, %v4148_v13  ;;  %v1835_v30 = vand.u32 2147483647, %v1834_v52  ;;  %v1837_v0 = vcvt.s32.f32 %v1830_v32  ;;  %vm1915_vm4 = vc.u32 %v6148_v36, %v6141_v33 }
 0x3c3   :  { %v1748_v54 = vxor.u32 2147483648, %v4150_v31  ;;  %v1844_v10 = vsel %vm6127_vm3, 0, %v1842_v12  ;;  %v1917_v53 = vsel %vm1915_vm4, %v1916_v3, %v6142_v61  ;;  %v1973_v39 = vsel %vm1972_vm2, %v1971_v63, 0 }
 0x3c4   :  { %v1752_v9 = vsel %vm1750_vm7, %v1751_v58, %v4150_v31  ;;  %v3412_v2 = vsel %vm3410_vm10, %v1751_v58, %v4150_v31  ;;  %v1838_v35 = vmul.f32 %v1837_v0, %v1835_v30  ;;  %v1918_v1 = vadd.s32 %v1917_v53, %v1913_v60 }
 0x3c5   :  { %v1749_v29 = vsel %vm1747_vm12, %v4148_v13, %v1748_v54  ;;  %v3409_v48 = vsel %vm3407_vm1, %v4148_v13, %v1748_v54  ;;  %v1968_v7 = vand.u32 8388607, %v1961_v55  ;;  %v1975_v11 = vand.u32 31, %v1973_v39 }
 0x3c6   :  { %v1753_v20 = vsel %vm1746_vm14, %v1749_v29, %v1752_v9  ;;  %v3413_v26 = vsel %vm3406_vm8, %v3409_v48, %v3412_v2  ;;  %v1839_v19 = vxor.u32 2147483648, %v1838_v35  ;;  %v1919_v41 = vadd.s32 536870912, %v1918_v1 }
 0x3c7   :  { %v1754_v46 = vsel %vm1744_vm9, nan, %v1753_v20  ;;  %v3414_v18 = vsel %vm1744_vm9, nan, %v3413_v26  ;;  %v3508_v51 = vadd.s32 3, %v1844_v10  ;;  %v1976_v47 = vsub.s32 32, %v1975_v11 }
 0x3c8   :  { %v3848_v42 = vsel %vm3836_vm11, %v1754_v46, %v3414_v18  ;;  %v1840_v56 = vsel %vm1757_vm13, %v1839_v19, %v1838_v35  ;;  %v6188_v62 = vshrl.u32 %v1919_v41, 30  ;;  %v268_v61 = vsel %vm91_vm0, %v4179_v17, %v4605_v43 }
 0x3c9   :  { %v3872_v15 = vsel %vm3860_vm15, %v5721_v5, %v3848_v42  ;;  %v1843_v45 = vsel %vm6127_vm3, %v5841_v38, %v1840_v56  ;;  %vm6477_vm6 = vcmask 515072   ;;  %v6205_v6 = vand.u32 3, %v1844_v10 }
 0x3ca   :  { %3889 = vst.msk [vmem:[%s6419_s2 + $0x58] sm:$0xff] %vm6477_vm6, %v3872_v15  ;;  %4151 = vcosq.f32 %v1843_v45  ;;  %v1921_v5 = vshll.u32 %v6188_v62, 30  ;;  %v6208_v49 = vand.u32 3, %v3508_v51  ;;  %v1969_v32 = vor.u32 8388608, %v1968_v7 }
 0x3cb   :  { %4153 = vsinq.f32 %v1843_v45  ;;  %v1985_v28 = vshrl.u32 %v4188_v23, %v1976_v47  ;;  %v1979_v43 = vshrl.u32 %v6436_v44, %v1976_v47  ;;  %v1982_v63 = vshrl.u32 %v4187_v21, %v1976_v47 }
 0x3cc   :  { %v6211_v4 = vsub.s32 %v1918_v1, %v1921_v5  ;;  %vm6478_vm0 = vcmask 121856   ;;  %v6218_v12 = vshrl.u32 %v1973_v39, 5  ;;  %v1984_v13 = vshll.u32 %v4187_v21, %v1975_v11 }
 0x3cd   :  { %v6216_v52 = vsel %vm6478_vm0, %v268_v61, %v462_v34  ;;  %v1987_v60 = vshll.u32 %v4188_v23, %v1975_v11  ;;  %v1988_v3 = vshrl.u32 %v4189_v25, %v1976_v47  ;;  %v1978_v58 = vshll.u32 %v4185_v16, %v1975_v11 }
 0x3ce   :  { %v1924_v31 = vsub.s32 0, %v6211_v4  ;;  %v1981_v30 = vshll.u32 %v6436_v44, %v1975_v11  ;;  %v1991_v0 = vshrl.u32 %v6437_v22, %v1976_v47  ;;  %vm1850_vm13 = vcmp.eq.s32.totalorder %v6205_v6, 0 }
 0x3cf   :  { %vm1853_vm5 = vcmp.eq.s32.totalorder %v6205_v6, 2  ;;  %v1986_v54 = vor.u32 %v1985_v28, %v1984_v13  ;;  %v1989_v10 = vor.u32 %v1988_v3, %v1987_v60  ;;  %v1990_v53 = vshll.u32 %v4189_v25, %v1975_v11 }
 0x3d0   :  { %vm1849_vm3 = vcmp.lt.s32.totalorder %v6205_v6, 2  ;;  %vm3510_vm14 = vcmp.lt.s32.totalorder %v6208_v49, 2  ;;  %vm3511_vm9 = vcmp.eq.s32.totalorder %v6208_v49, 0  ;;  %v3952_v39 = vmin.u32 %v1924_v31, %v6211_v4 }
 0x3d1   :  { %v1980_v9 = vor.u32 %v1979_v43, %v1978_v58  ;;  %v1983_v2 = vor.u32 %v1982_v63, %v1981_v30  ;;  %vm1847_vm12 = vweird.f32 %v5841_v38  ;;  %vm3514_vm7 = vcmp.eq.s32.totalorder %v6208_v49, 2 }
 0x3d2   :  { %v1992_v35 = vor.u32 %v1991_v0, %v1990_v53  ;;  %vm1996_vm8 = vcmp.lt.s32.totalorder %v6218_v12, 4  ;;  %v6239_v1 = vmul.f32 %v5741_v27, %v6216_v52  ;;  %v1914_v29 = vadd.s32 %v6141_v33, %v6148_v36 }
 0x3d3   :  { %v1926_v48 = vclz %v3952_v39  ;;  %v2002_v7 = vsel %vm1996_vm8, %v1989_v10, 920167782  ;;  %v6245_v11 = vshll.u32 %v1969_v32, 8  ;;  %v1977_v20 = vshrl.u32 %v4185_v16, %v1976_v47 }
 0x3d4   :  { %vm1993_vm1 = vcmp.lt.s32.totalorder %v6218_v12, 1  ;;  %vm1995_vm10 = vcmp.lt.s32.totalorder %v6218_v12, 3  ;;  %v1998_v26 = vsel %vm1996_vm8, %v1986_v54, 2102212464  ;;  %v4152_v27 = vpop.eup %4151  ;;  %vm1994_vm2 = vcmp.lt.s32.totalorder %v6218_v12, 2 }
 0x3d5   :  { %v3953_v19 = vadd.s32 4294967294, %v1926_v48  ;;  %v2001_v33 = vsel %vm1993_vm1, %v1980_v9, %v1983_v2  ;;  %v2003_v36 = vsel %vm1995_vm10, %v1986_v54, %v2002_v7  ;;  %v4154_v41 = vpop.eup %4153  ;;  %v1854_v46 = vxor.u32 2147483648, %v4152_v27 }
 0x3d6   :  { %v1997_v18 = vsel %vm1993_vm1, %v1977_v20, %v1980_v9  ;;  %v2005_v51 = vsel %vm1993_vm1, %v1983_v2, %v1986_v54  ;;  %v2006_v47 = vsel %vm1996_vm8, %v1992_v35, 1326507024  ;;  %v1851_v42 = vxor.u32 2147483648, %v4154_v41 }
 0x3d7   :  { %vm3954_vm4 = vcmp.lt.s32.totalorder %v3953_v19, 0  ;;  %v1999_v56 = vsel %vm1995_vm10, %v1983_v2, %v1998_v26  ;;  %v2007_v15 = vsel %vm1995_vm10, %v1989_v10, %v2006_v47  ;;  %v1855_v45 = vsel %vm1853_vm5, %v1854_v46, %v4154_v41 }
 0x3d8   :  { %v3516_v34 = vsel %vm3514_vm7, %v1854_v46, %v4154_v41  ;;  %v1929_v17 = vsel %vm3954_vm4, 0, %v3953_v19  ;;  %v2004_v61 = vsel %vm1994_vm2, %v2001_v33, %v2003_v36  ;;  %v1852_v5 = vsel %vm1850_vm13, %v4152_v27, %v1851_v42 }
 0x3d9   :  { %v3513_v32 = vsel %vm3511_vm9, %v4152_v27, %v1851_v42  ;;  %v1930_v28 = vsub.s32 32, %v1929_v17  ;;  %v2008_v43 = vsel %vm1994_vm2, %v2005_v51, %v2007_v15  ;;  %v1856_v63 = vsel %vm1849_vm3, %v1852_v5, %v1855_v45 }
 0x3da   :  { %v3517_v13 = vsel %vm3510_vm14, %v3513_v32, %v3516_v34  ;;  %v1931_v60 = vshll.u32 %v6211_v4, %v1929_v17  ;;  %v1934_v3 = vsub.s32 4294967266, %v1929_v17  ;;  %v1857_v31 = vsel %vm1847_vm12, nan, %v1856_v63 }
 0x3db   :  { %v3518_v58 = vsel %vm1847_vm12, nan, %v3517_v13  ;;  %v1932_v30 = vshrl.u32 %v1914_v29, %v1930_v28  ;;  %v2067_v0 = vand.u32 2139095040, %v6239_v1  ;;  %v1944_v53 = vsub.s32 4, %v6188_v62 }
 0x3dc   :  { %v3849_v54 = vsel %vm3836_vm11, %v1857_v31, %v3518_v58  ;;  %v1935_v6 = vadd.s32 127, %v1934_v3  ;;  %v6280_v10 = vmul.u32.u64.low %v6245_v11, %v2008_v43  ;;  %v6281_v49 = vmul.u32.u64.high %v6245_v11, %v2008_v43, %v6280_v10 }
 0x3dd   :  { %v3873_v4 = vsel %vm3860_vm15, %v5817_v59, %v3849_v54  ;;  %v6288_v38 = vmul.u32.u64.low %v6245_v11, %v2004_v61  ;;  %v6289_v39 = vmul.u32.u64.high %v6245_v11, %v2004_v61, %v6288_v38  ;;  %v1933_v9 = vor.u32 %v1932_v30, %v1931_v60 }
 0x3de   :  { %3890 = vst.msk [vmem:[%s6419_s2 + $0x60] sm:$0xff] %vm6477_vm6, %v3873_v4  ;;  %v1936_v2 = vshll.u32 %v1935_v6, 23  ;;  %v2068_v35 = vshrl.u32 %v2067_v0, 23  ;;  %v2000_v29 = vsel %vm1994_vm2, %v1997_v18, %v1999_v56  ;;  %vm1860_vm0 = vcmp.lt.s32.totalorder %v5999_v24, 0 }
 0x3df   :  { %vm2018_vm13 = vc.u32 %v6281_v49, %v6288_v38  ;;  %v1945_v7 = vsel %vm1860_vm0, %v1944_v53, %v6188_v62  ;;  %v2019_v20 = vadd.s32 1, %v6289_v39  ;;  %v1940_v27 = vcvt.s32.f32 %v1933_v9 }
 0x3e0   :  { %v1937_v59 = vor.u32 4788187, %v1936_v2  ;;  %v3959_v48 = vadd.s32 4294967169, %v2068_v35  ;;  %v2016_v19 = vmul.u32 %v6245_v11, %v2000_v29  ;;  %vm1859_vm5 = vcmp.le.f32.partialorder %v1858_v8, 0.7853982 }
 0x3e1   :  { %v2020_v12 = vsel %vm2018_vm13, %v2019_v20, %v6289_v39  ;;  %v1947_v41 = vsel %vm1859_vm5, 0, %v1945_v7  ;;  %v2064_v18 = vand.u32 2147483647, %v6239_v1  ;;  %vm1950_vm8 = vweird.f32 %v5999_v24 }
 0x3e2   :  { %v1938_v26 = vand.u32 2147483647, %v1937_v59  ;;  %v2074_v33 = vadd.s32 1, %v3959_v48  ;;  %v2021_v46 = vadd.s32 %v2020_v12, %v2016_v19  ;;  %v3612_v56 = vadd.s32 3, %v1947_v41 }
 0x3e3   :  { %v2071_v34 = vand.u32 8388607, %v2064_v18  ;;  %v6317_v17 = vand.u32 3, %v1947_v41 }
 0x3e4   :  { %v1941_v36 = vmul.f32 %v1940_v27, %v1938_v26  ;;  %vm2075_vm3 = vcmp.gt.s32.totalorder %v2074_v33, 0  ;;  %v2022_v47 = vadd.s32 536870912, %v2021_v46  ;;  %v3613_v5 = vand.u32 3, %v3612_v56 }
 0x3e5   :  { %v2076_v51 = vsel %vm2075_vm3, %v2074_v33, 0  ;;  %v2072_v13 = vor.u32 8388608, %v2071_v34  ;;  %vm1956_vm14 = vcmp.eq.s32.totalorder %v6317_v17, 2  ;;  %vm1953_vm9 = vcmp.eq.s32.totalorder %v6317_v17, 0 }
 0x3e6   :  { %v1942_v62 = vxor.u32 2147483648, %v1941_v36  ;;  %v2078_v42 = vand.u32 31, %v2076_v51  ;;  %v6312_v15 = vshrl.u32 %v2022_v47, 30  ;;  %v6329_v58 = vshrl.u32 %v2076_v51, 5 }
 0x3e7   :  { %vm1952_vm12 = vcmp.lt.s32.totalorder %v6317_v17, 2  ;;  %vm3614_vm7 = vcmp.lt.s32.totalorder %v3613_v5, 2  ;;  %vm3615_vm1 = vcmp.eq.s32.totalorder %v3613_v5, 0  ;;  %vm3618_vm10 = vcmp.eq.s32.totalorder %v3613_v5, 2 }
 0x3e8   :  { %v1943_v11 = vsel %vm1860_vm0, %v1942_v62, %v1941_v36  ;;  %v2079_v45 = vsub.s32 32, %v2078_v42  ;;  %v2024_v61 = vshll.u32 %v6312_v15, 30  ;;  %v2090_v3 = vshll.u32 %v4188_v23, %v2078_v42 }
 0x3e9   :  { %v1946_v8 = vsel %vm1859_vm5, %v5999_v24, %v1943_v11  ;;  %v2081_v30 = vshll.u32 %v4185_v16, %v2078_v42  ;;  %v2087_v0 = vshll.u32 %v4187_v21, %v2078_v42  ;;  %v2084_v54 = vshll.u32 %v6436_v44, %v2078_v42 }
 0x3ea   :  { %4155 = vcosq.f32 %v1946_v8  ;;  %v6320_v32 = vsub.s32 %v2021_v46, %v2024_v61  ;;  %v2082_v28 = vshrl.u32 %v6436_v44, %v2079_v45  ;;  %v2088_v43 = vshrl.u32 %v4188_v23, %v2079_v45 }
 0x3eb   :  { %4157 = vsinq.f32 %v1946_v8  ;;  %v2091_v63 = vshrl.u32 %v4189_v25, %v2079_v45  ;;  %v2085_v60 = vshrl.u32 %v4187_v21, %v2079_v45  ;;  %v2093_v10 = vshll.u32 %v4189_v25, %v2078_v42 }
 0x3ec   :  { %v2027_v31 = vsub.s32 0, %v6320_v32  ;;  %v2094_v4 = vshrl.u32 %v6437_v22, %v2079_v45  ;;  %v2083_v53 = vor.u32 %v2082_v28, %v2081_v30  ;;  %v2089_v39 = vor.u32 %v2088_v43, %v2087_v0 }
 0x3ed   :  { %v2092_v6 = vor.u32 %v2091_v63, %v2090_v3  ;;  %v2086_v21 = vor.u32 %v2085_v60, %v2084_v54  ;;  %v2017_v44 = vadd.s32 %v6288_v38, %v6281_v49  ;;  %v2080_v25 = vshrl.u32 %v4185_v16, %v2079_v45 }
 0x3ee   :  { %v3956_v23 = vmin.u32 %v2027_v31, %v6320_v32  ;;  %v2095_v9 = vor.u32 %v2094_v4, %v2093_v10  ;;  %vm2099_vm2 = vcmp.lt.s32.totalorder %v6329_v58, 4  ;;  %vm2096_vm4 = vcmp.lt.s32.totalorder %v6329_v58, 1 }
 0x3ef   :  { %vm2097_vm6 = vcmp.lt.s32.totalorder %v6329_v58, 2  ;;  %v2105_v22 = vsel %vm2099_vm2, %v2092_v6, 920167782  ;;  %v2112_v35 = vshll.u32 %v2072_v13, 8  ;;  %vm2098_vm0 = vcmp.lt.s32.totalorder %v6329_v58, 3 }
 0x3f0   :  { %v2029_v2 = vclz %v3956_v23  ;;  %v2100_v48 = vsel %vm2096_vm4, %v2080_v25, %v2083_v53  ;;  %v2101_v7 = vsel %vm2099_vm2, %v2089_v39, 2102212464  ;;  %v2104_v49 = vsel %vm2096_vm4, %v2083_v53, %v2086_v21 }
 0x3f1   :  { %v2108_v38 = vsel %vm2096_vm4, %v2086_v21, %v2089_v39  ;;  %v2109_v27 = vsel %vm2099_vm2, %v2095_v9, 1326507024  ;;  %v2106_v19 = vsel %vm2098_vm0, %v2089_v39, %v2105_v22  ;;  %v2102_v46 = vsel %vm2098_vm0, %v2086_v21, %v2101_v7 }
 0x3f2   :  { %v3957_v59 = vadd.s32 4294967294, %v2029_v2  ;;  %v2110_v33 = vsel %vm2098_vm0, %v2092_v6, %v2109_v27  ;;  %v2107_v8 = vsel %vm2097_vm6, %v2104_v49, %v2106_v19  ;;  %vm6479_vm5 = vcmask 515072  }
 0x3f3   :  { %v2111_v42 = vsel %vm2097_vm6, %v2108_v38, %v2110_v33  ;;  %v6373_v3 = vmul.u32.u64.low %v2112_v35, %v2107_v8  ;;  %v6374_v31 = vmul.u32.u64.high %v2112_v35, %v2107_v8, %v6373_v3  ;;  %v2103_v30 = vsel %vm2097_vm6, %v2100_v48, %v2102_v46  ;;  %vm6480_vm0 = vmmov %vm6479_vm5 }
 0x3f4   :  { %v4156_v29 = vpop.eup %4155  ;;  %vm3958_vm13 = vcmp.lt.s32.totalorder %v3957_v59, 0  ;;  %v6367_v13 = vmul.u32.u64.low %v2112_v35, %v2111_v42  ;;  %v6368_v5 = vmul.u32.u64.high %v2112_v35, %v2111_v42, %v6367_v13  ;;  %v2119_v10 = vmul.u32 %v2112_v35, %v2103_v30 }
 0x3f5   :  { %v4158_v20 = vpop.eup %4157  ;;  %v1957_v26 = vxor.u32 2147483648, %v4156_v29  ;;  %v2032_v41 = vsel %vm3958_vm13, 0, %v3957_v59  ;;  %v2122_v54 = vadd.s32 1, %v6374_v31  ;;  %v2047_v53 = vsub.s32 4, %v6312_v15 }
 0x3f6   :  { %v1954_v16 = vxor.u32 2147483648, %v4158_v20  ;;  %v2033_v47 = vsub.s32 32, %v2032_v41  ;;  %v2037_v45 = vsub.s32 4294967266, %v2032_v41  ;;  %v2034_v28 = vshll.u32 %v6320_v32, %v2032_v41 }
 0x3f7   :  { %v1958_v12 = vsel %vm1956_vm14, %v1957_v26, %v4158_v20  ;;  %v3620_v36 = vsel %vm3618_vm10, %v1957_v26, %v4158_v20  ;;  %vm2121_vm3 = vc.u32 %v6368_v5, %v6373_v3  ;;  %vm1963_vm14 = vcmp.lt.s32.totalorder %v6087_v37, 0 }
 0x3f8   :  { %v1955_v51 = vsel %vm1953_vm9, %v4156_v29, %v1954_v16  ;;  %v3617_v62 = vsel %vm3615_vm1, %v4156_v29, %v1954_v16  ;;  %v2035_v43 = vshrl.u32 %v2017_v44, %v2033_v47  ;;  %v2038_v17 = vadd.s32 127, %v2037_v45 }
 0x3f9   :  { %v1959_v56 = vsel %vm1952_vm12, %v1955_v51, %v1958_v12  ;;  %v3621_v11 = vsel %vm3614_vm7, %v3617_v62, %v3620_v36  ;;  %v2123_v4 = vsel %vm2121_vm3, %v2122_v54, %v6374_v31  ;;  %vm1962_vm9 = vcmp.le.f32.partialorder %v1961_v55, 0.7853982 }
 0x3fa   :  { %v1960_v34 = vsel %vm1950_vm8, nan, %v1959_v56  ;;  %v3622_v61 = vsel %vm1950_vm8, nan, %v3621_v11  ;;  %v2036_v24 = vor.u32 %v2035_v43, %v2034_v28  ;;  %v2039_v32 = vshll.u32 %v2038_v17, 23 }
 0x3fb   :  { %v3850_v63 = vsel %vm3836_vm11, %v1960_v34, %v3622_v61  ;;  %v2124_v39 = vadd.s32 %v2123_v4, %v2119_v10  ;;  %v2048_v44 = vsel %vm1963_vm14, %v2047_v53, %v6312_v15  ;;  %v2120_v46 = vadd.s32 %v6373_v3, %v6368_v5 }
 0x3fc   :  { %v3874_v60 = vsel %vm3860_vm15, %v5976_v14, %v3850_v63  ;;  %v2040_v0 = vor.u32 4788187, %v2039_v32  ;;  %v2043_v14 = vcvt.s32.f32 %v2036_v24  ;;  %v2050_v35 = vsel %vm1962_vm9, 0, %v2048_v44 }
 0x3fd   :  { %3891 = vst.msk [vmem:[%s6419_s2 + $0x68] sm:$0xff] %vm6479_vm5, %v3874_v60  ;;  %v2125_v9 = vadd.s32 536870912, %v2124_v39  ;;  %v3716_v59 = vadd.s32 3, %v2050_v35  ;;  %v2054_v20 = vand.u32 3, %v2050_v35  ;;  %vm2053_vm6 = vweird.f32 %v6087_v37 }
 0x3fe   :  { %v2041_v6 = vand.u32 2147483647, %v2040_v0  ;;  %vm2066_vm13 = vcmp.lt.s32.totalorder %v6239_v1, 0  ;;  %vm2065_vm5 = vcmp.le.f32.partialorder %v2064_v18, 0.7853982 }
 0x3ff   :  { %v2126_v2 = vshrl.u32 %v2125_v9, 30  ;;  %v3717_v26 = vand.u32 3, %v3716_v59  ;;  %vm2055_vm12 = vcmp.lt.s32.totalorder %v2054_v20, 2  ;;  %vm2056_vm7 = vcmp.eq.s32.totalorder %v2054_v20, 0 }
 0x400   :  { %v2044_v23 = vmul.f32 %v2043_v14, %v2041_v6  ;;  %vm2059_vm8 = vcmp.eq.s32.totalorder %v2054_v20, 2 }
 0x401   :  { %v2127_v22 = vshll.u32 %v2126_v2, 30  ;;  %vm3718_vm1 = vcmp.lt.s32.totalorder %v3717_v26, 2  ;;  %vm3722_vm10 = vcmp.eq.s32.totalorder %v3717_v26, 2  ;;  %vm3719_vm4 = vcmp.eq.s32.totalorder %v3717_v26, 0 }
 0x402   :  { %v2045_v21 = vxor.u32 2147483648, %v2044_v23  ;;  %v2150_v60 = vsub.s32 4, %v2126_v2 }
 0x403   :  { %v2128_v29 = vsub.s32 %v2124_v39, %v2127_v22 }
 0x404   :  { %v2046_v58 = vsel %vm1963_vm14, %v2045_v21, %v2044_v23 }
 0x405   :  { %v2049_v25 = vsel %vm1962_vm9, %v6087_v37, %v2046_v58  ;;  %v2130_v48 = vsub.s32 0, %v2128_v29 }
 0x406   :  { %4159 = vcosq.f32 %v2049_v25 }
 0x407   :  { %4161 = vsinq.f32 %v2049_v25  ;;  %v3960_v7 = vmin.u32 %v2130_v48, %v2128_v29 }
 0x409   :  { %v2132_v49 = vclz %v3960_v7 }
 0x40b   :  { %v3961_v27 = vadd.s32 4294967294, %v2132_v49 }
 0x40d   :  { %vm3962_vm2 = vcmp.lt.s32.totalorder %v3961_v27, 0 }
 0x40e   :  { %v2135_v12 = vsel %vm3962_vm2, 0, %v3961_v27 }
 0x40f   :  { %v2136_v51 = vsub.s32 32, %v2135_v12  ;;  %v2140_v42 = vsub.s32 4294967266, %v2135_v12  ;;  %v2137_v34 = vshll.u32 %v2128_v29, %v2135_v12 }
 0x410   :  { %v4160_v38 = vpop.eup %4159 }
 0x411   :  { %v4162_v55 = vpop.eup %4161  ;;  %v2060_v15 = vxor.u32 2147483648, %v4160_v38  ;;  %v2138_v45 = vshrl.u32 %v2120_v46, %v2136_v51  ;;  %v2141_v61 = vadd.s32 127, %v2140_v42 }
 0x412   :  { %v2057_v16 = vxor.u32 2147483648, %v4162_v55 }
 0x413   :  { %v2061_v19 = vsel %vm2059_vm8, %v2060_v15, %v4162_v55  ;;  %v3724_v33 = vsel %vm3722_vm10, %v2060_v15, %v4162_v55  ;;  %v2139_v37 = vor.u32 %v2138_v45, %v2137_v34  ;;  %v2142_v43 = vshll.u32 %v2141_v61, 23  ;;  %vm6481_vm10 = vmmov %vm6480_vm0 }
 0x414   :  { %v2058_v36 = vsel %vm2056_vm7, %v4160_v38, %v2057_v16  ;;  %v3721_v41 = vsel %vm3719_vm4, %v4160_v38, %v2057_v16 }
 0x415   :  { %v2062_v62 = vsel %vm2055_vm12, %v2058_v36, %v2061_v19  ;;  %v3725_v47 = vsel %vm3718_vm1, %v3721_v41, %v3724_v33  ;;  %v2143_v63 = vor.u32 4788187, %v2142_v43  ;;  %v2146_v13 = vcvt.s32.f32 %v2139_v37 }
 0x416   :  { %v2063_v56 = vsel %vm2053_vm6, nan, %v2062_v62  ;;  %v3726_v11 = vsel %vm2053_vm6, nan, %v3725_v47  ;;  %vm2156_vm1 = vweird.f32 %v6239_v1 }
 0x417   :  { %v3851_v8 = vsel %vm3836_vm11, %v2063_v56, %v3726_v11  ;;  %v2144_v17 = vand.u32 2147483647, %v2143_v63 }
 0x418   :  { %v3875_v28 = vsel %vm3860_vm15, %v6082_v40, %v3851_v8  ;;  %v2151_v40 = vsel %vm2066_vm13, %v2150_v60, %v2126_v2 }
 0x419   :  { %3892 = vst.msk [vmem:[%s6419_s2 + $0x70] sm:$0xff] %vm6480_vm0, %v3875_v28  ;;  %v2147_v5 = vmul.f32 %v2146_v13, %v2144_v17  ;;  %v2153_v32 = vsel %vm2065_vm5, 0, %v2151_v40 }
 0x41a   :  { %v3820_v30 = vadd.s32 3, %v2153_v32  ;;  %v2157_v0 = vand.u32 3, %v2153_v32 }
 0x41b   :  { %v2148_v3 = vxor.u32 2147483648, %v2147_v5 }
 0x41c   :  { %v3821_v54 = vand.u32 3, %v3820_v30  ;;  %vm2162_vm3 = vcmp.eq.s32.totalorder %v2157_v0, 2  ;;  %vm2159_vm9 = vcmp.eq.s32.totalorder %v2157_v0, 0  ;;  %vm2158_vm7 = vcmp.lt.s32.totalorder %v2157_v0, 2 }
 0x41d   :  { %v2149_v31 = vsel %vm2066_vm13, %v2148_v3, %v2147_v5 }
 0x41e   :  { %v2152_v24 = vsel %vm2065_vm5, %v6239_v1, %v2149_v31  ;;  %vm3826_vm14 = vcmp.eq.s32.totalorder %v3821_v54, 2  ;;  %vm3823_vm12 = vcmp.eq.s32.totalorder %v3821_v54, 0  ;;  %vm3822_vm8 = vcmp.lt.s32.totalorder %v3821_v54, 2 }
 0x41f   :  { %4163 = vcosq.f32 %v2152_v24 }
 0x420   :  { %4165 = vsinq.f32 %v2152_v24 }
 0x429   :  { %v4164_v6 = vpop.eup %4163 }
 0x42a   :  { %v4166_v14 = vpop.eup %4165  ;;  %v2163_v10 = vxor.u32 2147483648, %v4164_v6 }
 0x42b   :  { %v2160_v4 = vxor.u32 2147483648, %v4166_v14 }
 0x42c   :  { %v2164_v23 = vsel %vm2162_vm3, %v2163_v10, %v4166_v14  ;;  %v3828_v18 = vsel %vm3826_vm14, %v2163_v10, %v4166_v14 }
 0x42d   :  { %v2161_v53 = vsel %vm2159_vm9, %v4164_v6, %v2160_v4  ;;  %v3825_v39 = vsel %vm3823_vm12, %v4164_v6, %v2160_v4 }
 0x42e   :  { %v2165_v21 = vsel %vm2158_vm7, %v2161_v53, %v2164_v23  ;;  %v3829_v9 = vsel %vm3822_vm8, %v3825_v39, %v3828_v18 }
 0x42f   :  { %v2166_v58 = vsel %vm2156_vm1, nan, %v2165_v21  ;;  %v3830_v44 = vsel %vm2156_vm1, nan, %v3829_v9 }
 0x430   :  { %v3852_v2 = vsel %vm3836_vm11, %v2166_v58, %v3830_v44 }
 0x431   :  { %v3876_v25 = vsel %vm3860_vm15, %v6216_v52, %v3852_v2 }
 0x432   :  { %3893 = vst.msk [vmem:[%s6419_s2 + $0x78] sm:$0xff] %vm6481_vm10, %v3876_v25 }

</bundles_post_ra>
